<compile_context>
chip_gen: v5e
topology: v5e:2x2
jax: 0.10.0
libtpu: 0.0.40
codegen_flags: <defaults>
</compile_context>

<pallas_src>
import jax
import jax.numpy as jnp
from jax.experimental import pallas as pl
from jax.experimental.pallas import tpu as pltpu


_PAR1 = pltpu.CompilerParams(dimension_semantics=("parallel",))


def _round_up(x, m):
    return ((x + m - 1) // m) * m


# ----------------------------------------------------------------------------
# Kernel R: per-(b,u) partial means over V and over H in a single pass over x
# ----------------------------------------------------------------------------
def _reduce_kernel(x_ref, t1_ref, t2_ref):
    x = x_ref[...].astype(jnp.float32)                      # (1, V, H, W*C)
    t1_ref[...] = jnp.mean(x, axis=1).astype(t1_ref.dtype)                 # (1, H, W*C)
    t2_ref[...] = jnp.mean(x, axis=2, keepdims=True).astype(t2_ref.dtype)  # (1, V, 1, W*C)


def pallas_reduce_vh(x4):
    """x4: (N, V, H, W*C) -> (mean over V: (N,H,W*C), mean over H: (N,V,1,W*C))."""
    N, V, H, WC = x4.shape
    return pl.pallas_call(
        _reduce_kernel,
        out_shape=(jax.ShapeDtypeStruct((N, H, WC), x4.dtype),
                   jax.ShapeDtypeStruct((N, V, 1, WC), x4.dtype)),
        grid=(N,),
        in_specs=[pl.BlockSpec((1, V, H, WC), lambda n: (n, 0, 0, 0))],
        out_specs=[pl.BlockSpec((1, H, WC), lambda n: (n, 0, 0)),
                   pl.BlockSpec((1, V, 1, WC), lambda n: (n, 0, 0, 0))],
        compiler_params=_PAR1,
    )(x4)


# ----------------------------------------------------------------------------
# Kernel A: fused body = Conv1x1 -> SiLU -> Conv1x1 (row-tiled, resident weights)
# ----------------------------------------------------------------------------
def _body_kernel(x_ref, w1_ref, b1_ref, w2_ref, b2_ref, o_ref):
    x = x_ref[...].astype(jnp.bfloat16)                     # bf16 MXU operands
    h = jnp.dot(x, w1_ref[...].astype(jnp.bfloat16),
                preferred_element_type=jnp.float32)          # f32 accumulate
    h = h + b1_ref[...].astype(jnp.float32)
    h = h * jax.nn.sigmoid(h)                                # SiLU in f32 (EUP)
    y = jnp.dot(h.astype(jnp.bfloat16), w2_ref[...].astype(jnp.bfloat16),
                preferred_element_type=jnp.float32)
    o_ref[...] = (y + b2_ref[...].astype(jnp.float32)).astype(o_ref.dtype)


def pallas_body(x2d, w1, b1, w2, b2, tm=512):
    """y = silu(x @ w1 + b1) @ w2 + b2   for x2d:(M,C), w1:(C,MID), w2:(MID,C)."""
    M, C = x2d.shape
    MID = w1.shape[1]
    tm = min(tm, _round_up(M, 8))
    Mp = _round_up(M, tm)
    xp = jnp.pad(x2d, ((0, Mp - M), (0, 0)))
    y = pl.pallas_call(
        _body_kernel,
        out_shape=jax.ShapeDtypeStruct((Mp, C), x2d.dtype),
        grid=(Mp // tm,),
        in_specs=[pl.BlockSpec((tm, C), lambda i: (i, 0)),
                  pl.BlockSpec((C, MID), lambda i: (0, 0)),   # resident weight
                  pl.BlockSpec((1, MID), lambda i: (0, 0)),
                  pl.BlockSpec((MID, C), lambda i: (0, 0)),
                  pl.BlockSpec((1, C), lambda i: (0, 0))],
        out_specs=pl.BlockSpec((tm, C), lambda i: (i, 0)),
        compiler_params=_PAR1,
    )(xp, w1, b1, w2, b2)
    return y[:M]


# ----------------------------------------------------------------------------
# Kernel B: the four fuse 1x1 convs as ONE batched call (grid axis over weights)
# ----------------------------------------------------------------------------
def _fuses_kernel(x_ref, w_ref, b_ref, o_ref):
    x = x_ref[0].astype(jnp.bfloat16)                        # (R, C)
    y = jnp.dot(x, w_ref[0].astype(jnp.bfloat16),
                preferred_element_type=jnp.float32)
    o_ref[0] = (y + b_ref[0].astype(jnp.float32)).astype(o_ref.dtype)


def pallas_fuses(xs, ws, bs):
    """xs:(4,R,C) stacked (padded) inputs, ws:(4,C,C), bs:(4,1,C) -> (4,R,C)."""
    G, R, C = xs.shape
    return pl.pallas_call(
        _fuses_kernel,
        out_shape=jax.ShapeDtypeStruct((G, R, C), xs.dtype),
        grid=(G,),
        in_specs=[pl.BlockSpec((1, R, C), lambda g: (g, 0, 0)),
                  pl.BlockSpec((1, C, C), lambda g: (g, 0, 0)),
                  pl.BlockSpec((1, 1, C), lambda g: (g, 0, 0))],
        out_specs=pl.BlockSpec((1, R, C), lambda g: (g, 0, 0)),
        compiler_params=_PAR1,
    )(xs, ws, bs)


# ----------------------------------------------------------------------------
# Kernel C: out = x * (hw + uv + uh + vw) with the broadcasts done in-kernel
# ----------------------------------------------------------------------------
def _combine_kernel(x_ref, p_ref, q_ref, o_ref):
    # x:(1,V,H,WC)  p:(1,H,WC)=hw+uh  q:(1,V,1,WC)=uv+vw
    mult = p_ref[...][:, None, :, :] + q_ref[...]            # (1,V,H,WC)
    o_ref[...] = (x_ref[...] * mult).astype(o_ref.dtype)


def pallas_combine(x4, p3, q4):
    N, V, H, WC = x4.shape
    return pl.pallas_call(
        _combine_kernel,
        out_shape=jax.ShapeDtypeStruct((N, V, H, WC), x4.dtype),
        grid=(N,),
        in_specs=[pl.BlockSpec((1, V, H, WC), lambda n: (n, 0, 0, 0)),
                  pl.BlockSpec((1, H, WC), lambda n: (n, 0, 0)),
                  pl.BlockSpec((1, V, 1, WC), lambda n: (n, 0, 0, 0))],
        out_specs=pl.BlockSpec((1, V, H, WC), lambda n: (n, 0, 0, 0)),
        compiler_params=_PAR1,
    )(x4, p3, q4)


# ----------------------------------------------------------------------------
# MCA forward (channels-first interface, channels-last internally)
# ----------------------------------------------------------------------------
def mca_forward(x, p):
    B, C, U, V, H, W = x.shape
    WC = W * C

    # single layout conversion channels-first -> channels-last
    xcl = jnp.transpose(x, (0, 2, 3, 4, 5, 1))               # (B,U,V,H,W,C)
    x4 = xcl.reshape(B * U, V, H, WC)

    # --- means (one Pallas pass over x, tiny finishing reductions in XLA) ---
    t1, t2 = pallas_reduce_vh(x4)
    t1 = t1.reshape(B, U, H, W, C)                           # mean over V
    t2 = t2.reshape(B, U, V, W, C)                           # mean over H
    m_hw = jnp.mean(t1, axis=1)                              # (B,H,W,C) mean(U,V)
    m_uh = jnp.mean(t1, axis=3)                              # (B,U,H,C) mean(V,W)
    m_uv = jnp.mean(t2, axis=3)                              # (B,U,V,C) mean(H,W)
    m_vw = jnp.mean(t2, axis=1)                              # (B,V,W,C) mean(U,H)

    top = jnp.concatenate([m_hw, jnp.transpose(m_uh, (0, 2, 1, 3))], axis=2)  # (B,H,W+U,C)
    bot = jnp.concatenate([m_vw, jnp.transpose(m_uv, (0, 2, 1, 3))], axis=2)  # (B,V,W+U,C)
    uvhw = jnp.concatenate([top, bot], axis=1)               # (B,H+V,W+U,C)

    # --- body: Conv1x1 -> SiLU -> Conv1x1, fused in one kernel ---
    y = pallas_body(uvhw.reshape(-1, C),
                    jnp.transpose(p["w1"]), p["b1"].reshape(1, -1),
                    jnp.transpose(p["w2"]), p["b2"].reshape(1, -1))
    y = y.reshape(B, H + V, W + U, C)

    hw_in = y[:, :H, :W].reshape(-1, C)                                   # (B*H*W,C)
    vw_in = y[:, H:, :W].reshape(-1, C)                                   # (B*V*W,C)
    uh_in = jnp.transpose(y[:, :H, W:], (0, 2, 1, 3)).reshape(-1, C)      # (B*U*H,C)
    uv_in = jnp.transpose(y[:, H:, W:], (0, 2, 1, 3)).reshape(-1, C)      # (B*U*V,C)

    # --- the four fuse convs in a single batched kernel (order = fuses[0..3]) ---
    rows = [hw_in, uv_in, uh_in, vw_in]
    rmax = _round_up(max(r.shape[0] for r in rows), 8)
    xs = jnp.stack([jnp.pad(r, ((0, rmax - r.shape[0]), (0, 0))) for r in rows])
    ws = jnp.stack([jnp.transpose(p[f"fuse{i}_w"]) for i in range(4)])    # (4,C,C)
    bs = jnp.stack([p[f"fuse{i}_b"].reshape(1, -1) for i in range(4)])    # (4,1,C)
    f = pallas_fuses(xs, ws, bs)

    hw_f = f[0, :B * H * W].reshape(B, H, W, C)
    uv_f = f[1, :B * U * V].reshape(B, U, V, C)
    uh_f = f[2, :B * U * H].reshape(B, U, H, C)
    vw_f = f[3, :B * V * W].reshape(B, V, W, C)

    # x*hw + x*uv + x*uh + x*vw  ==  x * (hw + uv + uh + vw); pre-combine into
    # two compact broadcast tensors so the combine kernel reads x exactly once.
    pm = hw_f[:, None] + uh_f[:, :, :, None]                 # (B,U,H,W,C)
    qm = uv_f[:, :, :, None] + vw_f[:, None]                 # (B,U,V,W,C)

    out4 = pallas_combine(x4,
                          pm.reshape(B * U, H, WC),
                          qm.reshape(B * U, V, 1, WC))
    out = out4.reshape(B, U, V, H, W, C)
    return jnp.transpose(out, (0, 5, 1, 2, 3, 4))            # back to (B,C,U,V,H,W)


# ----------------------------------------------------------------------------
# Pure-JAX reference (mirrors the PyTorch module exactly, f32 everywhere)
# ----------------------------------------------------------------------------
def mca_reference(x, p):
    B, C, U, V, H, W = x.shape
    m_uv = jnp.mean(x, axis=(4, 5))
    m_uh = jnp.mean(x, axis=(3, 5))
    m_hw = jnp.mean(x, axis=(2, 3))
    m_vw = jnp.mean(x, axis=(2, 4))
    top = jnp.concatenate([m_hw, jnp.swapaxes(m_uh, -1, -2)], axis=-1)
    bot = jnp.concatenate([m_vw, jnp.swapaxes(m_uv, -1, -2)], axis=-1)
    uvhw = jnp.concatenate([top, bot], axis=-2)              # (B,C,H+V,W+U)

    def conv1x1(t, w, b):
        return jnp.einsum("bchw,oc->bohw", t, w) + b[None, :, None, None]

    y = conv1x1(uvhw, p["w1"], p["b1"])
    y = y * jax.nn.sigmoid(y)
    y = conv1x1(y, p["w2"], p["b2"])
    hw = conv1x1(y[..., :H, :W], p["fuse0_w"], p["fuse0_b"])
    vw = conv1x1(y[..., H:, :W], p["fuse3_w"], p["fuse3_b"])
    uh = conv1x1(jnp.swapaxes(y[..., :H, W:], -1, -2), p["fuse2_w"], p["fuse2_b"])
    uv = conv1x1(jnp.swapaxes(y[..., H:, W:], -1, -2), p["fuse1_w"], p["fuse1_b"])
    return (x * hw[:, :, None, None, :, :]
            + x * uv[:, :, :, :, None, None]
            + x * uh[:, :, :, None, :, None]
            + x * vw[:, :, None, :, None, :])


def init_params(key, dim):
    ks = jax.random.split(key, 12)

    def w(k, shape, scale=0.1):
        return scale * jax.random.normal(k, shape, jnp.float32)

    p = {"w1": w(ks[0], (dim, dim)), "b1": w(ks[1], (dim,)),
         "w2": w(ks[2], (dim, dim)), "b2": w(ks[3], (dim,))}
    for i in range(4):
        p[f"fuse{i}_w"] = w(ks[4 + 2 * i], (dim, dim))
        p[f"fuse{i}_b"] = w(ks[5 + 2 * i], (dim,))
    return p


if __name__ == "__main__":
    # MCA(dim=32) on a light field x of shape (B, C, U, V, H, W)
    B, C, U, V, H, W = 2, 32, 4, 4, 16, 16

    key = jax.random.PRNGKey(0)
    kx, kp = jax.random.split(key)
    x = jax.random.normal(kx, (B, C, U, V, H, W), jnp.float32)
    params = init_params(kp, C)

    out = jax.block_until_ready(jax.jit(mca_forward)(x, params))
    ref = jax.block_until_ready(jax.jit(mca_reference)(x, params))

    assert out.shape == x.shape
    assert bool(jnp.all(jnp.isfinite(out)))
    # bf16 MXU operands (f32 accumulate) -> small numerical deviation vs f32 ref
    err = float(jnp.max(jnp.abs(out - ref)) / (jnp.max(jnp.abs(ref)) + 1e-8))
    assert err < 5e-2, f"max relative error too large: {err}"
    print("KERNEL_OK")
</pallas_src>

<mosaic_0001>
module attributes {stable_mosaic.version = 11 : i64} {
  func.func @_reduce_kernel(%arg0: i32, %arg1: memref<1x4x16x512xf32, #tpu.memory_space<vmem>>, %arg2: memref<1x16x512xf32, #tpu.memory_space<vmem>>, %arg3: memref<1x4x1x512xf32, #tpu.memory_space<vmem>>) attributes {dimension_semantics = [#tpu.dimension_semantics<parallel>], iteration_bounds = array<i64: 8>, scalar_prefetch = 0 : i64, scratch_operands = 0 : i64, tpu.core_type = #tpu.core_type<tc>, window_params = [{transform_indices = @transform_0, window_bounds = array<i64: 1, 4, 16, 512>}, {transform_indices = @transform_1, window_bounds = array<i64: 1, 16, 512>}, {transform_indices = @transform_2, window_bounds = array<i64: 1, 4, 1, 512>}]} {
    %c0 = arith.constant 0 : index
    %c0_0 = arith.constant 0 : index
    %c0_1 = arith.constant 0 : index
    %c0_2 = arith.constant 0 : index
    %0 = vector.load %arg1[%c0, %c0_0, %c0_1, %c0_2] : memref<1x4x16x512xf32, #tpu.memory_space<vmem>>, vector<1x4x16x512xf32>
    %cst = arith.constant dense<0.000000e+00> : vector<1x16x512xf32>
    %1 = vector.multi_reduction <add>, %0, %cst [1] : vector<1x4x16x512xf32> to vector<1x16x512xf32>
    %cst_3 = arith.constant 4.000000e+00 : f32
    %2 = vector.broadcast %cst_3 : f32 to vector<1x16x512xf32>
    %3 = arith.divf %1, %2 : vector<1x16x512xf32>
    %c0_4 = arith.constant 0 : index
    %c0_5 = arith.constant 0 : index
    %c0_6 = arith.constant 0 : index
    %4 = vector.load %arg2[%c0_4, %c0_5, %c0_6] : memref<1x16x512xf32, #tpu.memory_space<vmem>>, vector<1x16x512xf32>
    tpu.vector_store %arg2[%c0_4, %c0_5, %c0_6], %3 {strides = array<i32>} : memref<1x16x512xf32, #tpu.memory_space<vmem>>, vector<1x16x512xf32>,
    %cst_7 = arith.constant dense<0.000000e+00> : vector<1x4x512xf32>
    %5 = vector.multi_reduction <add>, %0, %cst_7 [2] : vector<1x4x16x512xf32> to vector<1x4x512xf32>
    %6 = vector.shape_cast %5 : vector<1x4x512xf32> to vector<1x4x1x512xf32>
    %cst_8 = arith.constant 1.600000e+01 : f32
    %7 = vector.broadcast %cst_8 : f32 to vector<1x4x1x512xf32>
    %8 = arith.divf %6, %7 : vector<1x4x1x512xf32>
    %c0_9 = arith.constant 0 : index
    %c0_10 = arith.constant 0 : index
    %c0_11 = arith.constant 0 : index
    %c0_12 = arith.constant 0 : index
    %9 = vector.load %arg3[%c0_9, %c0_10, %c0_11, %c0_12] : memref<1x4x1x512xf32, #tpu.memory_space<vmem>>, vector<1x4x1x512xf32>
    tpu.vector_store %arg3[%c0_9, %c0_10, %c0_11, %c0_12], %8 {strides = array<i32>} : memref<1x4x1x512xf32, #tpu.memory_space<vmem>>, vector<1x4x1x512xf32>,
    return
  }
  func.func @transform_0(%arg0: i32) -> (i32, i32, i32, i32) {
    %c0_i32 = arith.constant 0 : i32
    %c0_i32_0 = arith.constant 0 : i32
    %c0_i32_1 = arith.constant 0 : i32
    %c0_i32_2 = arith.constant 0 : i32
    return %arg0, %c0_i32, %c0_i32_0, %c0_i32_1 : i32, i32, i32, i32
  }
  func.func @transform_1(%arg0: i32) -> (i32, i32, i32) {
    %c0_i32 = arith.constant 0 : i32
    %c0_i32_0 = arith.constant 0 : i32
    %c0_i32_1 = arith.constant 0 : i32
    return %arg0, %c0_i32, %c0_i32_0 : i32, i32, i32
  }
  func.func @transform_2(%arg0: i32) -> (i32, i32, i32, i32) {
    %c0_i32 = arith.constant 0 : i32
    %c0_i32_0 = arith.constant 0 : i32
    %c0_i32_1 = arith.constant 0 : i32
    %c0_i32_2 = arith.constant 0 : i32
    return %arg0, %c0_i32, %c0_i32_0, %c0_i32_1 : i32, i32, i32, i32
  }
}

module attributes {stable_mosaic.version = 11 : i64} {
  func.func @_body_kernel(%arg0: i32, %arg1: memref<512x32xf32, #tpu.memory_space<vmem>>, %arg2: memref<32x32xf32, #tpu.memory_space<vmem>>, %arg3: memref<1x32xf32, #tpu.memory_space<vmem>>, %arg4: memref<32x32xf32, #tpu.memory_space<vmem>>, %arg5: memref<1x32xf32, #tpu.memory_space<vmem>>, %arg6: memref<512x32xf32, #tpu.memory_space<vmem>>) attributes {dimension_semantics = [#tpu.dimension_semantics<parallel>], iteration_bounds = array<i64: 2>, scalar_prefetch = 0 : i64, scratch_operands = 0 : i64, tpu.core_type = #tpu.core_type<tc>, window_params = [{transform_indices = @transform_0, window_bounds = array<i64: 512, 32>}, {pipeline_mode = #tpu.pipeline_mode<synchronous>, transform_indices = @transform_1, window_bounds = array<i64: 32, 32>}, {pipeline_mode = #tpu.pipeline_mode<synchronous>, transform_indices = @transform_2, window_bounds = array<i64: 1, 32>}, {pipeline_mode = #tpu.pipeline_mode<synchronous>, transform_indices = @transform_3, window_bounds = array<i64: 32, 32>}, {pipeline_mode = #tpu.pipeline_mode<synchronous>, transform_indices = @transform_4, window_bounds = array<i64: 1, 32>}, {transform_indices = @transform_5, window_bounds = array<i64: 512, 32>}]} {
    %c0 = arith.constant 0 : index
    %c0_0 = arith.constant 0 : index
    %0 = vector.load %arg1[%c0, %c0_0] : memref<512x32xf32, #tpu.memory_space<vmem>>, vector<512x32xf32>
    %1 = arith.truncf %0 : vector<512x32xf32> to vector<512x32xbf16>
    %c0_1 = arith.constant 0 : index
    %c0_2 = arith.constant 0 : index
    %2 = vector.load %arg2[%c0_1, %c0_2] : memref<32x32xf32, #tpu.memory_space<vmem>>, vector<32x32xf32>
    %3 = arith.truncf %2 : vector<32x32xf32> to vector<32x32xbf16>
    %cst = arith.constant dense<0.000000e+00> : vector<512x32xf32>
    %4 = tpu.matmul %1, %3, %cst {dimension_numbers = #tpu.dot_dimension_numbers<[1], [0], [0], [1], [0, 0, 1, 1], [], []>} : vector<512x32xbf16>, vector<32x32xbf16>, vector<512x32xf32> -> vector<512x32xf32>
    %c0_3 = arith.constant 0 : index
    %c0_4 = arith.constant 0 : index
    %5 = vector.load %arg3[%c0_3, %c0_4] : memref<1x32xf32, #tpu.memory_space<vmem>>, vector<1x32xf32>
    %6 = vector.broadcast %5 : vector<1x32xf32> to vector<512x32xf32>
    %7 = arith.addf %4, %6 : vector<512x32xf32>
    %8 = arith.negf %7 : vector<512x32xf32>
    %9 = math.exp %8 : vector<512x32xf32>
    %cst_5 = arith.constant 1.000000e+00 : f32
    %10 = vector.broadcast %cst_5 : f32 to vector<512x32xf32>
    %11 = arith.addf %10, %9 : vector<512x32xf32>
    %12 = arith.divf %10, %11 : vector<512x32xf32>
    %13 = arith.mulf %7, %12 : vector<512x32xf32>
    %14 = arith.truncf %13 : vector<512x32xf32> to vector<512x32xbf16>
    %c0_6 = arith.constant 0 : index
    %c0_7 = arith.constant 0 : index
    %15 = vector.load %arg4[%c0_6, %c0_7] : memref<32x32xf32, #tpu.memory_space<vmem>>, vector<32x32xf32>
    %16 = arith.truncf %15 : vector<32x32xf32> to vector<32x32xbf16>
    %cst_8 = arith.constant dense<0.000000e+00> : vector<512x32xf32>
    %17 = tpu.matmul %14, %16, %cst_8 {dimension_numbers = #tpu.dot_dimension_numbers<[1], [0], [0], [1], [0, 0, 1, 1], [], []>} : vector<512x32xbf16>, vector<32x32xbf16>, vector<512x32xf32> -> vector<512x32xf32>
    %c0_9 = arith.constant 0 : index
    %c0_10 = arith.constant 0 : index
    %18 = vector.load %arg5[%c0_9, %c0_10] : memref<1x32xf32, #tpu.memory_space<vmem>>, vector<1x32xf32>
    %19 = vector.broadcast %18 : vector<1x32xf32> to vector<512x32xf32>
    %20 = arith.addf %17, %19 : vector<512x32xf32>
    %c0_11 = arith.constant 0 : index
    %c0_12 = arith.constant 0 : index
    %21 = vector.load %arg6[%c0_11, %c0_12] : memref<512x32xf32, #tpu.memory_space<vmem>>, vector<512x32xf32>
    tpu.vector_store %arg6[%c0_11, %c0_12], %20 {strides = array<i32>} : memref<512x32xf32, #tpu.memory_space<vmem>>, vector<512x32xf32>,
    return
  }
  func.func @transform_0(%arg0: i32) -> (i32, i32) {
    %c0_i32 = arith.constant 0 : i32
    %c0_i32_0 = arith.constant 0 : i32
    return %arg0, %c0_i32 : i32, i32
  }
  func.func @transform_1(%arg0: i32) -> (i32, i32) {
    %c0_i32 = arith.constant 0 : i32
    %c0_i32_0 = arith.constant 0 : i32
    %c0_i32_1 = arith.constant 0 : i32
    return %c0_i32, %c0_i32_0 : i32, i32
  }
  func.func @transform_2(%arg0: i32) -> (i32, i32) {
    %c0_i32 = arith.constant 0 : i32
    %c0_i32_0 = arith.constant 0 : i32
    %c0_i32_1 = arith.constant 0 : i32
    return %c0_i32, %c0_i32_0 : i32, i32
  }
  func.func @transform_3(%arg0: i32) -> (i32, i32) {
    %c0_i32 = arith.constant 0 : i32
    %c0_i32_0 = arith.constant 0 : i32
    %c0_i32_1 = arith.constant 0 : i32
    return %c0_i32, %c0_i32_0 : i32, i32
  }
  func.func @transform_4(%arg0: i32) -> (i32, i32) {
    %c0_i32 = arith.constant 0 : i32
    %c0_i32_0 = arith.constant 0 : i32
    %c0_i32_1 = arith.constant 0 : i32
    return %c0_i32, %c0_i32_0 : i32, i32
  }
  func.func @transform_5(%arg0: i32) -> (i32, i32) {
    %c0_i32 = arith.constant 0 : i32
    %c0_i32_0 = arith.constant 0 : i32
    return %arg0, %c0_i32 : i32, i32
  }
}

module attributes {stable_mosaic.version = 11 : i64} {
  func.func @_fuses_kernel(%arg0: i32, %arg1: memref<1x512x32xf32, #tpu.memory_space<vmem>>, %arg2: memref<1x32x32xf32, #tpu.memory_space<vmem>>, %arg3: memref<1x1x32xf32, #tpu.memory_space<vmem>>, %arg4: memref<1x512x32xf32, #tpu.memory_space<vmem>>) attributes {dimension_semantics = [#tpu.dimension_semantics<parallel>], iteration_bounds = array<i64: 4>, scalar_prefetch = 0 : i64, scratch_operands = 0 : i64, tpu.core_type = #tpu.core_type<tc>, window_params = [{transform_indices = @transform_0, window_bounds = array<i64: 1, 512, 32>}, {transform_indices = @transform_1, window_bounds = array<i64: 1, 32, 32>}, {transform_indices = @transform_2, window_bounds = array<i64: 1, 1, 32>}, {transform_indices = @transform_3, window_bounds = array<i64: 1, 512, 32>}]} {
    %c0 = arith.constant 0 : index
    %c0_0 = arith.constant 0 : index
    %c0_1 = arith.constant 0 : index
    %0 = vector.load %arg1[%c0, %c0_0, %c0_1] : memref<1x512x32xf32, #tpu.memory_space<vmem>>, vector<1x512x32xf32>
    %1 = vector.shape_cast %0 : vector<1x512x32xf32> to vector<512x32xf32>
    %2 = arith.truncf %1 : vector<512x32xf32> to vector<512x32xbf16>
    %c0_2 = arith.constant 0 : index
    %c0_3 = arith.constant 0 : index
    %c0_4 = arith.constant 0 : index
    %3 = vector.load %arg2[%c0_2, %c0_3, %c0_4] : memref<1x32x32xf32, #tpu.memory_space<vmem>>, vector<1x32x32xf32>
    %4 = vector.shape_cast %3 : vector<1x32x32xf32> to vector<32x32xf32>
    %5 = arith.truncf %4 : vector<32x32xf32> to vector<32x32xbf16>
    %cst = arith.constant dense<0.000000e+00> : vector<512x32xf32>
    %6 = tpu.matmul %2, %5, %cst {dimension_numbers = #tpu.dot_dimension_numbers<[1], [0], [0], [1], [0, 0, 1, 1], [], []>} : vector<512x32xbf16>, vector<32x32xbf16>, vector<512x32xf32> -> vector<512x32xf32>
    %c0_5 = arith.constant 0 : index
    %c0_6 = arith.constant 0 : index
    %c0_7 = arith.constant 0 : index
    %7 = vector.load %arg3[%c0_5, %c0_6, %c0_7] : memref<1x1x32xf32, #tpu.memory_space<vmem>>, vector<1x1x32xf32>
    %8 = vector.shape_cast %7 : vector<1x1x32xf32> to vector<1x32xf32>
    %9 = vector.broadcast %8 : vector<1x32xf32> to vector<512x32xf32>
    %10 = arith.addf %6, %9 : vector<512x32xf32>
    %c0_8 = arith.constant 0 : index
    %c0_9 = arith.constant 0 : index
    %c0_10 = arith.constant 0 : index
    %11 = vector.load %arg4[%c0_8, %c0_9, %c0_10] : memref<1x512x32xf32, #tpu.memory_space<vmem>>, vector<1x512x32xf32>
    %12 = vector.shape_cast %11 : vector<1x512x32xf32> to vector<512x32xf32>
    %13 = vector.shape_cast %10 : vector<512x32xf32> to vector<1x512x32xf32>
    tpu.vector_store %arg4[%c0_8, %c0_9, %c0_10], %13 {strides = array<i32>} : memref<1x512x32xf32, #tpu.memory_space<vmem>>, vector<1x512x32xf32>,
    return
  }
  func.func @transform_0(%arg0: i32) -> (i32, i32, i32) {
    %c0_i32 = arith.constant 0 : i32
    %c0_i32_0 = arith.constant 0 : i32
    %c0_i32_1 = arith.constant 0 : i32
    return %arg0, %c0_i32, %c0_i32_0 : i32, i32, i32
  }
  func.func @transform_1(%arg0: i32) -> (i32, i32, i32) {
    %c0_i32 = arith.constant 0 : i32
    %c0_i32_0 = arith.constant 0 : i32
    %c0_i32_1 = arith.constant 0 : i32
    return %arg0, %c0_i32, %c0_i32_0 : i32, i32, i32
  }
  func.func @transform_2(%arg0: i32) -> (i32, i32, i32) {
    %c0_i32 = arith.constant 0 : i32
    %c0_i32_0 = arith.constant 0 : i32
    %c0_i32_1 = arith.constant 0 : i32
    return %arg0, %c0_i32, %c0_i32_0 : i32, i32, i32
  }
  func.func @transform_3(%arg0: i32) -> (i32, i32, i32) {
    %c0_i32 = arith.constant 0 : i32
    %c0_i32_0 = arith.constant 0 : i32
    %c0_i32_1 = arith.constant 0 : i32
    return %arg0, %c0_i32, %c0_i32_0 : i32, i32, i32
  }
}

module attributes {stable_mosaic.version = 11 : i64} {
  func.func @_combine_kernel(%arg0: i32, %arg1: memref<1x4x16x512xf32, #tpu.memory_space<vmem>>, %arg2: memref<1x16x512xf32, #tpu.memory_space<vmem>>, %arg3: memref<1x4x1x512xf32, #tpu.memory_space<vmem>>, %arg4: memref<1x4x16x512xf32, #tpu.memory_space<vmem>>) attributes {dimension_semantics = [#tpu.dimension_semantics<parallel>], iteration_bounds = array<i64: 8>, scalar_prefetch = 0 : i64, scratch_operands = 0 : i64, tpu.core_type = #tpu.core_type<tc>, window_params = [{transform_indices = @transform_0, window_bounds = array<i64: 1, 4, 16, 512>}, {transform_indices = @transform_1, window_bounds = array<i64: 1, 16, 512>}, {transform_indices = @transform_2, window_bounds = array<i64: 1, 4, 1, 512>}, {transform_indices = @transform_3, window_bounds = array<i64: 1, 4, 16, 512>}]} {
    %c0 = arith.constant 0 : index
    %c0_0 = arith.constant 0 : index
    %c0_1 = arith.constant 0 : index
    %0 = vector.load %arg2[%c0, %c0_0, %c0_1] : memref<1x16x512xf32, #tpu.memory_space<vmem>>, vector<1x16x512xf32>
    %1 = vector.shape_cast %0 : vector<1x16x512xf32> to vector<1x1x16x512xf32>
    %c0_2 = arith.constant 0 : index
    %c0_3 = arith.constant 0 : index
    %c0_4 = arith.constant 0 : index
    %c0_5 = arith.constant 0 : index
    %2 = vector.load %arg3[%c0_2, %c0_3, %c0_4, %c0_5] : memref<1x4x1x512xf32, #tpu.memory_space<vmem>>, vector<1x4x1x512xf32>
    %3 = vector.broadcast %1 : vector<1x1x16x512xf32> to vector<1x4x16x512xf32>
    %4 = vector.broadcast %2 : vector<1x4x1x512xf32> to vector<1x4x16x512xf32>
    %5 = arith.addf %3, %4 : vector<1x4x16x512xf32>
    %c0_6 = arith.constant 0 : index
    %c0_7 = arith.constant 0 : index
    %c0_8 = arith.constant 0 : index
    %c0_9 = arith.constant 0 : index
    %6 = vector.load %arg1[%c0_6, %c0_7, %c0_8, %c0_9] : memref<1x4x16x512xf32, #tpu.memory_space<vmem>>, vector<1x4x16x512xf32>
    %7 = arith.mulf %6, %5 : vector<1x4x16x512xf32>
    %c0_10 = arith.constant 0 : index
    %c0_11 = arith.constant 0 : index
    %c0_12 = arith.constant 0 : index
    %c0_13 = arith.constant 0 : index
    %8 = vector.load %arg4[%c0_10, %c0_11, %c0_12, %c0_13] : memref<1x4x16x512xf32, #tpu.memory_space<vmem>>, vector<1x4x16x512xf32>
    tpu.vector_store %arg4[%c0_10, %c0_11, %c0_12, %c0_13], %7 {strides = array<i32>} : memref<1x4x16x512xf32, #tpu.memory_space<vmem>>, vector<1x4x16x512xf32>,
    return
  }
  func.func @transform_0(%arg0: i32) -> (i32, i32, i32, i32) {
    %c0_i32 = arith.constant 0 : i32
    %c0_i32_0 = arith.constant 0 : i32
    %c0_i32_1 = arith.constant 0 : i32
    %c0_i32_2 = arith.constant 0 : i32
    return %arg0, %c0_i32, %c0_i32_0, %c0_i32_1 : i32, i32, i32, i32
  }
  func.func @transform_1(%arg0: i32) -> (i32, i32, i32) {
    %c0_i32 = arith.constant 0 : i32
    %c0_i32_0 = arith.constant 0 : i32
    %c0_i32_1 = arith.constant 0 : i32
    return %arg0, %c0_i32, %c0_i32_0 : i32, i32, i32
  }
  func.func @transform_2(%arg0: i32) -> (i32, i32, i32, i32) {
    %c0_i32 = arith.constant 0 : i32
    %c0_i32_0 = arith.constant 0 : i32
    %c0_i32_1 = arith.constant 0 : i32
    %c0_i32_2 = arith.constant 0 : i32
    return %arg0, %c0_i32, %c0_i32_0, %c0_i32_1 : i32, i32, i32, i32
  }
  func.func @transform_3(%arg0: i32) -> (i32, i32, i32, i32) {
    %c0_i32 = arith.constant 0 : i32
    %c0_i32_0 = arith.constant 0 : i32
    %c0_i32_1 = arith.constant 0 : i32
    %c0_i32_2 = arith.constant 0 : i32
    return %arg0, %c0_i32, %c0_i32_0, %c0_i32_1 : i32, i32, i32, i32
  }
}

</mosaic_0001>

<bundles_post_ra>
// kernel: mca_forward.4
= control target key start
LH: loop header
LB: loop body
LE: loop exit
PB: predicated region body
PF: predicated region fallthrough
CT: control target
= control target key end

     0   :  { %s563_s9 = smov 0   ;;  %s787_s0 = inlined_call_operand.vmem [shape: f32[8,4,16,512], index: 0, kind: input, shape index: {}]   ;;  %s788_s1 = inlined_call_operand.vmem [shape: f32[8,16,512], index: 1, kind: output, shape index: {0}]   ;;  %s789_s2 = inlined_call_operand.vmem [shape: f32[8,4,1,512], index: 2, kind: output, shape index: {1}]  }
   0x1 LB: > { %s510_s10 = sadd.s32 4294967295, %s544_s9   ;;  %p514_p0 = scmp.ge.s32.totalorder %s544_s9, 1  ;;  %s544_s9 = sphi %s563_s9, %s13_s9  }
   0x2   : > { %p115_p1 = scmp.lt.s32.totalorder %s544_s9, 9 }
   0x4   : > { %p116_p2 = pnand %p514_p0, %p115_p1 }
   0x5   : > { %p141_p3 = scmp.lt.s32.totalorder (!%p116_p2), %s510_s10, 7 }
   0x6   : > { %119 = sbr.rel (%p116_p2) target bundleno = 71 (0x47), region = 24 }
   0xb   : > { %v546_v0 = vmov 4.0   ;;  %s793_s10 = smov (!%p141_p3, %s510_s10), 7  ;;  %v547_v1 = vmov 16.0   ;;  %vm397_vm2 = vcmask 1040384   ;;  %vm399_vm3 = vcmask 1042434  }
   0xc   : > { %534 = vrcp.f32 %v546_v0  ;;  %s522_s11 = sshll.u32 %s793_s10, 8  ;;  %s523_s15 = sshll.u32 %s793_s10, 6  ;;  %vm401_vm4 = vcmask 1041408  }
   0xd   : > { %536 = vrcp.f32 %v547_v1  ;;  %s577_s14 = scalar_lea.vmem %s787_s0, %s522_s11  ;;  %s647_s18 = scalar_lea.vmem %s788_s1, %s523_s15 }
   0xe   : > { %v155_v2 = vld [vmem:[%s577_s14] sm:$0xff]  ;;  %v582_v6 = vld [vmem:[%s577_s14 + $0x8] sm:$0xff]  ;;  %v597_v15 = vld [vmem:[%s577_s14 + $0x10] sm:$0xff]  ;;  %s519_s19 = sshll.u32 %s793_s10, 4 }
   0xf   : > { %v163_v3 = vld [vmem:[%s577_s14 + $0x40] sm:$0xff]  ;;  %v585_v7 = vld [vmem:[%s577_s14 + $0x48] sm:$0xff]  ;;  %v600_v16 = vld [vmem:[%s577_s14 + $0x50] sm:$0xff]  ;;  %s744_s22 = scalar_lea.vmem %s789_s2, %s519_s19 }
  0x10   : > { %v187_v5 = vadd.f32 %v163_v3, %v155_v2  ;;  %v171_v9 = vld [vmem:[%s577_s14 + $0x80] sm:$0xff]  ;;  %v190_v12 = vadd.f32 %v585_v7, %v582_v6  ;;  %v594_v14 = vld [vmem:[%s577_s14 + $0x88] sm:$0xff]  ;;  %v193_v21 = vadd.f32 %v600_v16, %v597_v15  ;;  %v612_v22 = vld [vmem:[%s577_s14 + $0x18] sm:$0xff] }
  0x11   : > { %v179_v10 = vld [vmem:[%s577_s14 + $0xc0] sm:$0xff]  ;;  %v606_v19 = vld [vmem:[%s577_s14 + $0xc8] sm:$0xff]  ;;  %v615_v23 = vld [vmem:[%s577_s14 + $0x58] sm:$0xff] }
  0x12   : > { %v535_v4 = vpop.eup %534  ;;  %v188_v13 = vadd.f32 %v187_v5, %v171_v9  ;;  %v191_v20 = vadd.f32 %v190_v12, %v594_v14  ;;  %v618_v25 = vld [vmem:[%s577_s14 + $0x90] sm:$0xff]  ;;  %v196_v26 = vadd.f32 %v615_v23, %v612_v22  ;;  %v159_v27 = vld [vmem:[%s577_s14 + $0x20] sm:$0xff]  ;;  %v628_v33 = vld [vmem:[%s577_s14 + $0x98] sm:$0xff] }
  0x13   : > { %v587_v8 = vpop.eup %536  ;;  %v212_v11 = vmul.f32 4.0, %v535_v4  ;;  %vm216_vm0 = vweird.f32 %v535_v4  ;;  %v167_v28 = vld [vmem:[%s577_s14 + $0x60] sm:$0xff]  ;;  %v194_v32 = vadd.f32 %v193_v21, %v618_v25  ;;  %v634_v37 = vld [vmem:[%s577_s14 + $0xd0] sm:$0xff]  ;;  %v234_v39 = vadd.f32 %v159_v27, %v155_v2  ;;  %v639_v44 = vld [vmem:[%s577_s14 + $0xd8] sm:$0xff] }
  0x14   : > { %v603_v17 = vmul.f32 16.0, %v587_v8  ;;  %v189_v24 = vadd.f32 %v188_v13, %v179_v10  ;;  %v192_v31 = vadd.f32 %v191_v20, %v606_v19  ;;  %v175_v34 = vld [vmem:[%s577_s14 + $0xa0] sm:$0xff]  ;;  %v199_v36 = vadd.f32 %v167_v28, %v159_v27  ;;  %v160_v51 = vld [vmem:[%s577_s14 + $0x28] sm:$0xff] }
  0x15   : > { %v213_v18 = vsub.f32 1.0, %v212_v11  ;;  %v183_v35 = vld [vmem:[%s577_s14 + $0xe0] sm:$0xff]  ;;  %v197_v38 = vadd.f32 %v196_v26, %v628_v33  ;;  %v262_v40 = vadd.f32 %v167_v28, %v163_v3  ;;  %v290_v41 = vadd.f32 %v175_v34, %v171_v9  ;;  %v168_v52 = vld [vmem:[%s577_s14 + $0x68] sm:$0xff]  ;;  %v161_v26 = vld [vmem:[%s577_s14 + $0x30] sm:$0xff] }
  0x16   : > { %v348_v29 = vsub.f32 1.0, %v603_v17  ;;  %v195_v43 = vadd.f32 %v194_v32, %v634_v37  ;;  %v200_v45 = vadd.f32 %v199_v36, %v175_v34  ;;  %v318_v46 = vadd.f32 %v183_v35, %v179_v10  ;;  %v176_v61 = vld [vmem:[%s577_s14 + $0xa8] sm:$0xff] }
  0x17   : > { %v214_v30 = vmul.f32 %v535_v4, %v213_v18  ;;  %v198_v47 = vadd.f32 %v197_v38, %v639_v44  ;;  %v235_v48 = vrot.slane %v234_v39, 4  ;;  %v263_v49 = vrot.slane %v262_v40, 4  ;;  %v184_v3 = vld [vmem:[%s577_s14 + $0xe8] sm:$0xff] }
  0x18   : > { %v291_v50 = vrot.slane %v290_v41, 4  ;;  %v201_v54 = vadd.f32 %v200_v45, %v183_v35  ;;  %v319_v55 = vrot.slane %v318_v46, 4  ;;  %v202_v56 = vadd.f32 %v168_v52, %v160_v51  ;;  %v177_v35 = vld [vmem:[%s577_s14 + $0xb0] sm:$0xff] }
  0x19   : > { %v215_v42 = vadd.f32 %v535_v4, %v214_v30  ;;  %v658_v63 = vadd.f32 %v235_v48, %v234_v39  ;;  %v660_v0 = vadd.f32 %v263_v49, %v262_v40  ;;  %v241_v5 = vadd.f32 %v160_v51, %v582_v6  ;;  %v169_v6 = vld [vmem:[%s577_s14 + $0x70] sm:$0xff]  ;;  %v170_v51 = vld [vmem:[%s577_s14 + $0x78] sm:$0xff] }
  0x1a   : > { %v292_v1 = vadd.f32 %v291_v50, %v290_v41  ;;  %v320_v2 = vadd.f32 %v319_v55, %v318_v46  ;;  %v269_v9 = vadd.f32 %v168_v52, %v585_v7  ;;  %v297_v13 = vadd.f32 %v176_v61, %v594_v14  ;;  %v185_v39 = vld [vmem:[%s577_s14 + $0xf0] sm:$0xff]  ;;  %v162_v50 = vld [vmem:[%s577_s14 + $0x38] sm:$0xff] }
  0x1b   : > { %v650_v53 = vsel %vm216_vm0, %v535_v4, %v215_v42  ;;  %v203_v4 = vadd.f32 %v202_v56, %v176_v61  ;;  %v237_v10 = vrot.slane %v658_v63, 2  ;;  %v265_v11 = vrot.slane %v660_v0, 2 }
  0x1c   : > { %v218_v57 = vmul.f32 %v650_v53, %v189_v24  ;;  %v219_v58 = vmul.f32 %v650_v53, %v192_v31  ;;  %v220_v59 = vmul.f32 %v650_v53, %v195_v43  ;;  %v221_v60 = vmul.f32 %v650_v53, %v198_v47 }
  0x1d   : > { %v222_v62 = vmul.f32 %v650_v53, %v201_v54  ;;  %v293_v12 = vrot.slane %v292_v1, 2  ;;  %v321_v18 = vrot.slane %v320_v2, 2  ;;  %v204_v20 = vadd.f32 %v203_v4, %v184_v3 }
  0x1e   : > { %226 = vst [vmem:[%s647_s18] sm:$0xff] %v218_v57  ;;  %v242_v21 = vrot.slane %v241_v5, 4  ;;  %v270_v24 = vrot.slane %v269_v9, 4  ;;  %v298_v27 = vrot.slane %v297_v13, 4  ;;  %v325_v28 = vadd.f32 %v184_v3, %v606_v19 }
  0x1f   : > { %227 = vst [vmem:[%s647_s18 + $0x8] sm:$0xff] %v219_v58  ;;  %v674_v7 = vadd.f32 %v293_v12, %v292_v1  ;;  %v205_v30 = vadd.f32 %v169_v6, %v161_v26  ;;  %v678_v31 = vadd.f32 %v321_v18, %v320_v2  ;;  %v223_v14 = vmul.f32 %v650_v53, %v204_v20 }
  0x20   : > { %228 = vst [vmem:[%s647_s18 + $0x10] sm:$0xff] %v220_v59  ;;  %v243_v32 = vadd.f32 %v242_v21, %v241_v5  ;;  %v681_v34 = vadd.f32 %v270_v24, %v269_v9  ;;  %v299_v36 = vadd.f32 %v298_v27, %v297_v13  ;;  %v326_v38 = vrot.slane %v325_v28, 4  ;;  %v178_v59 = vld [vmem:[%s577_s14 + $0xb8] sm:$0xff] }
  0x21   : > { %229 = vst [vmem:[%s647_s18 + $0x18] sm:$0xff] %v221_v60  ;;  %v206_v40 = vadd.f32 %v205_v30, %v177_v35  ;;  %v248_v41 = vadd.f32 %v161_v26, %v597_v15  ;;  %v323_v19 = vrot.slane %v678_v31, 1  ;;  %v276_v45 = vadd.f32 %v169_v6, %v600_v16 }
  0x22   : > { %230 = vst [vmem:[%s647_s18 + $0x20] sm:$0xff] %v222_v62  ;;  %v244_v42 = vrot.slane %v243_v32, 2  ;;  %v272_v43 = vrot.slane %v681_v34, 2  ;;  %v300_v46 = vrot.slane %v299_v36, 2  ;;  %v327_v47 = vadd.f32 %v326_v38, %v325_v28 }
  0x23   : > { %231 = vst [vmem:[%s647_s18 + $0x28] sm:$0xff] %v223_v14  ;;  %v207_v48 = vadd.f32 %v206_v40, %v185_v39  ;;  %v249_v49 = vrot.slane %v248_v41, 4  ;;  %v277_v52 = vrot.slane %v276_v45, 4  ;;  %v304_v15 = vadd.f32 %v177_v35, %v618_v25  ;;  %v186_v25 = vld [vmem:[%s577_s14 + $0xf8] sm:$0xff] }
  0x24   : > { %v332_v54 = vadd.f32 %v185_v39, %v634_v37  ;;  %v208_v55 = vadd.f32 %v170_v51, %v162_v50  ;;  %v694_v56 = vadd.f32 %v300_v46, %v299_v36  ;;  %v328_v57 = vrot.slane %v327_v47, 2 }
  0x25   : > { %v224_v58 = vmul.f32 %v650_v53, %v207_v48  ;;  %v250_v16 = vadd.f32 %v249_v49, %v248_v41  ;;  %v698_v60 = vadd.f32 %v277_v52, %v276_v45  ;;  %v305_v61 = vrot.slane %v304_v15, 4 }
  0x26   : > { %v333_v62 = vrot.slane %v332_v54, 4  ;;  %v209_v1 = vadd.f32 %v208_v55, %v178_v59  ;;  %v700_v2 = vadd.f32 %v328_v57, %v327_v47  ;;  %v255_v37 = vadd.f32 %v162_v50, %v612_v22 }
  0x27   : > { %232 = vst [vmem:[%s647_s18 + $0x30] sm:$0xff] %v224_v58  ;;  %v251_v3 = vrot.slane %v250_v16, 2  ;;  %v283_v4 = vadd.f32 %v170_v51, %v615_v23  ;;  %v279_v5 = vrot.slane %v698_v60, 2  ;;  %v306_v9 = vadd.f32 %v305_v61, %v304_v15 }
  0x28   : > { %v334_v12 = vadd.f32 %v333_v62, %v332_v54  ;;  %v210_v13 = vadd.f32 %v209_v1, %v186_v25  ;;  %vm351_vm1 = vweird.f32 %v587_v8  ;;  %v330_v18 = vrot.slane %v700_v2, 1 }
  0x29   : > { %v256_v20 = vrot.slane %v255_v37, 4  ;;  %v284_v21 = vrot.slane %v283_v4, 4  ;;  %v311_v24 = vadd.f32 %v178_v59, %v628_v33  ;;  %v307_v26 = vrot.slane %v306_v9, 2 }
  0x2a   : > { %v335_v6 = vrot.slane %v334_v12, 2  ;;  %v225_v22 = vmul.f32 %v650_v53, %v210_v13  ;;  %v339_v23 = vadd.f32 %v186_v25, %v639_v44  ;;  %v238_v14 = vadd.f32 %v237_v10, %v658_v63 }
  0x2b   : > { %v257_v27 = vadd.f32 %v256_v20, %v255_v37  ;;  %v285_v28 = vadd.f32 %v284_v21, %v283_v4  ;;  %v312_v30 = vrot.slane %v311_v24, 4  ;;  %v715_v35 = vadd.f32 %v307_v26, %v306_v9 }
  0x2c   : > { %v717_v36 = vadd.f32 %v335_v6, %v334_v12  ;;  %233 = vst [vmem:[%s647_s18 + $0x38] sm:$0xff] %v225_v22  ;;  %v340_v38 = vrot.slane %v339_v23, 4  ;;  %v245_v33 = vadd.f32 %v244_v42, %v243_v32  ;;  %v239_v53 = vrot.slane %v238_v14, 1 }
  0x2d   : > { %v258_v39 = vrot.slane %v257_v27, 2  ;;  %v286_v40 = vrot.slane %v285_v28, 2  ;;  %v313_v41 = vadd.f32 %v312_v30, %v311_v24  ;;  %v252_v47 = vadd.f32 %v251_v3, %v250_v16 }
  0x2e   : > { %v337_v44 = vrot.slane %v717_v36, 1  ;;  %v341_v45 = vadd.f32 %v340_v38, %v339_v23  ;;  %v246_v46 = vrot.slane %v245_v33, 1  ;;  %v240_v49 = vadd.f32 %v239_v53, %v238_v14 }
  0x2f   : > { %v314_v48 = vrot.slane %v313_v41, 2  ;;  %v259_v50 = vadd.f32 %v258_v39, %v257_v27  ;;  %v349_v63 = vmul.f32 %v587_v8, %v348_v29  ;;  %v253_v52 = vrot.slane %v252_v47, 1 }
  0x30   : > { %v342_v10 = vrot.slane %v341_v45, 2  ;;  %v247_v51 = vadd.f32 %v246_v46, %v245_v33  ;;  %v416_v57 = vlaneseq  ;;  %v266_v29 = vadd.f32 %v265_v11, %v660_v0 }
  0x31   : > { %v315_v32 = vadd.f32 %v314_v48, %v313_v41  ;;  %v260_v42 = vrot.slane %v259_v50, 1  ;;  %v350_v15 = vadd.f32 %v587_v8, %v349_v63  ;;  %v254_v55 = vadd.f32 %v253_v52, %v252_v47 }
  0x32   : > { %v343_v54 = vadd.f32 %v342_v10, %v341_v45  ;;  %v273_v16 = vadd.f32 %v272_v43, %v681_v34  ;;  %vm735_vm5 = vcmp.lt.s32.totalorder %v416_v57, 512  ;;  %v267_v37 = vrot.slane %v266_v29, 1 }
  0x33   : > { %v261_v58 = vadd.f32 %v260_v42, %v259_v50  ;;  %v352_v17 = vsel %vm351_vm1, %v587_v8, %v350_v15  ;;  %v280_v0 = vadd.f32 %v279_v5, %v698_v60  ;;  %v287_v11 = vadd.f32 %v286_v40, %v285_v28 }
  0x34   : > { %v344_v59 = vrot.slane %v343_v54, 1  ;;  %v353_v61 = vmul.f32 %v352_v17, %v240_v49  ;;  %v354_v62 = vmul.f32 %v352_v17, %v247_v51  ;;  %v355_v1 = vmul.f32 %v352_v17, %v254_v55 }
  0x35   : > { %v356_v3 = vmul.f32 %v352_v17, %v261_v58  ;;  %v274_v8 = vrot.slane %v273_v16, 1  ;;  %v268_v13 = vadd.f32 %v267_v37, %v266_v29  ;;  %v295_v43 = vrot.slane %v674_v7, 1 }
  0x36   : > { %v385_v4 = vrot.slane %v354_v62, 7  ;;  %v386_v9 = vrot.slane %v355_v1, 6  ;;  %v281_v21 = vrot.slane %v280_v0, 1  ;;  %v288_v24 = vrot.slane %v287_v11, 1 }
  0x37   : > { %v387_v12 = vrot.slane %v356_v3, 5  ;;  %v275_v34 = vadd.f32 %v274_v8, %v273_v16  ;;  %v302_v26 = vrot.slane %v694_v56, 1  ;;  %v357_v5 = vmul.f32 %v352_v17, %v268_v13 }
  0x38   : > { %v398_v20 = vsel %vm397_vm2, %v353_v61, %v385_v4  ;;  %v296_v22 = vadd.f32 %v295_v43, %v674_v7  ;;  %v282_v27 = vadd.f32 %v281_v21, %v280_v0  ;;  %v289_v28 = vadd.f32 %v288_v24, %v287_v11 }
  0x39   : > { %v400_v60 = vsel %vm399_vm3, %v386_v9, %v387_v12  ;;  %v358_v6 = vmul.f32 %v352_v17, %v275_v34  ;;  %v303_v30 = vadd.f32 %v302_v26, %v694_v56  ;;  %v309_v38 = vrot.slane %v715_v35, 1 }
  0x3a   : > { %v402_v23 = vsel %vm401_vm4, %v398_v20, %v400_v60  ;;  %v316_v33 = vrot.slane %v315_v32, 1  ;;  %v361_v39 = vmul.f32 %v352_v17, %v296_v22  ;;  %v359_v40 = vmul.f32 %v352_v17, %v282_v27 }
  0x3b   : > { %420 = vst.msk [vmem:[%s744_s22] sm:$0xf] %vm735_vm5, %v402_v23  ;;  %v388_v14 = vrot.slane %v358_v6, 7  ;;  %v360_v41 = vmul.f32 %v352_v17, %v289_v28  ;;  %v362_v53 = vmul.f32 %v352_v17, %v303_v30  ;;  %v324_v7 = vadd.f32 %v323_v19, %v678_v31 }
  0x3c   : > { %v310_v46 = vadd.f32 %v309_v38, %v715_v35  ;;  %v317_v56 = vadd.f32 %v316_v33, %v315_v32  ;;  %v331_v47 = vadd.f32 %v330_v18, %v700_v2  ;;  %v389_v48 = vrot.slane %v359_v40, 6 }
  0x3d   : > { %v403_v45 = vsel %vm397_vm2, %v357_v5, %v388_v14  ;;  %v390_v49 = vrot.slane %v360_v41, 5  ;;  %v391_v50 = vrot.slane %v362_v53, 7  ;;  %v338_v63 = vadd.f32 %v337_v44, %v717_v36 }
  0x3e   : > { %v363_v10 = vmul.f32 %v352_v17, %v310_v46  ;;  %v364_v51 = vmul.f32 %v352_v17, %v317_v56  ;;  %v345_v31 = vadd.f32 %v344_v59, %v343_v54  ;;  %v365_v19 = vmul.f32 %v352_v17, %v324_v7 }
  0x3f   : > { %v404_v35 = vsel %vm399_vm3, %v389_v48, %v390_v49  ;;  %v406_v52 = vsel %vm397_vm2, %v361_v39, %v391_v50  ;;  %v366_v32 = vmul.f32 %v352_v17, %v331_v47  ;;  %v367_v2 = vmul.f32 %v352_v17, %v338_v63 }
  0x40   : > { %v405_v18 = vsel %vm401_vm4, %v403_v45, %v404_v35  ;;  %v392_v42 = vrot.slane %v363_v10, 6  ;;  %v393_v15 = vrot.slane %v364_v51, 5  ;;  %v368_v55 = vmul.f32 %v352_v17, %v345_v31 }
  0x41   : > { %421 = vst.msk [vmem:[%s744_s22 + $0x4] sm:$0xf] %vm735_vm5, %v405_v18  ;;  %v394_v36 = vrot.slane %v366_v32, 7  ;;  %v395_v44 = vrot.slane %v367_v2, 6 }
  0x42   : > { %v407_v54 = vsel %vm399_vm3, %v392_v42, %v393_v15  ;;  %v396_v57 = vrot.slane %v368_v55, 5 }
  0x43   : > { %v408_v58 = vsel %vm401_vm4, %v406_v52, %v407_v54  ;;  %v409_v29 = vsel %vm397_vm2, %v365_v19, %v394_v36 }
  0x44   : > { %422 = vst.msk [vmem:[%s744_s22 + $0x8] sm:$0xf] %vm735_vm5, %v408_v58  ;;  %v410_v16 = vsel %vm399_vm3, %v395_v44, %v396_v57 }
  0x45   : > { %v411_v59 = vsel %vm401_vm4, %v409_v29, %v410_v16 }
  0x46   : > { %423 = vst.msk [vmem:[%s744_s22 + $0xc] sm:$0xf] %vm735_vm5, %v411_v59 }
  0x47 PF: > { %s13_s9 = sadd.s32 1, %s544_s9  }
  0x48   : > { %p10_p4 = scmp.ge.s32.totalorder %s13_s9, 10  }
  0x4a   :  { %12 = sbr.rel (!%p10_p4) target bundleno = 1 (0x1), region = 66 }

// kernel: mca_forward.7
= control target key start
LH: loop header
LB: loop body
LE: loop exit
PB: predicated region body
PF: predicated region fallthrough
CT: control target
= control target key end

     0   :  { %s516_s12 = smov 0   ;;  %s672_s0 = inlined_call_operand.vmem [shape: f32[8,4,16,512], index: 0, kind: input, shape index: {}]   ;;  %s673_s1 = inlined_call_operand.vmem [shape: f32[8,16,512], index: 1, kind: input, shape index: {}]   ;;  %s674_s2 = inlined_call_operand.vmem [shape: f32[8,4,1,512], index: 2, kind: input, shape index: {}]   ;;  %s675_s3 = inlined_call_operand.vmem [shape: f32[8,4,16,512], index: 3, kind: output, shape index: {}]  }
   0x1 LB: > { %s463_s13 = sadd.s32 4294967295, %s494_s12   ;;  %p467_p0 = scmp.ge.s32.totalorder %s494_s12, 1  ;;  %s494_s12 = sphi %s516_s12, %s13_s12  }
   0x2   : > { %p156_p1 = scmp.lt.s32.totalorder %s494_s12, 9 }
   0x4   : > { %p157_p2 = pnand %p467_p0, %p156_p1 }
   0x5   : > { %p189_p3 = scmp.lt.s32.totalorder (!%p157_p2), %s463_s13, 7 }
   0x6   : > { %160 = sbr.rel (%p157_p2) target bundleno = 55 (0x37), region = 32 }
   0xb   : > { %s677_s13 = smov (!%p189_p3, %s463_s13), 7 }
   0xc   : > { %s477_s14 = sshll.u32 %s677_s13, 8  ;;  %s478_s15 = sshll.u32 %s677_s13, 6 }
   0xd   : > { %s531_s18 = scalar_lea.vmem %s672_s0, %s477_s14  ;;  %s198_s21 = scalar_lea.vmem %s673_s1, %s478_s15 }
   0xe   : > { %s472_s22 = sshll.u32 %s677_s13, 4  ;;  %v542_v0 = vld [vmem:[%s198_s21] sm:$0xff]  ;;  %v544_v1 = vld [vmem:[%s198_s21 + $0x8] sm:$0xff]  ;;  %v548_v4 = vld [vmem:[%s198_s21 + $0x10] sm:$0xff]  ;;  %s571_s28 = scalar_lea.vmem %s675_s3, %s477_s14 }
   0xf   : > { %s540_s25 = scalar_lea.vmem %s674_s2, %s472_s22  ;;  %v288_v3 = vld [vmem:[%s531_s18] sm:$0xff]  ;;  %v550_v5 = vld [vmem:[%s198_s21 + $0x18] sm:$0xff]  ;;  %v289_v8 = vld [vmem:[%s531_s18 + $0x8] sm:$0xff] }
  0x10   : > { %v216_v2 = vld [vmem:[%s540_s25] sm:$0xf]  ;;  %v290_v12 = vld [vmem:[%s531_s18 + $0x10] sm:$0xff]  ;;  %v556_v13 = vld [vmem:[%s198_s21 + $0x28] sm:$0xff] }
  0x11   : > { %v224_v6 = vperm.slane %v216_v2, 0  ;;  %v225_v7 = vperm.slane %v216_v2, 1  ;;  %v226_v9 = vperm.slane %v216_v2, 2  ;;  %v227_v10 = vperm.slane %v216_v2, 3  ;;  %v553_v11 = vld [vmem:[%s198_s21 + $0x20] sm:$0xff]  ;;  %v558_v14 = vld [vmem:[%s198_s21 + $0x30] sm:$0xff] }
  0x12   : > { %v291_v19 = vld [vmem:[%s531_s18 + $0x18] sm:$0xff]  ;;  %v292_v20 = vld [vmem:[%s531_s18 + $0x20] sm:$0xff]  ;;  %v293_v28 = vld [vmem:[%s531_s18 + $0x28] sm:$0xff] }
  0x13   : > { %v256_v15 = vadd.f32 %v224_v6, %v542_v0  ;;  %v257_v16 = vadd.f32 %v225_v7, %v544_v1  ;;  %v258_v17 = vadd.f32 %v226_v9, %v548_v4  ;;  %v259_v18 = vadd.f32 %v227_v10, %v550_v5  ;;  %v566_v21 = vld [vmem:[%s198_s21 + $0x38] sm:$0xff]  ;;  %v217_v24 = vld [vmem:[%s540_s25 + $0x4] sm:$0xf]  ;;  %v294_v32 = vld [vmem:[%s531_s18 + $0x30] sm:$0xff] }
  0x14   : > { %v260_v22 = vadd.f32 %v224_v6, %v553_v11  ;;  %v261_v23 = vadd.f32 %v225_v7, %v556_v13  ;;  %v262_v29 = vadd.f32 %v226_v9, %v558_v14  ;;  %v263_v33 = vadd.f32 %v227_v10, %v566_v21  ;;  %v295_v34 = vld [vmem:[%s531_s18 + $0x38] sm:$0xff]  ;;  %v296_v40 = vld [vmem:[%s531_s18 + $0x40] sm:$0xff]  ;;  %v585_v41 = vld [vmem:[%s540_s25 + $0x8] sm:$0xf] }
  0x15   : > { %v320_v25 = vmul.f32 %v288_v3, %v256_v15  ;;  %v321_v26 = vmul.f32 %v289_v8, %v257_v16  ;;  %v322_v27 = vmul.f32 %v290_v12, %v258_v17  ;;  %v323_v30 = vmul.f32 %v291_v19, %v259_v18  ;;  %v297_v45 = vld [vmem:[%s531_s18 + $0x48] sm:$0xff]  ;;  %v298_v48 = vld [vmem:[%s531_s18 + $0x50] sm:$0xff]  ;;  %v299_v51 = vld [vmem:[%s531_s18 + $0x58] sm:$0xff] }
  0x16   : > { %v324_v31 = vmul.f32 %v292_v20, %v260_v22  ;;  %v228_v35 = vperm.slane %v217_v24, 0  ;;  %v229_v36 = vperm.slane %v217_v24, 1  ;;  %v230_v37 = vperm.slane %v217_v24, 2  ;;  %v300_v55 = vld [vmem:[%s531_s18 + $0x60] sm:$0xff]  ;;  %v301_v59 = vld [vmem:[%s531_s18 + $0x68] sm:$0xff]  ;;  %v302_v63 = vld [vmem:[%s531_s18 + $0x70] sm:$0xff] }
  0x17   : > { %352 = vst [vmem:[%s571_s28] sm:$0xff] %v320_v25  ;;  %v231_v38 = vperm.slane %v217_v24, 3  ;;  %v325_v39 = vmul.f32 %v293_v28, %v261_v23  ;;  %v326_v42 = vmul.f32 %v294_v32, %v262_v29  ;;  %v327_v47 = vmul.f32 %v295_v34, %v263_v33  ;;  %v303_v7 = vld [vmem:[%s531_s18 + $0x78] sm:$0xff]  ;;  %v304_v10 = vld [vmem:[%s531_s18 + $0x80] sm:$0xff]  ;;  %v219_v15 = vld [vmem:[%s540_s25 + $0xc] sm:$0xf] }
  0x18   : > { %353 = vst [vmem:[%s571_s28 + $0x8] sm:$0xff] %v321_v26  ;;  %v264_v43 = vadd.f32 %v228_v35, %v542_v0  ;;  %v265_v44 = vadd.f32 %v229_v36, %v544_v1  ;;  %v266_v46 = vadd.f32 %v230_v37, %v548_v4  ;;  %v268_v52 = vadd.f32 %v228_v35, %v553_v11  ;;  %v305_v17 = vld [vmem:[%s531_s18 + $0x88] sm:$0xff]  ;;  %v306_v20 = vld [vmem:[%s531_s18 + $0x90] sm:$0xff]  ;;  %v307_v24 = vld [vmem:[%s531_s18 + $0x98] sm:$0xff] }
  0x19   : > { %354 = vst [vmem:[%s571_s28 + $0x10] sm:$0xff] %v322_v27  ;;  %v267_v49 = vadd.f32 %v231_v38, %v550_v5  ;;  %v232_v53 = vperm.slane %v585_v41, 0  ;;  %v269_v56 = vadd.f32 %v229_v36, %v556_v13  ;;  %v233_v57 = vperm.slane %v585_v41, 1  ;;  %v308_v28 = vld [vmem:[%s531_s18 + $0xa0] sm:$0xff]  ;;  %v309_v32 = vld [vmem:[%s531_s18 + $0xa8] sm:$0xff]  ;;  %v310_v36 = vld [vmem:[%s531_s18 + $0xb0] sm:$0xff] }
  0x1a   : > { %355 = vst [vmem:[%s571_s28 + $0x18] sm:$0xff] %v323_v30  ;;  %v328_v50 = vmul.f32 %v296_v40, %v264_v43  ;;  %v329_v54 = vmul.f32 %v297_v45, %v265_v44  ;;  %v330_v58 = vmul.f32 %v298_v48, %v266_v46  ;;  %v270_v60 = vadd.f32 %v230_v37, %v558_v14  ;;  %v311_v40 = vld [vmem:[%s531_s18 + $0xb8] sm:$0xff]  ;;  %v312_v43 = vld [vmem:[%s531_s18 + $0xc0] sm:$0xff]  ;;  %v313_v46 = vld [vmem:[%s531_s18 + $0xc8] sm:$0xff] }
  0x1b   : > { %356 = vst [vmem:[%s571_s28 + $0x20] sm:$0xff] %v324_v31  ;;  %v234_v61 = vperm.slane %v585_v41, 2  ;;  %v331_v62 = vmul.f32 %v299_v51, %v267_v49  ;;  %v271_v2 = vadd.f32 %v231_v38, %v566_v21  ;;  %v235_v3 = vperm.slane %v585_v41, 3  ;;  %v314_v49 = vld [vmem:[%s531_s18 + $0xd0] sm:$0xff]  ;;  %v315_v51 = vld [vmem:[%s531_s18 + $0xd8] sm:$0xff] }
  0x1c   : > { %357 = vst [vmem:[%s571_s28 + $0x28] sm:$0xff] %v325_v39  ;;  %v332_v6 = vmul.f32 %v300_v55, %v268_v52  ;;  %v272_v8 = vadd.f32 %v232_v53, %v542_v0  ;;  %v333_v9 = vmul.f32 %v301_v59, %v269_v56  ;;  %v273_v12 = vadd.f32 %v233_v57, %v544_v1  ;;  %v317_v55 = vld [vmem:[%s531_s18 + $0xe8] sm:$0xff]  ;;  %v319_v59 = vld [vmem:[%s531_s18 + $0xf8] sm:$0xff] }
  0x1d   : > { %358 = vst [vmem:[%s571_s28 + $0x30] sm:$0xff] %v326_v42  ;;  %v334_v16 = vmul.f32 %v302_v63, %v270_v60  ;;  %v274_v18 = vadd.f32 %v234_v61, %v548_v4  ;;  %v335_v19 = vmul.f32 %v303_v7, %v271_v2  ;;  %v275_v22 = vadd.f32 %v235_v3, %v550_v5 }
  0x1e   : > { %359 = vst [vmem:[%s571_s28 + $0x38] sm:$0xff] %v327_v47  ;;  %v336_v23 = vmul.f32 %v304_v10, %v272_v8  ;;  %v276_v25 = vadd.f32 %v232_v53, %v553_v11  ;;  %v236_v26 = vperm.slane %v219_v15, 0  ;;  %v337_v27 = vmul.f32 %v305_v17, %v273_v12  ;;  %v316_v53 = vld [vmem:[%s531_s18 + $0xe0] sm:$0xff] }
  0x1f   : > { %360 = vst [vmem:[%s571_s28 + $0x40] sm:$0xff] %v328_v50  ;;  %v277_v29 = vadd.f32 %v233_v57, %v556_v13  ;;  %v237_v30 = vperm.slane %v219_v15, 1  ;;  %v338_v31 = vmul.f32 %v306_v20, %v274_v18  ;;  %v278_v33 = vadd.f32 %v234_v61, %v558_v14 }
  0x20   : > { %361 = vst [vmem:[%s571_s28 + $0x48] sm:$0xff] %v329_v54  ;;  %v238_v34 = vperm.slane %v219_v15, 2  ;;  %v339_v35 = vmul.f32 %v307_v24, %v275_v22  ;;  %v279_v37 = vadd.f32 %v235_v3, %v566_v21  ;;  %v239_v38 = vperm.slane %v219_v15, 3 }
  0x21   : > { %362 = vst [vmem:[%s571_s28 + $0x50] sm:$0xff] %v330_v58  ;;  %v340_v39 = vmul.f32 %v308_v28, %v276_v25  ;;  %v280_v41 = vadd.f32 %v236_v26, %v542_v0  ;;  %v341_v42 = vmul.f32 %v309_v32, %v277_v29  ;;  %v281_v44 = vadd.f32 %v237_v30, %v544_v1 }
  0x22   : > { %363 = vst [vmem:[%s571_s28 + $0x58] sm:$0xff] %v331_v62  ;;  %v342_v45 = vmul.f32 %v310_v36, %v278_v33  ;;  %v282_v47 = vadd.f32 %v238_v34, %v548_v4  ;;  %v343_v48 = vmul.f32 %v311_v40, %v279_v37  ;;  %v283_v0 = vadd.f32 %v239_v38, %v550_v5 }
  0x23   : > { %364 = vst [vmem:[%s571_s28 + $0x60] sm:$0xff] %v332_v6  ;;  %v344_v50 = vmul.f32 %v312_v43, %v280_v41  ;;  %v284_v1 = vadd.f32 %v236_v26, %v553_v11  ;;  %v345_v52 = vmul.f32 %v313_v46, %v281_v44  ;;  %v285_v4 = vadd.f32 %v237_v30, %v556_v13  ;;  %v318_v11 = vld [vmem:[%s531_s18 + $0xf0] sm:$0xff] }
  0x24   : > { %365 = vst [vmem:[%s571_s28 + $0x68] sm:$0xff] %v333_v9  ;;  %v346_v54 = vmul.f32 %v314_v49, %v282_v47  ;;  %v286_v5 = vadd.f32 %v238_v34, %v558_v14  ;;  %v347_v56 = vmul.f32 %v315_v51, %v283_v0  ;;  %v287_v57 = vadd.f32 %v239_v38, %v566_v21 }
  0x25   : > { %366 = vst [vmem:[%s571_s28 + $0x70] sm:$0xff] %v334_v16  ;;  %v348_v58 = vmul.f32 %v316_v53, %v284_v1  ;;  %v349_v13 = vmul.f32 %v317_v55, %v285_v4 }
  0x26   : > { %367 = vst [vmem:[%s571_s28 + $0x78] sm:$0xff] %v335_v19  ;;  %v350_v60 = vmul.f32 %v318_v11, %v286_v5  ;;  %v351_v61 = vmul.f32 %v319_v59, %v287_v57 }
  0x27   : > { %368 = vst [vmem:[%s571_s28 + $0x80] sm:$0xff] %v336_v23 }
  0x28   : > { %369 = vst [vmem:[%s571_s28 + $0x88] sm:$0xff] %v337_v27 }
  0x29   : > { %370 = vst [vmem:[%s571_s28 + $0x90] sm:$0xff] %v338_v31 }
  0x2a   : > { %371 = vst [vmem:[%s571_s28 + $0x98] sm:$0xff] %v339_v35 }
  0x2b   : > { %372 = vst [vmem:[%s571_s28 + $0xa0] sm:$0xff] %v340_v39 }
  0x2c   : > { %373 = vst [vmem:[%s571_s28 + $0xa8] sm:$0xff] %v341_v42 }
  0x2d   : > { %374 = vst [vmem:[%s571_s28 + $0xb0] sm:$0xff] %v342_v45 }
  0x2e   : > { %375 = vst [vmem:[%s571_s28 + $0xb8] sm:$0xff] %v343_v48 }
  0x2f   : > { %376 = vst [vmem:[%s571_s28 + $0xc0] sm:$0xff] %v344_v50 }
  0x30   : > { %377 = vst [vmem:[%s571_s28 + $0xc8] sm:$0xff] %v345_v52 }
  0x31   : > { %378 = vst [vmem:[%s571_s28 + $0xd0] sm:$0xff] %v346_v54 }
  0x32   : > { %379 = vst [vmem:[%s571_s28 + $0xd8] sm:$0xff] %v347_v56 }
  0x33   : > { %380 = vst [vmem:[%s571_s28 + $0xe0] sm:$0xff] %v348_v58 }
  0x34   : > { %381 = vst [vmem:[%s571_s28 + $0xe8] sm:$0xff] %v349_v13 }
  0x35   : > { %382 = vst [vmem:[%s571_s28 + $0xf0] sm:$0xff] %v350_v60 }
  0x36   : > { %383 = vst [vmem:[%s571_s28 + $0xf8] sm:$0xff] %v351_v61 }
  0x37 PF: > { %s13_s12 = sadd.s32 1, %s494_s12  }
  0x38   : > { %p10_p4 = scmp.ge.s32.totalorder %s13_s12, 10  }
  0x3a   :  { %12 = sbr.rel (!%p10_p4) target bundleno = 1 (0x1), region = 68 }

// kernel: mca_forward.5
= control target key start
LH: loop header
LB: loop body
LE: loop exit
PB: predicated region body
PF: predicated region fallthrough
CT: control target
= control target key end

     0   :  { %s2758_s18 = smov 0   ;;  %s5164_s0 = inlined_call_operand.vmem [shape: f32[1024,32], index: 0, kind: input, shape index: {}]   ;;  %s5165_s1 = inlined_call_operand.vmem [shape: f32[32,32], index: 1, kind: input, shape index: {}]   ;;  %s5166_s2 = inlined_call_operand.vmem [shape: f32[1,32], index: 2, kind: input, shape index: {}]   ;;  %s5167_s3 = inlined_call_operand.vmem [shape: f32[32,32], index: 3, kind: input, shape index: {}]   ;;  %s5168_s4 = inlined_call_operand.vmem [shape: f32[1,32], index: 4, kind: input, shape index: {}]   ;;  %s5169_s5 = inlined_call_operand.vmem [shape: f32[1024,32], index: 5, kind: output, shape index: {}]  }
   0x1 LB: > { %s2308_s19 = sadd.s32 4294967295, %s2726_s18   ;;  %p2312_p0 = scmp.ge.s32.totalorder %s2726_s18, 1  ;;  %s2726_s18 = sphi %s2758_s18, %s15_s18  }
   0x2   : > { %p188_p1 = scmp.lt.s32.totalorder %s2726_s18, 3 }
   0x4   : > { %p189_p2 = pnand %p2312_p0, %p188_p1 }
   0x5   : > { %s2313_s26 = sshll.u32 (!%p189_p2), %s2308_s19, 6 }
   0x6   : > { %192 = sbr.rel (%p189_p2) target bundleno = 626 (0x272), region = 40  ;;  %p217_p3 = scmp.lt.s32.totalorder (!%p189_p2), %s2313_s26, 127 }
   0xb   : > { %v327_v0 = vld [vmem:[%s5165_s1 + $0x10] sm:$0xff]  ;;  %v328_v1 = vld [vmem:[%s5165_s1 + $0x18] sm:$0xff]  ;;  %v325_v2 = vld [vmem:[%s5165_s1] sm:$0xff]  ;;  %s5359_s26 = smov (!%p217_p3, %s2313_s26), 127  ;;  %vm335_vm0 = vcmask 261120  }
   0xc   : > { %v330_v3 = vpack.c.bf16 %v328_v1, %v327_v0  ;;  %v326_v4 = vld [vmem:[%s5165_s1 + $0x8] sm:$0xff]  ;;  %s2314_s29 = sshll.u32 %s5359_s26, 3  ;;  %v2841_v56 = vld [vmem:[%s5166_s2] ss:$0 sm:$0xff] }
   0xd   : > { %v329_v5 = vpack.c.bf16 %v326_v4, %v325_v2  ;;  %s2786_s7 = scalar_lea.vmem %s5164_s0, %s2314_s29  ;;  %v1915_v4 = vld [vmem:[%s5167_s3 + $0x10] sm:$0xff]  ;;  %s4107_s25 = scalar_lea.vmem %s5169_s5, %s2314_s29 }
   0xe   : > { %438 = vmatpush.bf16.msra.mxu0 %v330_v3  ;;  %2447 = vmatpush.bf16.msra.mxu2 %v330_v3  ;;  %v229_v6 = vld [vmem:[%s2786_s7] sm:$0xff]  ;;  %v230_v7 = vld [vmem:[%s2786_s7 + $0x8] sm:$0xff]  ;;  %v231_v12 = vld [vmem:[%s2786_s7 + $0x10] sm:$0xff] }
   0xf   : > { %v261_v8 = vld [vmem:[%s2786_s7 + $0x100] sm:$0xff]  ;;  %v293_v9 = vpack.c.bf16 %v230_v7, %v229_v6  ;;  %v262_v10 = vld [vmem:[%s2786_s7 + $0x108] sm:$0xff]  ;;  %v232_v13 = vld [vmem:[%s2786_s7 + $0x18] sm:$0xff] }
  0x10   : > { %v309_v11 = vpack.c.bf16 %v262_v10, %v261_v8  ;;  %v263_v14 = vld [vmem:[%s2786_s7 + $0x110] sm:$0xff]  ;;  %v264_v15 = vld [vmem:[%s2786_s7 + $0x118] sm:$0xff]  ;;  %v294_v16 = vpack.c.bf16 %v232_v13, %v231_v12  ;;  %v233_v18 = vld [vmem:[%s2786_s7 + $0x20] sm:$0xff] }
  0x11   : > { %v310_v17 = vpack.c.bf16 %v264_v15, %v263_v14  ;;  %v234_v19 = vld [vmem:[%s2786_s7 + $0x28] sm:$0xff]  ;;  %v265_v20 = vld [vmem:[%s2786_s7 + $0x120] sm:$0xff]  ;;  %v235_v24 = vld [vmem:[%s2786_s7 + $0x30] sm:$0xff] }
  0x12   : > { %439 = vmatpush.bf16.msra.mxu0 %v329_v5  ;;  %2448 = vmatpush.bf16.msra.mxu2 %v329_v5  ;;  %v266_v21 = vld [vmem:[%s2786_s7 + $0x128] sm:$0xff]  ;;  %v295_v22 = vpack.c.bf16 %v234_v19, %v233_v18  ;;  %v236_v25 = vld [vmem:[%s2786_s7 + $0x38] sm:$0xff]  ;;  %v267_v26 = vld [vmem:[%s2786_s7 + $0x130] sm:$0xff] }
  0x13   : > { %v311_v23 = vpack.c.bf16 %v266_v21, %v265_v20  ;;  %v268_v27 = vld [vmem:[%s2786_s7 + $0x138] sm:$0xff]  ;;  %v296_v28 = vpack.c.bf16 %v236_v25, %v235_v24  ;;  %v237_v30 = vld [vmem:[%s2786_s7 + $0x40] sm:$0xff]  ;;  %v238_v31 = vld [vmem:[%s2786_s7 + $0x48] sm:$0xff] }
  0x14   : > { %v312_v29 = vpack.c.bf16 %v268_v27, %v267_v26  ;;  %v269_v32 = vld [vmem:[%s2786_s7 + $0x140] sm:$0xff]  ;;  %v270_v33 = vld [vmem:[%s2786_s7 + $0x148] sm:$0xff]  ;;  %v297_v34 = vpack.c.bf16 %v238_v31, %v237_v30  ;;  %v239_v36 = vld [vmem:[%s2786_s7 + $0x50] sm:$0xff] }
  0x15   : > { %2317 = vmatmul.msk.bf16.vlgmr.msra.gmra.mxu0 %vm335_vm0, %v293_v9  ;;  %2333 = vmatmul.msk.bf16.vlgmr.msra.gmra.mxu2 %vm335_vm0, %v309_v11  ;;  %v313_v35 = vpack.c.bf16 %v270_v33, %v269_v32  ;;  %v240_v37 = vld [vmem:[%s2786_s7 + $0x58] sm:$0xff]  ;;  %v271_v38 = vld [vmem:[%s2786_s7 + $0x150] sm:$0xff]  ;;  %v241_v42 = vld [vmem:[%s2786_s7 + $0x60] sm:$0xff] }
  0x16   : > { %v272_v39 = vld [vmem:[%s2786_s7 + $0x158] sm:$0xff]  ;;  %v298_v40 = vpack.c.bf16 %v240_v37, %v239_v36  ;;  %v242_v43 = vld [vmem:[%s2786_s7 + $0x68] sm:$0xff]  ;;  %v273_v44 = vld [vmem:[%s2786_s7 + $0x160] sm:$0xff] }
  0x17   : > { %v314_v41 = vpack.c.bf16 %v272_v39, %v271_v38  ;;  %v274_v45 = vld [vmem:[%s2786_s7 + $0x168] sm:$0xff]  ;;  %v299_v46 = vpack.c.bf16 %v242_v43, %v241_v42  ;;  %v243_v48 = vld [vmem:[%s2786_s7 + $0x70] sm:$0xff]  ;;  %v244_v49 = vld [vmem:[%s2786_s7 + $0x78] sm:$0xff] }
  0x18   : > { %v315_v47 = vpack.c.bf16 %v274_v45, %v273_v44  ;;  %v275_v50 = vld [vmem:[%s2786_s7 + $0x170] sm:$0xff]  ;;  %v276_v51 = vld [vmem:[%s2786_s7 + $0x178] sm:$0xff]  ;;  %v300_v52 = vpack.c.bf16 %v244_v49, %v243_v48  ;;  %v245_v54 = vld [vmem:[%s2786_s7 + $0x80] sm:$0xff] }
  0x19   : > { %v316_v53 = vpack.c.bf16 %v276_v51, %v275_v50  ;;  %v246_v55 = vld [vmem:[%s2786_s7 + $0x88] sm:$0xff]  ;;  %v277_v57 = vld [vmem:[%s2786_s7 + $0x180] sm:$0xff]  ;;  %v1916_v5 = vld [vmem:[%s5167_s3 + $0x18] sm:$0xff] }
  0x1a   : > { %v278_v58 = vld [vmem:[%s2786_s7 + $0x188] sm:$0xff]  ;;  %v301_v59 = vpack.c.bf16 %v246_v55, %v245_v54  ;;  %v1918_v7 = vpack.c.bf16 %v1916_v5, %v1915_v4  ;;  %v247_v11 = vld [vmem:[%s2786_s7 + $0x90] sm:$0xff]  ;;  %v248_v12 = vld [vmem:[%s2786_s7 + $0x98] sm:$0xff] }
  0x1b   : > { %v317_v61 = vpack.c.bf16 %v278_v58, %v277_v57  ;;  %v279_v13 = vld [vmem:[%s2786_s7 + $0x190] sm:$0xff]  ;;  %v280_v14 = vld [vmem:[%s2786_s7 + $0x198] sm:$0xff]  ;;  %v1913_v15 = vld [vmem:[%s5167_s3] sm:$0xff]  ;;  %v302_v18 = vpack.c.bf16 %v248_v12, %v247_v11 }
  0x1c   : > { %2025 = vmatpush.bf16.msra.mxu1 %v1918_v7  ;;  %2449 = vmatpush.bf16.msra.mxu3 %v1918_v7  ;;  %v249_v42 = vld [vmem:[%s2786_s7 + $0xa0] sm:$0xff]  ;;  %v250_v43 = vld [vmem:[%s2786_s7 + $0xa8] sm:$0xff] }
  0x1d   : > { %v282_v48 = vld [vmem:[%s2786_s7 + $0x1a8] sm:$0xff] }
  0x25   : > { %2318 = vmatmul.msk.bf16.gmra.mxu0 %vm335_vm0, %v294_v16  ;;  %2334 = vmatmul.msk.bf16.gmra.mxu2 %vm335_vm0, %v310_v17  ;;  %v1914_v16 = vld [vmem:[%s5167_s3 + $0x8] sm:$0xff] }
  0x26   : > { %v1917_v19 = vpack.c.bf16 %v1914_v16, %v1913_v15 }
  0x28   : > { %2026 = vmatpush.bf16.msra.mxu1 %v1917_v19  ;;  %2450 = vmatpush.bf16.msra.mxu3 %v1917_v19 }
  0x35   : > { %2319 = vmatmul.msk.bf16.gmra.mxu0 %vm335_vm0, %v295_v22  ;;  %2335 = vmatmul.msk.bf16.gmra.mxu2 %vm335_vm0, %v311_v23  ;;  %v318_v22 = vpack.c.bf16 %v280_v14, %v279_v13 }
  0x45   : > { %2320 = vmatmul.msk.bf16.gmra.mxu0 %vm335_vm0, %v296_v28  ;;  %2336 = vmatmul.msk.bf16.gmra.mxu2 %vm335_vm0, %v312_v29 }
  0x55   : > { %2321 = vmatmul.msk.bf16.gmra.mxu0 %vm335_vm0, %v297_v34  ;;  %2337 = vmatmul.msk.bf16.gmra.mxu2 %vm335_vm0, %v313_v35 }
  0x65   : > { %2322 = vmatmul.msk.bf16.gmra.mxu0 %vm335_vm0, %v298_v40  ;;  %2338 = vmatmul.msk.bf16.gmra.mxu2 %vm335_vm0, %v314_v41 }
  0x75   : > { %2323 = vmatmul.msk.bf16.gmra.mxu0 %vm335_vm0, %v299_v46  ;;  %2339 = vmatmul.msk.bf16.gmra.mxu2 %vm335_vm0, %v315_v47  ;;  %v281_v47 = vld [vmem:[%s2786_s7 + $0x1a0] sm:$0xff] }
  0x85   : > { %2324 = vmatmul.msk.bf16.gmra.mxu0 %vm335_vm0, %v300_v52  ;;  %2340 = vmatmul.msk.bf16.gmra.mxu2 %vm335_vm0, %v316_v53  ;;  %v303_v53 = vpack.c.bf16 %v250_v43, %v249_v42  ;;  %v251_v42 = vld [vmem:[%s2786_s7 + $0xb0] sm:$0xff]  ;;  %v252_v43 = vld [vmem:[%s2786_s7 + $0xb8] sm:$0xff] }
  0x92   : > { %v441_v60 = vpop.f32.mrf.mxu0 }
  0x93   : > { %v2846_v62 = vadd.f32 %v2841_v56, %v441_v60  ;;  %v304_v60 = vpack.c.bf16 %v252_v43, %v251_v42 }
  0x95   : > { %v2349_v63 = vmul.f32 -1.442695, %v2846_v62  ;;  %2325 = vmatmul.msk.bf16.gmra.mxu0 %vm335_vm0, %v301_v59  ;;  %2341 = vmatmul.msk.bf16.gmra.mxu2 %vm335_vm0, %v317_v61  ;;  %v319_v59 = vpack.c.bf16 %v282_v48, %v281_v47  ;;  %v283_v48 = vld [vmem:[%s2786_s7 + $0x1b0] sm:$0xff] }
  0x97   : > { %2461 = vpow2.f32 %v2349_v63 }
  0x98   : > { %v521_v0 = vpop.f32.mrf.mxu2 }
  0x99   : > { %v2852_v1 = vadd.f32 %v2841_v56, %v521_v0 }
  0x9a   : > { %v443_v2 = vpop.f32.mrf.mxu0 }
  0x9b   : > { %v2855_v3 = vadd.f32 %v2841_v56, %v443_v2  ;;  %v2381_v6 = vmul.f32 -1.442695, %v2852_v1 }
  0x9d   : > { %v2462_v8 = vpop.eup %2461  ;;  %v2350_v9 = vmul.f32 -1.442695, %v2855_v3  ;;  %2463 = vpow2.f32 %v2381_v6 }
  0x9e   : > { %v2865_v10 = vadd.f32 1.0, %v2462_v8 }
  0x9f   : > { %2465 = vpow2.f32 %v2350_v9 }
  0xa0   : > { %2467 = vrcp.f32 %v2865_v10  ;;  %v523_v17 = vpop.f32.mrf.mxu2  ;;  %vm862_vm1 = vweird.f32 %v2865_v10  ;;  %v866_v51 = vand.u32 2147483647, %v2865_v10  ;;  %v868_v52 = vand.u32 2147483648, %v2865_v10 }
  0xa1   : > { %v2879_v20 = vadd.f32 %v2841_v56, %v523_v17 }
  0xa2   : > { %v446_v21 = vpop.f32.mrf.mxu0  ;;  %vm2936_vm5 = vcmp.eq.f32.partialorder %v866_v51, 8.507059e+37  ;;  %v869_v8 = vor.u32 1.1754944e-38, %v868_v52 }
  0xa3   : > { %v2882_v23 = vadd.f32 %v2841_v56, %v446_v21  ;;  %v2464_v24 = vpop.eup %2463  ;;  %v2382_v25 = vmul.f32 -1.442695, %v2879_v20 }
  0xa4   : > { %v2885_v27 = vadd.f32 1.0, %v2464_v24 }
  0xa5   : > { %v2466_v26 = vpop.eup %2465  ;;  %v2351_v28 = vmul.f32 -1.442695, %v2882_v23  ;;  %2326 = vmatmul.msk.bf16.gmra.mxu0 %vm335_vm0, %v302_v18  ;;  %2469 = vpow2.f32 %v2382_v25  ;;  %2342 = vmatmul.msk.bf16.gmra.mxu2 %vm335_vm0, %v318_v22 }
  0xa6   : > { %v2889_v29 = vpop.eup %2467  ;;  %v2891_v30 = vadd.f32 1.0, %v2466_v26  ;;  %2471 = vrcp.f32 %v2885_v27  ;;  %v1346_v21 = vand.u32 2147483647, %v2885_v27  ;;  %v1348_v26 = vand.u32 2147483648, %v2885_v27 }
  0xa7   : > { %v858_v31 = vmul.f32 %v2889_v29, %v2865_v10  ;;  %vm863_vm2 = vweird.f32 %v2889_v29  ;;  %vm1342_vm11 = vweird.f32 %v2885_v27 }
  0xa8   : > { %2473 = vrcp.f32 %v2891_v30  ;;  %v526_v33 = vpop.f32.mrf.mxu2  ;;  %vm2926_vm3 = vmor %vm862_vm1, %vm863_vm2  ;;  %v883_v63 = vand.u32 2147483648, %v2891_v30  ;;  %v881_v5 = vand.u32 2147483647, %v2891_v30  ;;  %vm877_vm6 = vweird.f32 %v2891_v30 }
  0xa9   : > { %v859_v32 = vsub.f32 1.0, %v858_v31  ;;  %2475 = vpow2.f32 %v2351_v28  ;;  %v2899_v34 = vadd.f32 %v2841_v56, %v526_v33  ;;  %vm1347_vm14 = vcmp.eq.f32.partialorder %v1346_v21, 8.507059e+37 }
  0xaa   : > { %v448_v35 = vpop.f32.mrf.mxu0  ;;  %v884_v14 = vor.u32 1.1754944e-38, %v883_v63  ;;  %vm882_vm8 = vcmp.eq.f32.partialorder %v881_v5, 8.507059e+37  ;;  %v1349_v51 = vor.u32 1.1754944e-38, %v1348_v26 }
  0xab   : > { %v2902_v36 = vadd.f32 %v2841_v56, %v448_v35  ;;  %v2470_v37 = vpop.eup %2469  ;;  %v2383_v38 = vmul.f32 -1.442695, %v2899_v34  ;;  %v860_v40 = vmul.f32 %v2889_v29, %v859_v32 }
  0xac   : > { %v2905_v39 = vpop.eup %2471  ;;  %v2908_v41 = vadd.f32 1.0, %v2470_v37 }
  0xad   : > { %v1338_v45 = vmul.f32 %v2905_v39, %v2885_v27  ;;  %2477 = vpow2.f32 %v2383_v38  ;;  %v2352_v46 = vmul.f32 -1.442695, %v2902_v36  ;;  %v861_v54 = vadd.f32 %v2889_v29, %v860_v40 }
  0xae   : > { %v2474_v44 = vpop.eup %2473  ;;  %2479 = vrcp.f32 %v2908_v41  ;;  %vm1343_vm9 = vweird.f32 %v2905_v39  ;;  %vm1357_vm12 = vweird.f32 %v2908_v41  ;;  %v1363_v40 = vand.u32 2147483648, %v2908_v41 }
  0xaf   : > { %v2476_v49 = vpop.eup %2475  ;;  %v873_v50 = vmul.f32 %v2474_v44, %v2891_v30  ;;  %v1339_v61 = vsub.f32 1.0, %v1338_v45  ;;  %2481 = vpow2.f32 %v2352_v46  ;;  %vm878_vm4 = vweird.f32 %v2474_v44  ;;  %vm2985_vm13 = vmor %vm1342_vm11, %vm1343_vm9 }
  0xb0   : > { %v2924_v57 = vadd.f32 1.0, %v2476_v49  ;;  %v528_v58 = vpop.f32.mrf.mxu2  ;;  %v865_v10 = vsel %vm2926_vm3, %v2889_v29, %v861_v54  ;;  %vm879_vm7 = vmor %vm877_vm6, %vm878_vm4  ;;  %v1361_v45 = vand.u32 2147483647, %v2908_v41  ;;  %v284_v49 = vld [vmem:[%s2786_s7 + $0x1b8] sm:$0xff] }
  0xb1   : > { %v874_v55 = vsub.f32 1.0, %v873_v50  ;;  %v2932_v0 = vadd.f32 %v2841_v56, %v528_v58  ;;  %v1340_v13 = vmul.f32 %v2905_v39, %v1339_v61  ;;  %v870_v19 = vsel %vm2936_vm5, %v869_v8, %v865_v10 }
  0xb2   : > { %v451_v2 = vpop.f32.mrf.mxu0  ;;  %2483 = vrcp.f32 %v2924_v57  ;;  %v1817_v37 = vmul.f32 %v870_v19, %v2846_v62  ;;  %v320_v61 = vpack.c.bf16 %v284_v49, %v283_v48  ;;  %vm1362_vm1 = vcmp.eq.f32.partialorder %v1361_v45, 8.507059e+37 }
  0xb3   : > { %v875_v4 = vmul.f32 %v2474_v44, %v874_v55  ;;  %v2478_v6 = vpop.eup %2477  ;;  %v2384_v16 = vmul.f32 -1.442695, %v2932_v0  ;;  %v2965_v30 = vadd.f32 %v2841_v56, %v451_v2  ;;  %v1341_v32 = vadd.f32 %v2905_v39, %v1340_v13 }
  0xb4   : > { %v2940_v9 = vpop.eup %2479  ;;  %v2946_v12 = vadd.f32 1.0, %v2478_v6  ;;  %vm892_vm2 = vweird.f32 %v2924_v57  ;;  %v896_v13 = vand.u32 2147483647, %v2924_v57 }
  0xb5   : > { %v876_v11 = vadd.f32 %v2474_v44, %v875_v4  ;;  %2327 = vmatmul.msk.bf16.gmra.mxu0 %vm335_vm0, %v303_v53  ;;  %v1353_v15 = vmul.f32 %v2940_v9, %v2908_v41  ;;  %2343 = vmatmul.msk.bf16.gmra.mxu2 %vm335_vm0, %v319_v59  ;;  %v2482_v18 = vpop.eup %2481  ;;  %vm1358_vm10 = vweird.f32 %v2940_v9  ;;  %v2353_v27 = vmul.f32 -1.442695, %v2965_v30 }
  0xb6   : > { %2485 = vrcp.f32 %v2946_v12  ;;  %v2962_v29 = vadd.f32 1.0, %v2482_v18  ;;  %v1345_v50 = vsel %vm2985_vm13, %v2905_v39, %v1341_v32  ;;  %vm3003_vm15 = vmor %vm1357_vm12, %vm1358_vm10  ;;  %v1364_v41 = vor.u32 1.1754944e-38, %v1363_v40 }
  0xb7   : > { %v880_v17 = vsel %vm879_vm7, %v2474_v44, %v876_v11  ;;  %v1354_v24 = vsub.f32 1.0, %v1353_v15  ;;  %2487 = vpow2.f32 %v2384_v16  ;;  %v898_v59 = vand.u32 2147483648, %v2924_v57 }
  0xb8   : > { %v885_v22 = vsel %vm882_vm8, %v884_v14, %v880_v17  ;;  %v2958_v25 = vpop.eup %2483  ;;  %v531_v31 = vpop.f32.mrf.mxu2  ;;  %2489 = vrcp.f32 %v2962_v29  ;;  %v1350_v2 = vsel %vm1347_vm14, %v1349_v51, %v1345_v50  ;;  %vm907_vm5 = vweird.f32 %v2962_v29 }
  0xb9   : > { %v1818_v28 = vmul.f32 %v885_v22, %v2855_v3  ;;  %v1355_v33 = vmul.f32 %v2940_v9, %v1354_v24  ;;  %v888_v3 = vmul.f32 %v2958_v25, %v2924_v57  ;;  %v2992_v46 = vadd.f32 %v2841_v56, %v531_v31 }
  0xba   : > { %v453_v35 = vpop.f32.mrf.mxu0  ;;  %2491 = vpow2.f32 %v2353_v27  ;;  %v1849_v15 = vmul.f32 %v1350_v2, %v2852_v1  ;;  %vm893_vm3 = vweird.f32 %v2958_v25  ;;  %v899_v16 = vor.u32 1.1754944e-38, %v898_v59 }
  0xbb   : > { %v1356_v38 = vadd.f32 %v2940_v9, %v1355_v33  ;;  %v1881_v47 = vpack.c.bf16 %v1818_v28, %v1817_v37  ;;  %v889_v55 = vsub.f32 1.0, %v888_v3  ;;  %v3013_v39 = vadd.f32 %v2841_v56, %v453_v35  ;;  %vm3052_vm4 = vmor %vm892_vm2, %vm893_vm3 }
  0xbc   : > { %v2981_v62 = vpop.eup %2485  ;;  %v2385_v5 = vmul.f32 -1.442695, %v2992_v46  ;;  %v1376_v1 = vand.u32 2147483647, %v2946_v12  ;;  %v1378_v31 = vand.u32 2147483648, %v2946_v12  ;;  %v913_v3 = vand.u32 2147483648, %v2962_v29 }
  0xbd   : > { %v1368_v53 = vmul.f32 %v2981_v62, %v2946_v12  ;;  %v1360_v54 = vsel %vm3003_vm15, %v2940_v9, %v1356_v38  ;;  %2413 = vmatmul.msk.bf16.vlgmr.msra.gmra.mxu1 %vm335_vm0, %v1881_v47  ;;  %v2488_v58 = vpop.eup %2487  ;;  %v890_v11 = vmul.f32 %v2958_v25, %v889_v55  ;;  %v2354_v14 = vmul.f32 -1.442695, %v3013_v39 }
  0xbe   : > { %v3017_v63 = vpop.eup %2489  ;;  %v3019_v4 = vadd.f32 1.0, %v2488_v58  ;;  %v1365_v7 = vsel %vm1362_vm1, %v1364_v41, %v1360_v54  ;;  %vm1373_vm7 = vweird.f32 %v2981_v62  ;;  %v911_v43 = vand.u32 2147483647, %v2962_v29 }
  0xbf   : > { %v1369_v8 = vsub.f32 1.0, %v1368_v53  ;;  %v903_v9 = vmul.f32 %v3017_v63, %v2962_v29  ;;  %v1850_v19 = vmul.f32 %v1365_v7, %v2879_v20  ;;  %v891_v20 = vadd.f32 %v2958_v25, %v890_v11 }
  0xc0   : > { %v533_v6 = vpop.f32.mrf.mxu2  ;;  %2493 = vrcp.f32 %v3019_v4  ;;  %v2492_v18 = vpop.eup %2491  ;;  %vm908_vm6 = vweird.f32 %v3017_v63  ;;  %vm3072_vm8 = vcmp.eq.f32.partialorder %v896_v13, 8.507059e+37  ;;  %vm1372_vm9 = vweird.f32 %v2946_v12 }
  0xc1   : > { %v904_v17 = vsub.f32 1.0, %v903_v9  ;;  %2495 = vpow2.f32 %v2385_v5  ;;  %v3033_v21 = vadd.f32 %v2841_v56, %v533_v6  ;;  %v1370_v24 = vmul.f32 %v2981_v62, %v1369_v8  ;;  %vm3081_vm10 = vmor %vm907_vm5, %vm908_vm6  ;;  %v285_v9 = vld [vmem:[%s2786_s7 + $0x1c0] sm:$0xff] }
  0xc2   : > { %v456_v10 = vpop.f32.mrf.mxu0  ;;  %v3042_v28 = vadd.f32 1.0, %v2492_v18  ;;  %2497 = vpow2.f32 %v2354_v14  ;;  %v1897_v57 = vpack.c.bf16 %v1850_v19, %v1849_v15  ;;  %v895_v47 = vsel %vm3052_vm4, %v2958_v25, %v891_v20  ;;  %vm3100_vm12 = vmor %vm1372_vm9, %vm1373_vm7 }
  0xc3   : > { %v3036_v22 = vadd.f32 %v2841_v56, %v456_v10  ;;  %v905_v26 = vmul.f32 %v3017_v63, %v904_v17  ;;  %v2386_v32 = vmul.f32 -1.442695, %v3033_v21  ;;  %v1371_v42 = vadd.f32 %v2981_v62, %v1370_v24  ;;  %v286_v10 = vld [vmem:[%s2786_s7 + $0x1c8] sm:$0xff] }
  0xc4   : > { %2499 = vrcp.f32 %v3042_v28  ;;  %2429 = vmatmul.msk.bf16.vlgmr.msra.gmra.mxu3 %vm335_vm0, %v1897_v57  ;;  %vm3089_vm11 = vcmp.eq.f32.partialorder %v1376_v1, 8.507059e+37  ;;  %v1379_v54 = vor.u32 1.1754944e-38, %v1378_v31  ;;  %v914_v55 = vor.u32 1.1754944e-38, %v913_v3 }
  0xc5   : > { %2328 = vmatmul.msk.bf16.gmra.mxu0 %vm335_vm0, %v304_v60  ;;  %2344 = vmatmul.msk.bf16.gmra.mxu2 %vm335_vm0, %v320_v61  ;;  %v906_v35 = vadd.f32 %v3017_v63, %v905_v26  ;;  %2501 = vpow2.f32 %v2386_v32  ;;  %v2355_v38 = vmul.f32 -1.442695, %v3036_v22  ;;  %v900_v59 = vsel %vm3072_vm8, %v899_v16, %v895_v47  ;;  %v253_v61 = vld [vmem:[%s2786_s7 + $0xc0] sm:$0xff] }
  0xc6   : > { %v3060_v37 = vpop.eup %2493  ;;  %v1375_v60 = vsel %vm3100_vm12, %v2981_v62, %v1371_v42  ;;  %vm912_vm13 = vcmp.eq.f32.partialorder %v911_v43, 8.507059e+37  ;;  %v1391_v11 = vand.u32 2147483647, %v3019_v4  ;;  %v1393_v62 = vand.u32 2147483648, %v3019_v4 }
  0xc7   : > { %v1383_v44 = vmul.f32 %v3060_v37, %v3019_v4  ;;  %v2496_v27 = vpop.eup %2495  ;;  %v910_v12 = vsel %vm3081_vm10, %v3017_v63, %v906_v35  ;;  %2503 = vpow2.f32 %v2355_v38  ;;  %v254_v63 = vld [vmem:[%s2786_s7 + $0xc8] sm:$0xff]  ;;  %v1380_v14 = vsel %vm3089_vm11, %v1379_v54, %v1375_v60 }
  0xc8   : > { %v536_v40 = vpop.f32.mrf.mxu2  ;;  %v3096_v51 = vadd.f32 1.0, %v2496_v27  ;;  %v2498_v52 = vpop.eup %2497  ;;  %v915_v5 = vsel %vm912_vm13, %v914_v55, %v910_v12  ;;  %v305_v17 = vpack.c.bf16 %v254_v63, %v253_v61  ;;  %v926_v19 = vand.u32 2147483647, %v3042_v28 }
  0xc9   : > { %v3087_v50 = vadd.f32 %v2841_v56, %v536_v40  ;;  %v1384_v29 = vsub.f32 1.0, %v1383_v44  ;;  %v3118_v8 = vadd.f32 1.0, %v2498_v52  ;;  %v1820_v18 = vmul.f32 %v915_v5, %v2902_v36 }
  0xca   : > { %v458_v45 = vpop.f32.mrf.mxu0  ;;  %v3105_v41 = vpop.eup %2499  ;;  %2505 = vrcp.f32 %v3096_v51  ;;  %v321_v1 = vpack.c.bf16 %v286_v10, %v285_v9  ;;  %vm1388_vm14 = vweird.f32 %v3060_v37  ;;  %v928_v32 = vand.u32 2147483648, %v3042_v28 }
  0xcb   : > { %v2387_v58 = vmul.f32 -1.442695, %v3087_v50  ;;  %v2502_v2 = vpop.eup %2501  ;;  %v1385_v6 = vmul.f32 %v3060_v37, %v1384_v29  ;;  %v918_v7 = vmul.f32 %v3105_v41, %v3042_v28  ;;  %v1819_v36 = vmul.f32 %v900_v59, %v2882_v23 }
  0xcc   : > { %v3124_v13 = vadd.f32 1.0, %v2502_v2  ;;  %vm1387_vm15 = vweird.f32 %v3019_v4  ;;  %vm3142_vm1 = vcmp.eq.f32.partialorder %v1391_v11, 8.507059e+37  ;;  %v1394_v3 = vor.u32 1.1754944e-38, %v1393_v62 }
  0xcd   : > { %2507 = vpow2.f32 %v2387_v58  ;;  %v919_v15 = vsub.f32 1.0, %v918_v7  ;;  %v2504_v26 = vpop.eup %2503  ;;  %v1386_v20 = vadd.f32 %v3060_v37, %v1385_v6  ;;  %v3147_v38 = vmul.f32 %v1380_v14, %v2899_v34  ;;  %vm3155_vm4 = vmor %vm1387_vm15, %vm1388_vm14 }
  0xce   : > { %2509 = vrcp.f32 %v3118_v8  ;;  %vm922_vm2 = vweird.f32 %v3042_v28  ;;  %vm923_vm3 = vweird.f32 %v3105_v41  ;;  %v3152_v57 = vadd.f32 %v2841_v56, %v458_v45 }
  0xcf   : > { %2511 = vrcp.f32 %v3124_v13  ;;  %v920_v31 = vmul.f32 %v3105_v41, %v919_v15  ;;  %vm3159_vm5 = vcmp.eq.f32.partialorder %v926_v19, 8.507059e+37  ;;  %v3165_v42 = vadd.f32 1.0, %v2504_v26  ;;  %vm3180_vm6 = vmor %vm922_vm2, %vm923_vm3 }
  0xd0   : > { %v538_v16 = vpop.f32.mrf.mxu2  ;;  %v3138_v33 = vpop.eup %2505  ;;  %v1882_v43 = vpack.c.bf16 %v1820_v18, %v1819_v36  ;;  %v1390_v45 = vsel %vm3155_vm4, %v3060_v37, %v1386_v20  ;;  %v929_v47 = vor.u32 1.1754944e-38, %v928_v32  ;;  %v1406_v12 = vand.u32 2147483647, %v3096_v51 }
  0xd1   : > { %v1398_v34 = vmul.f32 %v3138_v33, %v3096_v51  ;;  %v921_v27 = vadd.f32 %v3105_v41, %v920_v31  ;;  %v1408_v29 = vand.u32 2147483648, %v3096_v51  ;;  %2513 = vrcp.f32 %v3165_v42 }
  0xd2   : > { %v3132_v24 = vpop.f32.mrf.mxu0  ;;  %2414 = vmatmul.msk.bf16.gmra.mxu1 %vm335_vm0, %v1882_v43  ;;  %vm937_vm7 = vweird.f32 %v3118_v8  ;;  %v941_v52 = vand.u32 2147483647, %v3118_v8  ;;  %v2356_v53 = vmul.f32 -1.442695, %v3152_v57  ;;  %v1395_v55 = vsel %vm3142_vm1, %v1394_v3, %v1390_v45 }
  0xd3   : > { %v2508_v23 = vpop.eup %2507  ;;  %v1399_v58 = vsub.f32 1.0, %v1398_v34  ;;  %v3197_v60 = vadd.f32 %v2841_v56, %v538_v16  ;;  %v925_v63 = vsel %vm3180_vm6, %v3105_v41, %v921_v27  ;;  %v943_v2 = vand.u32 2147483648, %v3118_v8 }
  0xd4   : > { %v2510_v44 = vpop.eup %2509  ;;  %v3172_v48 = vadd.f32 1.0, %v2508_v23  ;;  %vm1402_vm8 = vweird.f32 %v3096_v51  ;;  %vm1417_vm10 = vweird.f32 %v3124_v13  ;;  %v1421_v7 = vand.u32 2147483647, %v3124_v13 }
  0xd5   : > { %2329 = vmatmul.msk.bf16.gmra.mxu0 %vm335_vm0, %v305_v17  ;;  %2345 = vmatmul.msk.bf16.gmra.mxu2 %vm335_vm0, %v321_v1  ;;  %v3174_v49 = vpop.eup %2511  ;;  %v933_v37 = vmul.f32 %v2510_v44, %v3118_v8  ;;  %vm938_vm9 = vweird.f32 %v2510_v44  ;;  %v1852_v9 = vmul.f32 %v1395_v55, %v2932_v0  ;;  %vm3208_vm11 = vcmp.eq.f32.partialorder %v941_v52, 8.507059e+37 }
  0xd6   : > { %v1413_v28 = vmul.f32 %v3174_v49, %v3124_v13  ;;  %2515 = vrcp.f32 %v3172_v48  ;;  %v930_v62 = vsel %vm3159_vm5, %v929_v47, %v925_v63  ;;  %v1400_v14 = vmul.f32 %v3138_v33, %v1399_v58  ;;  %vm939_vm12 = vmor %vm937_vm7, %vm938_vm9 }
  0xd7   : > { %v934_v59 = vsub.f32 1.0, %v933_v37  ;;  %2517 = vpow2.f32 %v2356_v53  ;;  %v3213_v11 = vpop.eup %2513  ;;  %v2388_v16 = vmul.f32 -1.442695, %v3197_v60  ;;  %v944_v0 = vor.u32 1.1754944e-38, %v943_v2 }
  0xd8   : > { %v541_v54 = vpop.f32.mrf.mxu2  ;;  %v1414_v5 = vsub.f32 1.0, %v1413_v28  ;;  %vm1418_vm13 = vweird.f32 %v3174_v49  ;;  %v948_v18 = vmul.f32 %v3213_v11, %v3165_v42  ;;  %vm3225_vm14 = vcmp.eq.f32.partialorder %v1406_v12, 8.507059e+37 }
  0xd9   : > { %v935_v6 = vmul.f32 %v2510_v44, %v934_v59  ;;  %v1423_v26 = vand.u32 2147483648, %v3124_v13  ;;  %2519 = vpow2.f32 %v2388_v16  ;;  %v3232_v8 = vadd.f32 %v2841_v56, %v3132_v24  ;;  %vm3247_vm1 = vmor %vm1417_vm10, %vm1418_vm13 }
  0xda   : > { %v463_v61 = vpop.f32.mrf.mxu0  ;;  %v1415_v41 = vmul.f32 %v3174_v49, %v1414_v5  ;;  %v1821_v31 = vmul.f32 %v930_v62, %v2965_v30  ;;  %vm1403_vm15 = vweird.f32 %v3138_v33  ;;  %v1898_v36 = vpack.c.bf16 %v1852_v9, %v3147_v38 }
  0xdb   : > { %v936_v15 = vadd.f32 %v2510_v44, %v935_v6  ;;  %v1401_v3 = vadd.f32 %v3138_v33, %v1400_v14  ;;  %v949_v30 = vsub.f32 1.0, %v948_v18  ;;  %v1409_v38 = vor.u32 1.1754944e-38, %v1408_v29  ;;  %vm3270_vm2 = vmor %vm1402_vm8, %vm1403_vm15 }
  0xdc   : > { %v1416_v17 = vadd.f32 %v3174_v49, %v1415_v41  ;;  %v3234_v20 = vpop.eup %2515  ;;  %2430 = vmatmul.msk.bf16.gmra.mxu3 %vm335_vm0, %v1898_v36  ;;  %v3259_v13 = vadd.f32 %v2841_v56, %v541_v54  ;;  %v3264_v27 = vadd.f32 %v2841_v56, %v463_v61  ;;  %vm1422_vm3 = vcmp.eq.f32.partialorder %v1421_v7, 8.507059e+37 }
  0xdd   : > { %v940_v1 = vsel %vm939_vm12, %v2510_v44, %v936_v15  ;;  %v1428_v4 = vmul.f32 %v3234_v20, %v3172_v48  ;;  %v2518_v34 = vpop.eup %2517  ;;  %v1424_v25 = vor.u32 1.1754944e-38, %v1423_v26  ;;  %v1405_v37 = vsel %vm3270_vm2, %v3138_v33, %v1401_v3 }
  0xde   : > { %v945_v32 = vsel %vm3208_vm11, %v944_v0, %v940_v1  ;;  %v1420_v43 = vsel %vm3247_vm1, %v3174_v49, %v1416_v17  ;;  %v3261_v45 = vadd.f32 1.0, %v2518_v34  ;;  %v2389_v12 = vmul.f32 -1.442695, %v3259_v13  ;;  %v255_v0 = vld [vmem:[%s2786_s7 + $0xd0] sm:$0xff]  ;;  %v256_v17 = vld [vmem:[%s2786_s7 + $0xd8] sm:$0xff] }
  0xdf   : > { %v1822_v23 = vmul.f32 %v945_v32, %v3013_v39  ;;  %v2357_v39 = vmul.f32 -1.442695, %v3232_v8  ;;  %v1429_v44 = vsub.f32 1.0, %v1428_v4  ;;  %v2520_v29 = vpop.eup %2519  ;;  %v950_v52 = vmul.f32 %v3213_v11, %v949_v30  ;;  %v287_v30 = vld [vmem:[%s2786_s7 + $0x1d0] sm:$0xff] }
  0xe0   : > { %v543_v35 = vpop.f32.mrf.mxu2  ;;  %v956_v28 = vand.u32 2147483647, %v3165_v42  ;;  %v1425_v51 = vsel %vm1422_vm3, %v1424_v25, %v1420_v43  ;;  %v3281_v53 = vadd.f32 1.0, %v2520_v29  ;;  %vm952_vm4 = vweird.f32 %v3165_v42 }
  0xe1   : > { %v1883_v47 = vpack.c.bf16 %v1822_v23, %v1821_v31  ;;  %2521 = vpow2.f32 %v2357_v39  ;;  %v3284_v54 = vadd.f32 %v2841_v56, %v543_v35  ;;  %vm953_vm5 = vweird.f32 %v3213_v11 }
  0xe2   : > { %v466_v40 = vpop.f32.mrf.mxu0  ;;  %2523 = vrcp.f32 %v3261_v45  ;;  %v1430_v55 = vmul.f32 %v3234_v20, %v1429_v44  ;;  %v2358_v33 = vmul.f32 -1.442695, %v3264_v27  ;;  %v1410_v58 = vsel %vm3225_vm14, %v1409_v38, %v1405_v37  ;;  %vm3310_vm8 = vmor %vm952_vm4, %vm953_vm5 }
  0xe3   : > { %2525 = vpow2.f32 %v2389_v12  ;;  %2415 = vmatmul.msk.bf16.gmra.mxu1 %vm335_vm0, %v1883_v47  ;;  %v958_v59 = vand.u32 2147483648, %v3165_v42  ;;  %vm1432_vm6 = vweird.f32 %v3172_v48  ;;  %v1854_v63 = vmul.f32 %v1425_v51, %v3033_v21 }
  0xe4   : > { %2527 = vrcp.f32 %v3281_v53  ;;  %v951_v2 = vadd.f32 %v3213_v11, %v950_v52  ;;  %vm3300_vm7 = vcmp.eq.f32.partialorder %v956_v28, 8.507059e+37  ;;  %v1436_v21 = vand.u32 2147483647, %v3172_v48 }
  0xe5   : > { %2529 = vpow2.f32 %v2358_v33  ;;  %v1438_v10 = vand.u32 2147483648, %v3172_v48  ;;  %v2390_v41 = vmul.f32 -1.442695, %v3284_v54  ;;  %v3318_v62 = vadd.f32 %v2841_v56, %v466_v40 }
  0xe6   : > { %v1853_v15 = vmul.f32 %v1410_v58, %v2992_v46  ;;  %v1431_v16 = vadd.f32 %v3234_v20, %v1430_v55  ;;  %vm1433_vm9 = vweird.f32 %v3234_v20  ;;  %v959_v19 = vor.u32 1.1754944e-38, %v958_v59 }
  0xe7   : > { %v2522_v7 = vpop.eup %2521  ;;  %2531 = vpow2.f32 %v2390_v41  ;;  %v2359_v26 = vmul.f32 -1.442695, %v3318_v62  ;;  %v955_v46 = vsel %vm3310_vm8, %v3213_v11, %v951_v2  ;;  %v971_v31 = vand.u32 2147483647, %v3261_v45  ;;  %vm3341_vm10 = vmor %vm1432_vm6, %vm1433_vm9  ;;  %v288_v11 = vld [vmem:[%s2786_s7 + $0x1d8] sm:$0xff] }
  0xe8   : > { %v3296_v61 = vpop.f32.mrf.mxu2  ;;  %v3320_v14 = vpop.eup %2523  ;;  %v3325_v42 = vadd.f32 1.0, %v2522_v7  ;;  %v1899_v32 = vpack.c.bf16 %v1854_v63, %v1853_v15  ;;  %v306_v24 = vpack.c.bf16 %v256_v17, %v255_v0  ;;  %v1435_v40 = vsel %vm3341_vm10, %v3234_v20, %v1431_v16 }
  0xe9   : > { %v2526_v18 = vpop.eup %2525  ;;  %v963_v1 = vmul.f32 %v3320_v14, %v3261_v45  ;;  %vm1437_vm11 = vcmp.eq.f32.partialorder %v1436_v21, 8.507059e+37  ;;  %v1439_v34 = vor.u32 1.1754944e-38, %v1438_v10  ;;  %vm967_vm12 = vweird.f32 %v3261_v45 }
  0xea   : > { %v3304_v6 = vpop.f32.mrf.mxu0  ;;  %2533 = vrcp.f32 %v3325_v42  ;;  %v3337_v36 = vpop.eup %2527  ;;  %v3345_v23 = vadd.f32 1.0, %v2526_v18  ;;  %v973_v43 = vand.u32 2147483648, %v3261_v45  ;;  %2330 = vmatmul.msk.bf16.gmra.mxu0 %vm335_vm0, %v306_v24  ;;  %v960_v20 = vsel %vm3300_vm7, %v959_v19, %v955_v46 }
  0xeb   : > { %v964_v3 = vsub.f32 1.0, %v963_v1  ;;  %2535 = vpow2.f32 %v2359_v26  ;;  %v2530_v4 = vpop.eup %2529  ;;  %v1443_v48 = vmul.f32 %v3337_v36, %v3281_v53  ;;  %v322_v49 = vpack.c.bf16 %v288_v11, %v287_v30 }
  0xec   : > { %2537 = vrcp.f32 %v3345_v23  ;;  %v3363_v47 = vadd.f32 1.0, %v2530_v4  ;;  %v1440_v29 = vsel %vm1437_vm11, %v1439_v34, %v1435_v40  ;;  %vm968_vm13 = vweird.f32 %v3320_v14  ;;  %2431 = vmatmul.msk.bf16.gmra.mxu3 %vm335_vm0, %v1899_v32 }
  0xed   : > { %v965_v38 = vmul.f32 %v3320_v14, %v964_v3  ;;  %v1444_v44 = vsub.f32 1.0, %v1443_v48  ;;  %v2532_v12 = vpop.eup %2531  ;;  %vm3369_vm14 = vcmp.eq.f32.partialorder %v971_v31, 8.507059e+37  ;;  %v1451_v55 = vand.u32 2147483647, %v3281_v53  ;;  %2346 = vmatmul.msk.bf16.gmra.mxu2 %vm335_vm0, %v322_v49  ;;  %vm3394_vm1 = vmor %vm967_vm12, %vm968_vm13 }
  0xee   : > { %v1453_v33 = vand.u32 2147483648, %v3281_v53  ;;  %2539 = vrcp.f32 %v3363_v47  ;;  %v3382_v59 = vmul.f32 %v960_v20, %v3036_v22  ;;  %v974_v63 = vor.u32 1.1754944e-38, %v973_v43 }
  0xef   : > { %v966_v37 = vadd.f32 %v3320_v14, %v965_v38  ;;  %v1445_v51 = vmul.f32 %v3337_v36, %v1444_v44  ;;  %vm1448_vm15 = vweird.f32 %v3337_v36  ;;  %v3388_v5 = vmul.f32 %v1440_v29, %v3087_v50 }
  0xf0   : > { %v3359_v39 = vpop.f32.mrf.mxu2  ;;  %v3374_v28 = vpop.eup %2533  ;;  %vm1447_vm2 = vweird.f32 %v3281_v53  ;;  %v3400_v9 = vadd.f32 1.0, %v2532_v12  ;;  %v988_v41 = vand.u32 2147483648, %v3325_v42  ;;  %vm3414_vm4 = vcmp.eq.f32.partialorder %v1451_v55, 8.507059e+37  ;;  %v257_v55 = vld [vmem:[%s2786_s7 + $0xe0] sm:$0xff] }
  0xf1   : > { %v2536_v58 = vpop.eup %2535  ;;  %v978_v2 = vmul.f32 %v3374_v28, %v3325_v42  ;;  %v1446_v22 = vadd.f32 %v3337_v36, %v1445_v51  ;;  %v970_v50 = vsel %vm3394_vm1, %v3320_v14, %v966_v37  ;;  %vm3410_vm3 = vmor %vm1447_vm2, %vm1448_vm15  ;;  %v1454_v53 = vor.u32 1.1754944e-38, %v1453_v33  ;;  %v258_v33 = vld [vmem:[%s2786_s7 + $0xe8] sm:$0xff] }
  0xf2   : > { %v3365_v25 = vpop.f32.mrf.mxu0  ;;  %v3402_v21 = vpop.eup %2537  ;;  %v3408_v45 = vadd.f32 1.0, %v2536_v58  ;;  %v986_v0 = vand.u32 2147483647, %v3325_v42  ;;  %vm982_vm5 = vweird.f32 %v3325_v42  ;;  %2541 = vrcp.f32 %v3400_v9 }
  0xf3   : > { %v979_v10 = vsub.f32 1.0, %v978_v2  ;;  %v1458_v17 = vmul.f32 %v3402_v21, %v3345_v23  ;;  %v1450_v14 = vsel %vm3410_vm3, %v3337_v36, %v1446_v22  ;;  %v3428_v18 = vadd.f32 %v2841_v56, %v3296_v61 }
  0xf4   : > { %v3432_v1 = vpop.eup %2539  ;;  %v975_v26 = vsel %vm3369_vm14, %v974_v63, %v970_v50  ;;  %v1001_v31 = vand.u32 2147483647, %v3363_v47  ;;  %v3440_v32 = vadd.f32 %v2841_v56, %v3304_v6  ;;  %v3444_v35 = vor.u32 1.1754944e-38, %v988_v41  ;;  %v289_v50 = vld [vmem:[%s2786_s7 + $0x1e0] sm:$0xff] }
  0xf5   : > { %v980_v46 = vmul.f32 %v3374_v28, %v979_v10  ;;  %v1459_v61 = vsub.f32 1.0, %v1458_v17  ;;  %v993_v3 = vmul.f32 %v3432_v1, %v3363_v47  ;;  %2543 = vrcp.f32 %v3408_v45  ;;  %v290_v10 = vld [vmem:[%s2786_s7 + $0x1e8] sm:$0xff] }
  0xf6   : > { %v1455_v24 = vsel %vm3414_vm4, %v1454_v53, %v1450_v14  ;;  %vm983_vm6 = vweird.f32 %v3374_v28  ;;  %vm3452_vm7 = vcmp.eq.f32.partialorder %v986_v0, 8.507059e+37  ;;  %v1466_v56 = vand.u32 2147483647, %v3345_v23 }
  0xf7   : > { %v1003_v6 = vand.u32 2147483648, %v3363_v47  ;;  %v1824_v11 = vmul.f32 %v975_v26, %v3152_v57  ;;  %v1468_v4 = vand.u32 2147483648, %v3345_v23  ;;  %v994_v40 = vsub.f32 1.0, %v993_v3  ;;  %vm3473_vm10 = vmor %vm982_vm5, %vm983_vm6 }
  0xf8   : > { %v3430_v19 = vpop.f32.mrf.mxu2  ;;  %vm997_vm8 = vweird.f32 %v3363_v47  ;;  %v981_v34 = vadd.f32 %v3374_v28, %v980_v46  ;;  %vm3462_vm9 = vcmp.eq.f32.partialorder %v1001_v31, 8.507059e+37  ;;  %v2391_v38 = vmul.f32 -1.442695, %v3428_v18  ;;  %v3468_v20 = vpop.eup %2541 }
  0xf9   : > { %v2360_v43 = vmul.f32 -1.442695, %v3440_v32  ;;  %v1856_v57 = vmul.f32 %v1455_v24, %v3197_v60  ;;  %v1460_v49 = vmul.f32 %v3402_v21, %v1459_v61  ;;  %vm1462_vm11 = vweird.f32 %v3345_v23 }
  0xfa   : > { %v3442_v36 = vpop.f32.mrf.mxu0  ;;  %vm1463_vm12 = vweird.f32 %v3402_v21  ;;  %v995_v12 = vmul.f32 %v3432_v1, %v994_v40  ;;  %vm998_vm13 = vweird.f32 %v3432_v1  ;;  %v1004_v29 = vor.u32 1.1754944e-38, %v1003_v6 }
  0xfb   : > { %v1473_v60 = vmul.f32 %v3468_v20, %v3400_v9  ;;  %2545 = vpow2.f32 %v2391_v38  ;;  %v3484_v42 = vpop.eup %2543  ;;  %v1481_v52 = vand.u32 2147483647, %v3400_v9  ;;  %v1884_v51 = vpack.c.bf16 %v1824_v11, %v3382_v59  ;;  %vm3508_vm15 = vmor %vm997_vm8, %vm998_vm13  ;;  %v3516_v59 = vld [vmem:[%s5166_s2] ss:$0 sm:$0xff] }
  0xfc   : > { %v996_v37 = vadd.f32 %v3432_v1, %v995_v12  ;;  %2547 = vpow2.f32 %v2360_v43  ;;  %v985_v63 = vsel %vm3473_vm10, %v3374_v28, %v981_v34  ;;  %v1483_v7 = vand.u32 2147483648, %v3400_v9  ;;  %vm3556_vm5 = vmor %vm1462_vm11, %vm1463_vm12 }
  0xfd   : > { %v1474_v2 = vsub.f32 1.0, %v1473_v60  ;;  %v1008_v22 = vmul.f32 %v3484_v42, %v3408_v45  ;;  %v1461_v41 = vadd.f32 %v3402_v21, %v1460_v49  ;;  %vm3500_vm14 = vcmp.eq.f32.partialorder %v1466_v56, 8.507059e+37  ;;  %2416 = vmatmul.msk.bf16.gmra.mxu1 %vm335_vm0, %v1884_v51 }
  0xfe   : > { %v3520_v16 = vadd.f32 %v3516_v59, %v3359_v39  ;;  %v3524_v53 = vadd.f32 %v3516_v59, %v3365_v25  ;;  %v1900_v47 = vpack.c.bf16 %v1856_v57, %v3388_v5  ;;  %v1000_v0 = vsel %vm3508_vm15, %v3432_v1, %v996_v37 }
  0xff   : > { %v1475_v17 = vmul.f32 %v3468_v20, %v1474_v2  ;;  %vm1478_vm1 = vweird.f32 %v3468_v20  ;;  %v307_v14 = vpack.c.bf16 %v258_v33, %v257_v55  ;;  %v1009_v46 = vsub.f32 1.0, %v1008_v22  ;;  %v259_v2 = vld [vmem:[%s2786_s7 + $0xf0] sm:$0xff] }
 0x100   : > { %v553_v58 = vpop.f32.mrf.mxu2  ;;  %v2392_v39 = vmul.f32 -1.442695, %v3520_v16  ;;  %v2361_v31 = vmul.f32 -1.442695, %v3524_v53  ;;  %2432 = vmatmul.msk.bf16.gmra.mxu3 %vm335_vm0, %v1900_v47  ;;  %v323_v25 = vpack.c.bf16 %v290_v10, %v289_v50  ;;  %vm1477_vm2 = vweird.f32 %v3400_v9 }
 0x101   : > { %v2546_v61 = vpop.eup %2545  ;;  %v1476_v5 = vadd.f32 %v3468_v20, %v1475_v17  ;;  %vm3537_vm3 = vcmp.eq.f32.partialorder %v1481_v52, 8.507059e+37  ;;  %v1484_v3 = vor.u32 1.1754944e-38, %v1483_v7  ;;  %2331 = vmatmul.msk.bf16.gmra.mxu0 %vm335_vm0, %v307_v14  ;;  %v990_v56 = vsel %vm3452_vm7, %v3444_v35, %v985_v63  ;;  %vm1479_vm4 = vmor %vm1477_vm2, %vm1478_vm1  ;;  %v260_v7 = vld [vmem:[%s2786_s7 + $0xf8] sm:$0xff] }
 0x102   : > { %v476_v26 = vpop.f32.mrf.mxu0  ;;  %v2548_v24 = vpop.eup %2547  ;;  %v1005_v6 = vsel %vm3462_vm9, %v1004_v29, %v1000_v0  ;;  %v3549_v11 = vadd.f32 1.0, %v2546_v61  ;;  %2549 = vpow2.f32 %v2392_v39  ;;  %2347 = vmatmul.msk.bf16.gmra.mxu2 %vm335_vm0, %v323_v25  ;;  %v3565_v40 = vadd.f32 %v3516_v59, %v3430_v19  ;;  %v291_v0 = vld [vmem:[%s2786_s7 + $0x1f0] sm:$0xff]  ;;  %v292_v17 = vld [vmem:[%s2786_s7 + $0x1f8] sm:$0xff] }
 0x103   : > { %v1480_v35 = vsel %vm1479_vm4, %v3468_v20, %v1476_v5  ;;  %v3561_v30 = vadd.f32 1.0, %v2548_v24  ;;  %2551 = vpow2.f32 %v2361_v31  ;;  %v1465_v34 = vsel %vm3556_vm5, %v3402_v21, %v1461_v41 }
 0x104   : > { %v1010_v48 = vmul.f32 %v3484_v42, %v1009_v46  ;;  %2553 = vrcp.f32 %v3549_v11  ;;  %v3574_v38 = vadd.f32 %v3516_v59, %v3442_v36  ;;  %v1469_v43 = vor.u32 1.1754944e-38, %v1468_v4 }
 0x105   : > { %v1485_v20 = vsel %vm3537_vm3, %v1484_v3, %v1480_v35  ;;  %v1016_v19 = vand.u32 2147483647, %v3408_v45  ;;  %2555 = vrcp.f32 %v3561_v30  ;;  %v1826_v21 = vmul.f32 %v1005_v6, %v3264_v27 }
 0x106   : > { %vm1012_vm6 = vweird.f32 %v3408_v45  ;;  %vm1013_vm7 = vweird.f32 %v3484_v42  ;;  %v1018_v36 = vand.u32 2147483648, %v3408_v45  ;;  %v1825_v23 = vmul.f32 %v990_v56, %v3232_v8 }
 0x107   : > { %v1470_v4 = vsel %vm3500_vm14, %v1469_v43, %v1465_v34  ;;  %v2393_v44 = vmul.f32 -1.442695, %v3565_v40  ;;  %v3593_v49 = vadd.f32 %v3516_v59, %v553_v58  ;;  %v1858_v27 = vmul.f32 %v1485_v20, %v3284_v54  ;;  %vm3601_vm8 = vmor %vm1012_vm6, %vm1013_vm7 }
 0x108   : > { %v3582_v57 = vpop.f32.mrf.mxu2  ;;  %v2550_v12 = vpop.eup %2549  ;;  %v1011_v29 = vadd.f32 %v3484_v42, %v1010_v48  ;;  %v2362_v60 = vmul.f32 -1.442695, %v3574_v38  ;;  %v3599_v45 = vadd.f32 %v3516_v59, %v476_v26  ;;  %vm3605_vm9 = vcmp.eq.f32.partialorder %v1016_v19, 8.507059e+37 }
 0x109   : > { %v2552_v8 = vpop.eup %2551  ;;  %v3609_v51 = vadd.f32 1.0, %v2550_v12  ;;  %2557 = vpow2.f32 %v2393_v44  ;;  %v1857_v33 = vmul.f32 %v1470_v4, %v3259_v13  ;;  %v1885_v63 = vpack.c.bf16 %v1826_v21, %v1825_v23 }
 0x10a   : > { %v3611_v54 = vpop.f32.mrf.mxu0  ;;  %v3613_v55 = vpop.eup %2553  ;;  %v3616_v58 = vadd.f32 1.0, %v2552_v8  ;;  %2559 = vpow2.f32 %v2362_v60  ;;  %v1019_v50 = vor.u32 1.1754944e-38, %v1018_v36  ;;  %v2394_v41 = vmul.f32 -1.442695, %v3593_v49 }
 0x10b   : > { %v3620_v22 = vpop.eup %2555  ;;  %v1488_v10 = vmul.f32 %v3613_v55, %v3549_v11  ;;  %2561 = vrcp.f32 %v3609_v51  ;;  %v1015_v13 = vsel %vm3601_vm8, %v3484_v42, %v1011_v29  ;;  %v2363_v28 = vmul.f32 -1.442695, %v3599_v45 }
 0x10c   : > { %v1023_v15 = vmul.f32 %v3620_v22, %v3561_v30  ;;  %v1901_v47 = vpack.c.bf16 %v1858_v27, %v1857_v33  ;;  %2563 = vrcp.f32 %v3616_v58  ;;  %v308_v26 = vpack.c.bf16 %v260_v7, %v259_v2 }
 0x10d   : > { %v1489_v14 = vsub.f32 1.0, %v1488_v10  ;;  %v1496_v46 = vand.u32 2147483647, %v3549_v11  ;;  %2417 = vmatmul.msk.bf16.gmra.mxu1 %vm335_vm0, %v1885_v63  ;;  %v1020_v42 = vsel %vm3605_vm9, %v1019_v50, %v1015_v13  ;;  %2565 = vpow2.f32 %v2394_v41 }
 0x10e   : > { %v1024_v39 = vsub.f32 1.0, %v1023_v15  ;;  %v324_v25 = vpack.c.bf16 %v292_v17, %v291_v0  ;;  %2567 = vpow2.f32 %v2363_v28  ;;  %vm1492_vm10 = vweird.f32 %v3549_v11 }
 0x10f   : > { %v2558_v31 = vpop.eup %2557  ;;  %v1490_v1 = vmul.f32 %v3613_v55, %v1489_v14  ;;  %v1498_v6 = vand.u32 2147483648, %v3549_v11  ;;  %v1031_v9 = vand.u32 2147483647, %v3561_v30  ;;  %v1033_v35 = vand.u32 2147483648, %v3561_v30 }
 0x110   : > { %v3639_v61 = vpop.f32.mrf.mxu2  ;;  %v2560_v5 = vpop.eup %2559  ;;  %v1025_v3 = vmul.f32 %v3620_v22, %v1024_v39  ;;  %v3643_v24 = vadd.f32 1.0, %v2558_v31  ;;  %2433 = vmatmul.msk.bf16.gmra.mxu3 %vm335_vm0, %v1901_v47  ;;  %vm3651_vm11 = vcmp.eq.f32.partialorder %v1496_v46, 8.507059e+37  ;;  %vm1028_vm12 = vweird.f32 %v3620_v22 }
 0x111   : > { %v2562_v56 = vpop.eup %2561  ;;  %2332 = vmatmul.msk.bf16.gmra.mxu0 %vm335_vm0, %v308_v26  ;;  %v3662_v19 = vmul.f32 %v1020_v42, %v3318_v62  ;;  %vm1493_vm13 = vweird.f32 %v3613_v55  ;;  %vm1027_vm14 = vweird.f32 %v3561_v30  ;;  %v3666_v21 = vadd.f32 1.0, %v2560_v5 }
 0x112   : > { %v1026_v48 = vadd.f32 %v3620_v22, %v1025_v3  ;;  %v1503_v43 = vmul.f32 %v2562_v56, %v3609_v51  ;;  %2348 = vmatmul.msk.bf16.gmra.mxu2 %vm335_vm0, %v324_v25  ;;  %v3659_v20 = vpop.eup %2563  ;;  %v3668_v36 = vpop.f32.mrf.mxu0  ;;  %v1491_v23 = vadd.f32 %v3613_v55, %v1490_v1  ;;  %2569 = vrcp.f32 %v3643_v24  ;;  %vm3674_vm15 = vmor %vm1027_vm14, %vm1028_vm12 }
 0x113   : > { %v1038_v44 = vmul.f32 %v3659_v20, %v3616_v58  ;;  %v2566_v12 = vpop.eup %2565  ;;  %vm3678_vm1 = vcmp.eq.f32.partialorder %v1031_v9, 8.507059e+37  ;;  %v1034_v30 = vor.u32 1.1754944e-38, %v1033_v35  ;;  %vm1507_vm2 = vweird.f32 %v3609_v51  ;;  %vm3692_vm4 = vmor %vm1492_vm10, %vm1493_vm13 }
 0x114   : > { %v1504_v4 = vsub.f32 1.0, %v1503_v43  ;;  %v1511_v29 = vand.u32 2147483647, %v3609_v51  ;;  %v2568_v60 = vpop.eup %2567  ;;  %v1030_v8 = vsel %vm3674_vm15, %v3620_v22, %v1026_v48  ;;  %vm1508_vm3 = vweird.f32 %v2562_v56 }
 0x115   : > { %v1513_v52 = vand.u32 2147483648, %v3609_v51  ;;  %v1039_v63 = vsub.f32 1.0, %v1038_v44  ;;  %v1046_v2 = vand.u32 2147483647, %v3616_v58  ;;  %v1048_v7 = vand.u32 2147483648, %v3616_v58  ;;  %vm1509_vm5 = vmor %vm1507_vm2, %vm1508_vm3 }
 0x116   : > { %v1505_v37 = vmul.f32 %v2562_v56, %v1504_v4  ;;  %2571 = vrcp.f32 %v3666_v21  ;;  %v1495_v22 = vsel %vm3692_vm4, %v3613_v55, %v1491_v23  ;;  %v3702_v10 = vadd.f32 1.0, %v2566_v12 }
 0x117   : > { %v3704_v41 = vadd.f32 1.0, %v2568_v60  ;;  %v1499_v11 = vor.u32 1.1754944e-38, %v1498_v6  ;;  %v1035_v13 = vsel %vm3678_vm1, %v1034_v30, %v1030_v8  ;;  %vm1512_vm6 = vcmp.eq.f32.partialorder %v1511_v29, 8.507059e+37 }
 0x118   : > { %v1506_v50 = vadd.f32 %v2562_v56, %v1505_v37  ;;  %vm1042_vm7 = vweird.f32 %v3616_v58  ;;  %v561_v15 = vpop.f32.mrf.mxu2  ;;  %v3711_v28 = vpop.eup %2569  ;;  %v1514_v55 = vor.u32 1.1754944e-38, %v1513_v52  ;;  %v1528_v0 = vand.u32 2147483648, %v3643_v24 }
 0x119   : > { %2573 = vrcp.f32 %v3702_v10  ;;  %v1500_v17 = vsel %vm3651_vm11, %v1499_v11, %v1495_v22  ;;  %v1040_v14 = vmul.f32 %v3659_v20, %v1039_v63  ;;  %v1049_v26 = vor.u32 1.1754944e-38, %v1048_v7 }
 0x11a   : > { %v1510_v47 = vsel %vm1509_vm5, %v2562_v56, %v1506_v50  ;;  %v3720_v51 = vadd.f32 %v3516_v59, %v3582_v57  ;;  %v1828_v46 = vmul.f32 %v1035_v13, %v3440_v32  ;;  %vm3723_vm8 = vcmp.eq.f32.partialorder %v1046_v2, 8.507059e+37  ;;  %v483_v1 = vpop.f32.mrf.mxu0 }
 0x11b   : > { %v1515_v39 = vsel %vm1512_vm6, %v1514_v55, %v1510_v47  ;;  %2575 = vrcp.f32 %v3704_v41  ;;  %v3730_v42 = vadd.f32 %v3516_v59, %v3611_v54  ;;  %vm1043_vm9 = vweird.f32 %v3659_v20 }
 0x11c   : > { %v2572_v25 = vpop.eup %2571  ;;  %v1518_v57 = vmul.f32 %v3711_v28, %v3643_v24  ;;  %v1526_v5 = vand.u32 2147483647, %v3643_v24  ;;  %v1061_v32 = vand.u32 2147483647, %v3666_v21  ;;  %v1859_v3 = vmul.f32 %v1500_v17, %v3428_v18  ;;  %vm3750_vm11 = vmor %vm1042_vm7, %vm1043_vm9 }
 0x11d   : > { %v3738_v56 = vor.u32 1.1754944e-38, %v1528_v0  ;;  %v1053_v6 = vmul.f32 %v2572_v25, %v3666_v21  ;;  %vm1057_vm10 = vweird.f32 %v3666_v21  ;;  %v1860_v54 = vmul.f32 %v1515_v39, %v3520_v16 }
 0x11e   : > { %v1041_v9 = vadd.f32 %v3659_v20, %v1040_v14  ;;  %v1063_v35 = vand.u32 2147483648, %v3666_v21  ;;  %v2395_v34 = vmul.f32 -1.442695, %v3720_v51  ;;  %v2364_v23 = vmul.f32 -1.442695, %v3730_v42 }
 0x11f   : > { %v3746_v48 = vpop.eup %2573  ;;  %v1054_v43 = vsub.f32 1.0, %v1053_v6  ;;  %v1886_v4 = vpack.c.bf16 %v1828_v46, %v3662_v19  ;;  %v3758_v16 = vadd.f32 %v3516_v59, %v3639_v61  ;;  %v1519_v44 = vsub.f32 1.0, %v1518_v57 }
 0x120   : > { %vm1523_vm12 = vweird.f32 %v3711_v28  ;;  %vm3761_vm13 = vcmp.eq.f32.partialorder %v1061_v32, 8.507059e+37  ;;  %v1533_v58 = vmul.f32 %v3746_v48, %v3702_v10  ;;  %vm1058_vm14 = vweird.f32 %v2572_v25  ;;  %v563_v8 = vpop.f32.mrf.mxu2 }
 0x121   : > { %v3767_v62 = vpop.eup %2575  ;;  %v1055_v27 = vmul.f32 %v2572_v25, %v1054_v43  ;;  %2577 = vpow2.f32 %v2395_v34  ;;  %2418 = vmatmul.msk.bf16.gmra.mxu1 %vm335_vm0, %v1886_v4  ;;  %v2396_v61 = vmul.f32 -1.442695, %v3758_v16  ;;  %v1045_v19 = vsel %vm3750_vm11, %v3659_v20, %v1041_v9  ;;  %vm1059_vm1 = vmor %vm1057_vm10, %vm1058_vm14 }
 0x122   : > { %vm1522_vm15 = vweird.f32 %v3643_v24  ;;  %v1064_v30 = vor.u32 1.1754944e-38, %v1063_v35  ;;  %v1534_v29 = vsub.f32 1.0, %v1533_v58  ;;  %v1068_v60 = vmul.f32 %v3767_v62, %v3704_v41 }
 0x123   : > { %v1056_v37 = vadd.f32 %v2572_v25, %v1055_v27  ;;  %2579 = vpow2.f32 %v2364_v23  ;;  %v3779_v52 = vadd.f32 %v3516_v59, %v3668_v36  ;;  %v1902_v33 = vpack.c.bf16 %v1860_v54, %v1859_v3  ;;  %vm3823_vm5 = vmor %vm1522_vm15, %vm1523_vm12 }
 0x124   : > { %v1520_v63 = vmul.f32 %v3711_v28, %v1519_v44  ;;  %v1069_v20 = vsub.f32 1.0, %v1068_v60  ;;  %2581 = vpow2.f32 %v2396_v61  ;;  %v3786_v2 = vadd.f32 %v3516_v59, %v561_v15  ;;  %v486_v15 = vpop.f32.mrf.mxu0 }
 0x125   : > { %v1060_v7 = vsel %vm1059_vm1, %v2572_v25, %v1056_v37  ;;  %vm1072_vm2 = vweird.f32 %v3704_v41  ;;  %v2365_v22 = vmul.f32 -1.442695, %v3779_v52  ;;  %2434 = vmatmul.msk.bf16.gmra.mxu3 %vm335_vm0, %v1902_v33  ;;  %v3792_v36 = vadd.f32 %v3516_v59, %v483_v1 }
 0x126   : > { %v1050_v50 = vsel %vm3723_vm8, %v1049_v26, %v1045_v19  ;;  %v1065_v21 = vsel %vm3761_vm13, %v1064_v30, %v1060_v7  ;;  %v1535_v11 = vmul.f32 %v3746_v48, %v1534_v29  ;;  %v2397_v13 = vmul.f32 -1.442695, %v3786_v2 }
 0x127   : > { %v2578_v47 = vpop.eup %2577  ;;  %v1070_v55 = vmul.f32 %v3767_v62, %v1069_v20  ;;  %2583 = vpow2.f32 %v2365_v22  ;;  %v2366_v0 = vmul.f32 -1.442695, %v3792_v36  ;;  %v3803_v17 = vadd.f32 %v3516_v59, %v563_v8 }
 0x128   : > { %v1521_v14 = vadd.f32 %v3711_v28, %v1520_v63  ;;  %v1076_v26 = vand.u32 2147483647, %v3704_v41  ;;  %v3807_v46 = vadd.f32 1.0, %v2578_v47  ;;  %2585 = vpow2.f32 %v2397_v13  ;;  %v3844_v43 = vpop.f32.mrf.mxu2 }
 0x129   : > { %v2580_v39 = vpop.eup %2579  ;;  %v1830_v31 = vmul.f32 %v1065_v21, %v3574_v38  ;;  %vm1073_vm3 = vweird.f32 %v3767_v62  ;;  %2587 = vpow2.f32 %v2366_v0  ;;  %v3812_v25 = vadd.f32 %v3516_v59, %v486_v15 }
 0x12a   : > { %v2582_v57 = vpop.eup %2581  ;;  %v1536_v32 = vadd.f32 %v3746_v48, %v1535_v11  ;;  %vm1538_vm4 = vweird.f32 %v3746_v48  ;;  %v1078_v1 = vand.u32 2147483648, %v3704_v41  ;;  %2589 = vrcp.f32 %v3807_v46  ;;  %vm3838_vm7 = vmor %vm1072_vm2, %vm1073_vm3 }
 0x12b   : > { %v1829_v3 = vmul.f32 %v1050_v50, %v3524_v53  ;;  %v1071_v6 = vadd.f32 %v3767_v62, %v1070_v55  ;;  %v3828_v54 = vadd.f32 1.0, %v2580_v39  ;;  %v2398_v9 = vmul.f32 -1.442695, %v3803_v17 }
 0x12c   : > { %vm1537_vm6 = vweird.f32 %v3702_v10  ;;  %v1541_v35 = vand.u32 2147483647, %v3702_v10  ;;  %v1543_v53 = vand.u32 2147483648, %v3702_v10  ;;  %v3842_v18 = vadd.f32 1.0, %v2582_v57 }
 0x12d   : > { %v2584_v23 = vpop.eup %2583  ;;  %vm3848_vm8 = vmor %vm1537_vm6, %vm1538_vm4  ;;  %vm3852_vm9 = vcmp.eq.f32.partialorder %v1076_v26, 8.507059e+37  ;;  %2591 = vrcp.f32 %v3828_v54  ;;  %v1887_v41 = vpack.c.bf16 %v1830_v31, %v1829_v3  ;;  %v2367_v44 = vmul.f32 -1.442695, %v3812_v25 }
 0x12e   : > { %v2586_v12 = vpop.eup %2585  ;;  %v1525_v58 = vsel %vm3823_vm5, %v3711_v28, %v1521_v14  ;;  %v1540_v27 = vsel %vm3848_vm8, %v3746_v48, %v1536_v32  ;;  %v1079_v61 = vor.u32 1.1754944e-38, %v1078_v1  ;;  %2593 = vrcp.f32 %v3842_v18  ;;  %v3876_v48 = vpop.f32.mrf.mxu0 }
 0x12f   : > { %v2588_v19 = vpop.eup %2587  ;;  %v1075_v30 = vsel %vm3838_vm7, %v3767_v62, %v1071_v6  ;;  %v3868_v29 = vadd.f32 1.0, %v2584_v23  ;;  %v3870_v60 = vadd.f32 1.0, %v2586_v12  ;;  %2595 = vpow2.f32 %v2398_v9 }
 0x130   : > { %v3872_v8 = vpop.eup %2589  ;;  %vm1527_vm10 = vcmp.eq.f32.partialorder %v1526_v5, 8.507059e+37  ;;  %v1544_v28 = vor.u32 1.1754944e-38, %v1543_v53  ;;  %vm1542_vm11 = vcmp.eq.f32.partialorder %v1541_v35, 8.507059e+37  ;;  %2597 = vpow2.f32 %v2367_v44  ;;  %v3908_v14 = vpop.f32.mrf.mxu2 }
 0x131   : > { %v1530_v37 = vsel %vm1527_vm10, %v3738_v56, %v1525_v58  ;;  %v1548_v33 = vmul.f32 %v3872_v8, %v3807_v46  ;;  %2419 = vmatmul.msk.bf16.gmra.mxu1 %vm335_vm0, %v1887_v41  ;;  %v1080_v63 = vsel %vm3852_vm9, %v1079_v61, %v1075_v30  ;;  %2599 = vrcp.f32 %v3868_v29 }
 0x132   : > { %v1545_v62 = vsel %vm1542_vm11, %v1544_v28, %v1540_v27  ;;  %v3885_v24 = vadd.f32 1.0, %v2588_v19  ;;  %v1556_v7 = vand.u32 2147483647, %v3807_v46  ;;  %v1558_v56 = vand.u32 2147483648, %v3807_v46 }
 0x133   : > { %v2592_v5 = vpop.eup %2591  ;;  %v1549_v20 = vsub.f32 1.0, %v1548_v33  ;;  %2601 = vrcp.f32 %v3870_v60  ;;  %v3893_v50 = vmul.f32 %v1530_v37, %v3565_v40  ;;  %v3897_v13 = vmul.f32 %v1545_v62, %v3593_v49 }
 0x134   : > { %v3890_v22 = vpop.eup %2593  ;;  %v1083_v21 = vmul.f32 %v2592_v5, %v3828_v54  ;;  %vm1552_vm12 = vweird.f32 %v3807_v46  ;;  %v3904_v55 = vmul.f32 %v1080_v63, %v3599_v45  ;;  %v1091_v40 = vand.u32 2147483647, %v3828_v54 }
 0x135   : > { %v2596_v11 = vpop.eup %2595  ;;  %v1550_v15 = vmul.f32 %v3872_v8, %v1549_v20  ;;  %v1563_v47 = vmul.f32 %v3890_v22, %v3842_v18  ;;  %2603 = vrcp.f32 %v3885_v24  ;;  %vm3910_vm13 = vcmp.eq.f32.partialorder %v1556_v7, 8.507059e+37 }
 0x136   : > { %v1084_v0 = vsub.f32 1.0, %v1083_v21  ;;  %v2598_v26 = vpop.eup %2597  ;;  %v1559_v39 = vor.u32 1.1754944e-38, %v1558_v56  ;;  %vm1087_vm14 = vweird.f32 %v3828_v54  ;;  %v1093_v31 = vand.u32 2147483648, %v3828_v54  ;;  %v3934_v4 = vpop.f32.mrf.mxu0 }
 0x137   : > { %v1564_v57 = vsub.f32 1.0, %v1563_v47  ;;  %v3916_v45 = vpop.eup %2599  ;;  %vm1088_vm15 = vweird.f32 %v2592_v5  ;;  %v1571_v1 = vand.u32 2147483647, %v3842_v18  ;;  %v3919_v3 = vadd.f32 1.0, %v2596_v11 }
 0x138   : > { %v1085_v32 = vmul.f32 %v2592_v5, %v1084_v0  ;;  %v1551_v6 = vadd.f32 %v3872_v8, %v1550_v15  ;;  %vm1553_vm1 = vweird.f32 %v3872_v8  ;;  %v1098_v35 = vmul.f32 %v3916_v45, %v3868_v29  ;;  %vm3938_vm4 = vmor %vm1087_vm14, %vm1088_vm15 }
 0x139   : > { %v3921_v38 = vpop.eup %2601  ;;  %v1565_v9 = vmul.f32 %v3890_v22, %v1564_v57  ;;  %vm3928_vm2 = vcmp.eq.f32.partialorder %v1091_v40, 8.507059e+37  ;;  %vm1567_vm3 = vweird.f32 %v3842_v18  ;;  %v1573_v23 = vand.u32 2147483648, %v3842_v18  ;;  %vm3951_vm6 = vmor %vm1552_vm12, %vm1553_vm1  ;;  %v571_v18 = vpop.f32.mrf.mxu2 }
 0x13a   : > { %v1086_v53 = vadd.f32 %v2592_v5, %v1085_v32  ;;  %v1094_v41 = vor.u32 1.1754944e-38, %v1093_v31  ;;  %vm1568_vm5 = vweird.f32 %v3890_v22  ;;  %v1578_v44 = vmul.f32 %v3921_v38, %v3870_v60  ;;  %v3972_v20 = vpop.f32.mrf.mxu1 }
 0x13b   : > { %v3945_v12 = vadd.f32 1.0, %v2598_v26  ;;  %v3947_v58 = vpop.eup %2603  ;;  %v1566_v61 = vadd.f32 %v3890_v22, %v1565_v9  ;;  %v1099_v19 = vsub.f32 1.0, %v1098_v35  ;;  %2605 = vrcp.f32 %v3919_v3  ;;  %vm3980_vm8 = vmor %vm1567_vm3, %vm1568_vm5 }
 0x13c   : > { %v1090_v54 = vsel %vm3938_vm4, %v2592_v5, %v1086_v53  ;;  %v1555_v30 = vsel %vm3951_vm6, %v3872_v8, %v1551_v6  ;;  %vm3962_vm7 = vcmp.eq.f32.partialorder %v1571_v1, 8.507059e+37  ;;  %v1108_v46 = vand.u32 2147483648, %v3868_v29 }
 0x13d   : > { %v1113_v37 = vmul.f32 %v3947_v58, %v3885_v24  ;;  %v1574_v33 = vor.u32 1.1754944e-38, %v1573_v23  ;;  %v1106_v62 = vand.u32 2147483647, %v3868_v29  ;;  %v1588_v63 = vand.u32 2147483648, %v3870_v60 }
 0x13e   : > { %v1121_v5 = vand.u32 2147483647, %v3885_v24  ;;  %v1095_v8 = vsel %vm3928_vm2, %v1094_v41, %v1090_v54  ;;  %v1579_v56 = vsub.f32 1.0, %v1578_v44  ;;  %v1123_v11 = vand.u32 2147483648, %v3885_v24  ;;  %v493_v53 = vpop.f32.mrf.mxu0 }
 0x13f   : > { %v1114_v21 = vsub.f32 1.0, %v1113_v37  ;;  %v1560_v15 = vsel %vm3910_vm13, %v1559_v39, %v1555_v30  ;;  %v1570_v47 = vsel %vm3980_vm8, %v3890_v22, %v1566_v61  ;;  %v1100_v0 = vmul.f32 %v3916_v45, %v1099_v19 }
 0x140   : > { %2607 = vrcp.f32 %v3945_v12  ;;  %vm1102_vm9 = vweird.f32 %v3868_v29  ;;  %v3993_v40 = vor.u32 1.1754944e-38, %v1108_v46  ;;  %v1586_v26 = vand.u32 2147483647, %v3870_v60 }
 0x141   : > { %v1115_v31 = vmul.f32 %v3947_v58, %v1114_v21  ;;  %v3997_v57 = vpop.eup %2605  ;;  %v1832_v49 = vmul.f32 %v1095_v8, %v3730_v42  ;;  %vm1103_vm10 = vweird.f32 %v3916_v45  ;;  %v4001_v22 = vor.u32 1.1754944e-38, %v1588_v63  ;;  %v573_v8 = vpop.f32.mrf.mxu2 }
 0x142   : > { %vm1117_vm11 = vweird.f32 %v3885_v24  ;;  %v4005_v39 = vmul.f32 %v1560_v15, %v3720_v51  ;;  %v1575_v32 = vsel %vm3962_vm7, %v1574_v33, %v1570_v47  ;;  %v1580_v1 = vmul.f32 %v3921_v38, %v1579_v56  ;;  %vm4041_vm1 = vmor %vm1102_vm9, %vm1103_vm10  ;;  %v4082_v24 = vld [vmem:[%s5168_s4] ss:$0 sm:$0xff] }
 0x143   : > { %v1593_v6 = vmul.f32 %v3997_v57, %v3919_v3  ;;  %v4013_v9 = vadd.f32 %v3916_v45, %v1100_v0  ;;  %vm4015_vm12 = vcmp.eq.f32.partialorder %v1106_v62, 8.507059e+37  ;;  %vm1118_vm13 = vweird.f32 %v3947_v58 }
 0x144   : > { %vm4020_vm14 = vcmp.eq.f32.partialorder %v1121_v5, 8.507059e+37  ;;  %v1124_v35 = vor.u32 1.1754944e-38, %v1123_v11  ;;  %vm1583_vm15 = vweird.f32 %v3921_v38  ;;  %v1116_v34 = vadd.f32 %v3947_v58, %v1115_v31  ;;  %vm4064_vm4 = vmor %vm1117_vm11, %vm1118_vm13 }
 0x145   : > { %v1594_v23 = vsub.f32 1.0, %v1593_v6  ;;  %v1903_v10 = vpack.c.bf16 %v3897_v13, %v3893_v50  ;;  %v4030_v41 = vadd.f32 %v3516_v59, %v3844_v43  ;;  %v4035_v27 = vmul.f32 %v1575_v32, %v3758_v16  ;;  %v2030_v13 = vpop.f32.mrf.mxu1 }
 0x146   : > { %v4032_v44 = vpop.eup %2607  ;;  %vm1597_vm2 = vweird.f32 %v3919_v3  ;;  %v4048_v50 = vadd.f32 %v3516_v59, %v3876_v48  ;;  %v1888_v43 = vpack.c.bf16 %v1832_v49, %v3904_v55  ;;  %v4052_v16 = vadd.f32 %v3921_v38, %v1580_v1 }
 0x147   : > { %vm1582_vm3 = vweird.f32 %v3870_v60  ;;  %v1595_v29 = vmul.f32 %v3997_v57, %v1594_v23  ;;  %v1601_v61 = vand.u32 2147483647, %v3919_v3  ;;  %v1128_v19 = vmul.f32 %v4032_v44, %v3945_v12  ;;  %2435 = vmatmul.msk.bf16.gmra.mxu3 %vm335_vm0, %v1903_v10  ;;  %v2108_v15 = vpop.f32.mrf.mxu3 }
 0x148   : > { %v2399_v55 = vmul.f32 -1.442695, %v4030_v41  ;;  %v2368_v30 = vmul.f32 -1.442695, %v4048_v50  ;;  %2420 = vmatmul.msk.bf16.gmra.mxu1 %vm335_vm0, %v1888_v43  ;;  %v4073_v28 = vadd.f32 %v3516_v59, %v3908_v14  ;;  %v4077_v46 = vadd.f32 %v3516_v59, %v3934_v4  ;;  %vm4145_vm10 = vmor %vm1582_vm3, %vm1583_vm15 }
 0x149   : > { %v1105_v37 = vsel %vm4041_vm1, %v3916_v45, %v4013_v9  ;;  %v1120_v14 = vsel %vm4064_vm4, %v3947_v58, %v1116_v34  ;;  %v1129_v33 = vsub.f32 1.0, %v1128_v19  ;;  %v4092_v62 = vadd.f32 %v3516_v59, %v571_v18  ;;  %v576_v48 = vpop.f32.mrf.mxu2 }
 0x14a   : > { %2609 = vpow2.f32 %v2399_v55  ;;  %v2400_v4 = vmul.f32 -1.442695, %v4073_v28  ;;  %v2369_v63 = vmul.f32 -1.442695, %v4077_v46  ;;  %v4097_v5 = vadd.f32 %v3516_v59, %v493_v53 }
 0x14b   : > { %v1596_v7 = vadd.f32 %v3997_v57, %v1595_v29  ;;  %vm1598_vm5 = vweird.f32 %v3997_v57  ;;  %2611 = vpow2.f32 %v2368_v30  ;;  %v2401_v45 = vmul.f32 -1.442695, %v4092_v62 }
 0x14c   : > { %vm4109_vm6 = vcmp.eq.f32.partialorder %v1586_v26, 8.507059e+37  ;;  %v1130_v56 = vmul.f32 %v4032_v44, %v1129_v33  ;;  %2613 = vpow2.f32 %v2400_v4  ;;  %v2370_v21 = vmul.f32 -1.442695, %v4097_v5  ;;  %v496_v26 = vpop.f32.mrf.mxu0  ;;  %vm4135_vm9 = vmor %vm1597_vm2, %vm1598_vm5 }
 0x14d   : > { %v2029_v11 = vadd.f32 %v4082_v24, %v3972_v20  ;;  %v1125_v47 = vsel %vm4020_vm14, %v1124_v35, %v1120_v14  ;;  %v1603_v0 = vand.u32 2147483648, %v3919_v3  ;;  %vm1132_vm7 = vweird.f32 %v3945_v12 }
 0x14e   : > { %2615 = vpow2.f32 %v2369_v63  ;;  %vm1133_vm8 = vweird.f32 %v4032_v44  ;;  %v4125_v18 = vadd.f32 %v3516_v59, %v573_v8  ;;  %v2031_v20 = vadd.f32 %v4082_v24, %v2030_v13 }
 0x14f   : > { %2617 = vpow2.f32 %v2401_v45  ;;  %2188 = vst.msk [vmem:[%s4107_s25] sm:$0xff] %vm335_vm0, %v2029_v11  ;;  %v1110_v31 = vsel %vm4015_vm12, %v3993_v40, %v1105_v37  ;;  %v1138_v32 = vand.u32 2147483648, %v3945_v12  ;;  %v2109_v1 = vadd.f32 %v4082_v24, %v2108_v15  ;;  %v2033_v6 = vpop.f32.mrf.mxu1  ;;  %vm4165_vm11 = vmor %vm1132_vm7, %vm1133_vm8 }
 0x150   : > { %2619 = vpow2.f32 %v2370_v21  ;;  %v2610_v9 = vpop.eup %2609  ;;  %v1834_v3 = vmul.f32 %v1125_v47, %v3792_v36  ;;  %v1600_v42 = vsel %vm4135_vm9, %v3997_v57, %v1596_v7  ;;  %v1131_v51 = vadd.f32 %v4032_v44, %v1130_v56  ;;  %2189 = vst.msk [vmem:[%s4107_s25 + $0x8] sm:$0xff] %vm335_vm0, %v2031_v20  ;;  %v4228_v47 = vpop.f32.mrf.mxu3 }
 0x151   : > { %v1136_v35 = vand.u32 2147483647, %v3945_v12  ;;  %v2612_v53 = vpop.eup %2611  ;;  %v1585_v60 = vsel %vm4145_vm10, %v3921_v38, %v4052_v16  ;;  %v1604_v34 = vor.u32 1.1754944e-38, %v1603_v0  ;;  %v4169_v57 = vadd.f32 1.0, %v2610_v9  ;;  %2220 = vst.msk [vmem:[%s4107_s25 + $0x100] sm:$0xff] %vm335_vm0, %v2109_v1 }
 0x152   : > { %v2034_v23 = vadd.f32 %v4082_v24, %v2033_v6  ;;  %v2614_v10 = vpop.eup %2613  ;;  %v1833_v54 = vmul.f32 %v1110_v31, %v3779_v52  ;;  %vm1602_vm12 = vcmp.eq.f32.partialorder %v1601_v61, 8.507059e+37  ;;  %v4175_v38 = vadd.f32 1.0, %v2612_v53 }
 0x153   : > { %v2402_v43 = vmul.f32 -1.442695, %v4125_v18  ;;  %v1605_v12 = vsel %vm1602_vm12, %v1604_v34, %v1600_v42  ;;  %v1139_v16 = vor.u32 1.1754944e-38, %v1138_v32  ;;  %2621 = vrcp.f32 %v4169_v57 }
 0x154   : > { %v2616_v13 = vpop.eup %2615  ;;  %v1904_v29 = vpack.c.bf16 %v4035_v27, %v4005_v39  ;;  %2190 = vst.msk [vmem:[%s4107_s25 + $0x10] sm:$0xff] %vm335_vm0, %v2034_v23  ;;  %v1135_v52 = vsel %vm4165_vm11, %v4032_v44, %v1131_v51  ;;  %vm1137_vm13 = vcmp.eq.f32.partialorder %v1136_v35, 8.507059e+37  ;;  %2623 = vrcp.f32 %v4175_v38  ;;  %v498_v8 = vpop.f32.mrf.mxu0 }
 0x155   : > { %v2618_v19 = vpop.eup %2617  ;;  %v1889_v61 = vpack.c.bf16 %v1834_v3, %v1833_v54  ;;  %v1590_v30 = vsel %vm4109_vm6, %v4001_v22, %v1585_v60  ;;  %v4190_v37 = vadd.f32 1.0, %v2614_v10  ;;  %v4192_v39 = vadd.f32 1.0, %v2616_v13 }
 0x156   : > { %v2620_v55 = vpop.eup %2619  ;;  %v4195_v27 = vmul.f32 %v1605_v12, %v3803_v17  ;;  %v4197_v14 = vadd.f32 1.0, %v2618_v19  ;;  %2625 = vpow2.f32 %v2402_v43  ;;  %v4200_v44 = vadd.f32 %v3516_v59, %v496_v26  ;;  %v4271_v12 = vpop.f32.mrf.mxu2 }
 0x157   : > { %v1140_v33 = vsel %vm1137_vm13, %v1139_v16, %v1135_v52  ;;  %2627 = vrcp.f32 %v4190_v37  ;;  %2436 = vmatmul.msk.bf16.gmra.mxu3 %vm335_vm0, %v1904_v29  ;;  %v4205_v22 = vadd.f32 %v3516_v59, %v576_v48  ;;  %v4208_v4 = vmul.f32 %v1590_v30, %v3786_v2  ;;  %v4241_v1 = vpop.f32.mrf.mxu1 }
 0x158   : > { %v1618_v17 = vand.u32 2147483648, %v4169_v57  ;;  %2629 = vrcp.f32 %v4192_v39  ;;  %v4212_v63 = vadd.f32 1.0, %v2620_v55  ;;  %2421 = vmatmul.msk.bf16.gmra.mxu1 %vm335_vm0, %v1889_v61  ;;  %v1151_v45 = vand.u32 2147483647, %v4175_v38 }
 0x159   : > { %v4215_v7 = vpop.eup %2621  ;;  %v1153_v58 = vand.u32 2147483648, %v4175_v38  ;;  %2631 = vrcp.f32 %v4197_v14  ;;  %v4221_v2 = vmul.f32 %v1140_v33, %v3812_v25  ;;  %v2371_v11 = vmul.f32 -1.442695, %v4200_v44 }
 0x15a   : > { %v2624_v56 = vpop.eup %2623  ;;  %v1608_v21 = vmul.f32 %v4215_v7, %v4169_v57  ;;  %v1905_v15 = vpack.c.bf16 %v4195_v27, %v4208_v4  ;;  %v1616_v0 = vand.u32 2147483647, %v4169_v57  ;;  %v2403_v20 = vmul.f32 -1.442695, %v4205_v22 }
 0x15b   : > { %v1143_v26 = vmul.f32 %v2624_v56, %v4175_v38  ;;  %v4234_v31 = vadd.f32 %v3516_v59, %v498_v8  ;;  %vm1612_vm14 = vweird.f32 %v4169_v57  ;;  %v4237_v32 = vor.u32 1.1754944e-38, %v1618_v17 }
 0x15c   : > { %v2626_v25 = vpop.eup %2625  ;;  %v1609_v49 = vsub.f32 1.0, %v1608_v21  ;;  %vm1147_vm15 = vweird.f32 %v4175_v38  ;;  %2633 = vrcp.f32 %v4212_v63  ;;  %vm4245_vm1 = vcmp.eq.f32.partialorder %v1151_v45, 8.507059e+37 }
 0x15d   : > { %v4243_v6 = vpop.eup %2627  ;;  %v1144_v9 = vsub.f32 1.0, %v1143_v26  ;;  %v1154_v59 = vor.u32 1.1754944e-38, %v1153_v58  ;;  %v1631_v3 = vand.u32 2147483647, %v4190_v37  ;;  %v1633_v53 = vand.u32 2147483648, %v4190_v37  ;;  %v4289_v58 = vpop.f32.mrf.mxu0 }
 0x15e   : > { %v4250_v42 = vpop.eup %2629  ;;  %v1610_v51 = vmul.f32 %v4215_v7, %v1609_v49  ;;  %v1623_v35 = vmul.f32 %v4243_v6, %v4190_v37  ;;  %vm1162_vm2 = vweird.f32 %v4192_v39  ;;  %vm1148_vm3 = vweird.f32 %v2624_v56  ;;  %v581_v10 = vpop.f32.mrf.mxu2 }
 0x15f   : > { %v4257_v60 = vpop.eup %2631  ;;  %v1145_v34 = vmul.f32 %v2624_v56, %v1144_v9  ;;  %vm1627_vm4 = vweird.f32 %v4190_v37  ;;  %v1158_v36 = vmul.f32 %v4250_v42, %v4192_v39  ;;  %v1166_v23 = vand.u32 2147483647, %v4192_v39  ;;  %vm1149_vm7 = vmor %vm1147_vm15, %vm1148_vm3 }
 0x160   : > { %vm1613_vm5 = vweird.f32 %v4215_v7  ;;  %vm4264_vm6 = vcmp.eq.f32.partialorder %v1616_v0, 8.507059e+37  ;;  %v1624_v54 = vsub.f32 1.0, %v1623_v35  ;;  %v1168_v43 = vand.u32 2147483648, %v4192_v39  ;;  %v4317_v57 = vpop.f32.mrf.mxu1 }
 0x161   : > { %v1638_v13 = vmul.f32 %v4257_v60, %v4197_v14  ;;  %v1611_v16 = vadd.f32 %v4215_v7, %v1610_v51  ;;  %v1146_v29 = vadd.f32 %v2624_v56, %v1145_v34  ;;  %v1159_v19 = vsub.f32 1.0, %v1158_v36  ;;  %vm4305_vm12 = vmor %vm1612_vm14, %vm1613_vm5 }
 0x162   : > { %2635 = vpow2.f32 %v2371_v11  ;;  %v4274_v52 = vpop.eup %2633  ;;  %v1625_v61 = vmul.f32 %v4243_v6, %v1624_v54  ;;  %v4280_v55 = vadd.f32 1.0, %v2626_v25  ;;  %vm4282_vm8 = vcmp.eq.f32.partialorder %v1631_v3, 8.507059e+37 }
 0x163   : > { %v1639_v48 = vsub.f32 1.0, %v1638_v13  ;;  %2637 = vpow2.f32 %v2403_v20  ;;  %v1150_v30 = vsel %vm1149_vm7, %v2624_v56, %v1146_v29  ;;  %v1634_v17 = vor.u32 1.1754944e-38, %v1633_v53  ;;  %v4299_v56 = vpop.f32.mrf.mxu3 }
 0x164   : > { %v1160_v8 = vmul.f32 %v4250_v42, %v1159_v19  ;;  %v1173_v45 = vmul.f32 %v4274_v52, %v4212_v63  ;;  %v1155_v38 = vsel %vm4245_vm1, %v1154_v59, %v1150_v30  ;;  %vm1163_vm9 = vweird.f32 %v4250_v42 }
 0x165   : > { %vm4294_vm10 = vcmp.eq.f32.partialorder %v1166_v23, 8.507059e+37  ;;  %vm1642_vm11 = vweird.f32 %v4197_v14  ;;  %v1626_v0 = vadd.f32 %v4243_v6, %v1625_v61  ;;  %vm1628_vm13 = vweird.f32 %v4243_v6  ;;  %vm4324_vm14 = vmor %vm1162_vm2, %vm1163_vm9 }
 0x166   : > { %v1640_v26 = vmul.f32 %v4257_v60, %v1639_v48  ;;  %v1174_v20 = vsub.f32 1.0, %v1173_v45  ;;  %v1615_v25 = vsel %vm4305_vm12, %v4215_v7, %v1611_v16  ;;  %v1161_v49 = vadd.f32 %v4250_v42, %v1160_v8  ;;  %vm4339_vm15 = vmor %vm1627_vm4, %vm1628_vm13 }
 0x167   : > { %v1169_v9 = vor.u32 1.1754944e-38, %v1168_v43  ;;  %2639 = vrcp.f32 %v4280_v55  ;;  %v1836_v59 = vmul.f32 %v1155_v38, %v4048_v50  ;;  %v1646_v7 = vand.u32 2147483647, %v4197_v14  ;;  %2437 = vmatmul.msk.bf16.gmra.mxu3 %vm335_vm0, %v1905_v15 }
 0x168   : > { %v2636_v40 = vpop.eup %2635  ;;  %v1648_v51 = vand.u32 2147483648, %v4197_v14  ;;  %v1175_v35 = vmul.f32 %v4274_v52, %v1174_v20  ;;  %vm1643_vm1 = vweird.f32 %v4257_v60  ;;  %vm1177_vm2 = vweird.f32 %v4212_v63 }
 0x169   : > { %v2638_v50 = vpop.eup %2637  ;;  %v1181_v53 = vand.u32 2147483647, %v4212_v63  ;;  %v1183_v34 = vand.u32 2147483648, %v4212_v63  ;;  %v1620_v27 = vsel %vm4264_vm6, %v4237_v32, %v1615_v25  ;;  %v1630_v37 = vsel %vm4339_vm15, %v4243_v6, %v1626_v0  ;;  %vm4379_vm5 = vmor %vm1642_vm11, %vm1643_vm1 }
 0x16a   : > { %v1641_v4 = vadd.f32 %v4257_v60, %v1640_v26  ;;  %vm1178_vm3 = vweird.f32 %v4274_v52  ;;  %v1165_v15 = vsel %vm4324_vm14, %v4250_v42, %v1161_v49  ;;  %v1176_v36 = vadd.f32 %v4274_v52, %v1175_v35  ;;  %v2040_v26 = vpop.f32.mrf.mxu1 }
 0x16b   : > { %v4359_v23 = vadd.f32 1.0, %v2636_v40  ;;  %v4361_v54 = vadd.f32 1.0, %v2638_v50  ;;  %vm4363_vm4 = vcmp.eq.f32.partialorder %v1646_v7, 8.507059e+37  ;;  %v2372_v6 = vmul.f32 -1.442695, %v4234_v31  ;;  %vm4395_vm7 = vmor %vm1177_vm2, %vm1178_vm3  ;;  %v2115_v8 = vpop.f32.mrf.mxu3 }
 0x16c   : > { %v1890_v43 = vpack.c.bf16 %v1836_v59, %v4221_v2  ;;  %v2111_v13 = vadd.f32 %v4082_v24, %v4228_v47  ;;  %v1635_v16 = vsel %vm4282_vm8, %v1634_v17, %v1630_v37  ;;  %v1649_v19 = vor.u32 1.1754944e-38, %v1648_v51 }
 0x16d   : > { %v4371_v42 = vpop.eup %2639  ;;  %vm4383_vm6 = vcmp.eq.f32.partialorder %v1181_v53, 8.507059e+37  ;;  %2641 = vrcp.f32 %v4359_v23  ;;  %v1867_v2 = vmul.f32 %v1620_v27, %v4030_v41  ;;  %v1170_v47 = vsel %vm4294_vm10, %v1169_v9, %v1165_v15  ;;  %v503_v41 = vpop.f32.mrf.mxu0 }
 0x16e   : > { %v1184_v48 = vor.u32 1.1754944e-38, %v1183_v34  ;;  %v1653_v30 = vmul.f32 %v4371_v42, %v4280_v55  ;;  %2422 = vmatmul.msk.bf16.gmra.mxu1 %vm335_vm0, %v1890_v43  ;;  %2221 = vst.msk [vmem:[%s4107_s25 + $0x108] sm:$0xff] %vm335_vm0, %v2111_v13  ;;  %v1645_v33 = vsel %vm4379_vm5, %v4257_v60, %v1641_v4  ;;  %v1180_v63 = vsel %vm4395_vm7, %v4274_v52, %v1176_v36  ;;  %v4421_v52 = vld [vmem:[%s5166_s2] ss:$0 sm:$0xff]  ;;  %v583_v53 = vpop.f32.mrf.mxu2 }
 0x16f   : > { %vm1657_vm8 = vweird.f32 %v4280_v55  ;;  %v1661_v17 = vand.u32 2147483647, %v4280_v55  ;;  %2643 = vrcp.f32 %v4361_v54  ;;  %v1868_v45 = vmul.f32 %v1635_v16, %v4073_v28 }
 0x170   : > { %v1654_v38 = vsub.f32 1.0, %v1653_v30  ;;  %v1663_v21 = vand.u32 2147483648, %v4280_v55  ;;  %2645 = vpow2.f32 %v2372_v6  ;;  %v4416_v60 = vmul.f32 %v1170_v47, %v4077_v46 }
 0x171   : > { %v4425_v11 = vadd.f32 %v4421_v52, %v4271_v12  ;;  %v4429_v28 = vadd.f32 %v4421_v52, %v4289_v58  ;;  %v2036_v0 = vadd.f32 %v4082_v24, %v4241_v1  ;;  %v1650_v46 = vsel %vm4363_vm4, %v1649_v19, %v1645_v33 }
 0x172   : > { %v1185_v20 = vsel %vm4383_vm6, %v1184_v48, %v1180_v63  ;;  %v1655_v25 = vmul.f32 %v4371_v42, %v1654_v38  ;;  %v2114_v12 = vadd.f32 %v4082_v24, %v4299_v56  ;;  %vm4442_vm9 = vcmp.eq.f32.partialorder %v1661_v17, 8.507059e+37 }
 0x173   : > { %v4440_v49 = vpop.eup %2641  ;;  %v2404_v1 = vmul.f32 -1.442695, %v4425_v11  ;;  %v2373_v9 = vmul.f32 -1.442695, %v4429_v28  ;;  %2191 = vst.msk [vmem:[%s4107_s25 + $0x18] sm:$0xff] %vm335_vm0, %v2036_v0  ;;  %v4451_v40 = vadd.f32 %v4421_v52, %v581_v10  ;;  %v4454_v59 = vadd.f32 %v4421_v52, %v503_v41  ;;  %v2118_v16 = vpop.f32.mrf.mxu3 }
 0x174   : > { %v1664_v3 = vor.u32 1.1754944e-38, %v1663_v21  ;;  %v1188_v56 = vmul.f32 %v4440_v49, %v4359_v23  ;;  %v1906_v7 = vpack.c.bf16 %v1868_v45, %v1867_v2  ;;  %2222 = vst.msk [vmem:[%s4107_s25 + $0x110] sm:$0xff] %vm335_vm0, %v2114_v12  ;;  %v2039_v51 = vadd.f32 %v4082_v24, %v4317_v57 }
 0x175   : > { %v4462_v35 = vpop.eup %2643  ;;  %v1656_v50 = vadd.f32 %v4371_v42, %v1655_v25  ;;  %vm1658_vm10 = vweird.f32 %v4371_v42  ;;  %2647 = vpow2.f32 %v2404_v1  ;;  %v2405_v39 = vmul.f32 -1.442695, %v4451_v40  ;;  %v506_v43 = vpop.f32.mrf.mxu0 }
 0x176   : > { %v2646_v34 = vpop.eup %2645  ;;  %v1838_v27 = vmul.f32 %v1185_v20, %v4097_v5  ;;  %v1189_v37 = vsub.f32 1.0, %v1188_v56  ;;  %v1668_v4 = vmul.f32 %v4462_v35, %v4361_v54  ;;  %v2374_v15 = vmul.f32 -1.442695, %v4454_v59  ;;  %2192 = vst.msk [vmem:[%s4107_s25 + $0x20] sm:$0xff] %vm335_vm0, %v2039_v51  ;;  %vm4479_vm12 = vmor %vm1657_vm8, %vm1658_vm10  ;;  %v586_v58 = vpop.f32.mrf.mxu2 }
 0x177   : > { %vm1192_vm11 = vweird.f32 %v4359_v23  ;;  %v4474_v57 = vadd.f32 1.0, %v2646_v34  ;;  %2649 = vpow2.f32 %v2373_v9  ;;  %v2116_v36 = vadd.f32 %v4082_v24, %v2115_v8  ;;  %2438 = vmatmul.msk.bf16.gmra.mxu3 %vm335_vm0, %v1906_v7 }
 0x178   : > { %v1190_v10 = vmul.f32 %v4440_v49, %v1189_v37  ;;  %v1196_v32 = vand.u32 2147483647, %v4359_v23  ;;  %v1669_v6 = vsub.f32 1.0, %v1668_v4  ;;  %2651 = vpow2.f32 %v2405_v39 }
 0x179   : > { %v1660_v13 = vsel %vm4479_vm12, %v4371_v42, %v1656_v50  ;;  %vm1193_vm13 = vweird.f32 %v4440_v49  ;;  %v1198_v55 = vand.u32 2147483648, %v4359_v23  ;;  %2653 = vrcp.f32 %v4474_v57  ;;  %2223 = vst.msk [vmem:[%s4107_s25 + $0x118] sm:$0xff] %vm335_vm0, %v2116_v36 }
 0x17a   : > { %v1670_v29 = vmul.f32 %v4462_v35, %v1669_v6  ;;  %v1676_v19 = vand.u32 2147483647, %v4361_v54  ;;  %2655 = vpow2.f32 %v2374_v15  ;;  %v1891_v61 = vpack.c.bf16 %v1838_v27, %v4416_v60  ;;  %v4503_v48 = vpop.f32.mrf.mxu1  ;;  %vm4511_vm15 = vmor %vm1192_vm11, %vm1193_vm13 }
 0x17b   : > { %v2648_v2 = vpop.eup %2647  ;;  %v4498_v42 = vmul.f32 %v1650_v46, %v4092_v62  ;;  %v1191_v47 = vadd.f32 %v4440_v49, %v1190_v10  ;;  %vm1673_vm14 = vweird.f32 %v4462_v35  ;;  %v2041_v14 = vadd.f32 %v4082_v24, %v2040_v26  ;;  %v4577_v4 = vpop.f32.mrf.mxu3 }
 0x17c   : > { %v1665_v30 = vsel %vm4442_vm9, %v1664_v3, %v1660_v13  ;;  %v1671_v62 = vadd.f32 %v4462_v35, %v1670_v29  ;;  %v4516_v33 = vadd.f32 1.0, %v2648_v2  ;;  %v4519_v63 = vadd.f32 %v4421_v52, %v583_v53 }
 0x17d   : > { %v2650_v17 = vpop.eup %2649  ;;  %vm4521_vm1 = vcmp.eq.f32.partialorder %v1196_v32, 8.507059e+37  ;;  %vm1672_vm2 = vweird.f32 %v4361_v54  ;;  %v1678_v23 = vand.u32 2147483648, %v4361_v54  ;;  %2193 = vst.msk [vmem:[%s4107_s25 + $0x28] sm:$0xff] %vm335_vm0, %v2041_v14  ;;  %v2119_v45 = vadd.f32 %v4082_v24, %v2118_v16 }
 0x17e   : > { %v2652_v38 = vpop.eup %2651  ;;  %v1199_v21 = vor.u32 1.1754944e-38, %v1198_v55  ;;  %vm4530_vm3 = vcmp.eq.f32.partialorder %v1676_v19, 8.507059e+37  ;;  %v1211_v0 = vand.u32 2147483647, %v4474_v57  ;;  %2657 = vrcp.f32 %v4516_v33  ;;  %2423 = vmatmul.msk.bf16.gmra.mxu1 %vm335_vm0, %v1891_v61  ;;  %vm4543_vm4 = vmor %vm1672_vm2, %vm1673_vm14 }
 0x17f   : > { %v2654_v26 = vpop.eup %2653  ;;  %v1870_v46 = vmul.f32 %v1665_v30, %v4125_v18  ;;  %v1195_v54 = vsel %vm4511_vm15, %v4440_v49, %v1191_v47  ;;  %v4547_v25 = vadd.f32 1.0, %v2650_v17  ;;  %v4550_v12 = vadd.f32 %v4421_v52, %v506_v43  ;;  %2224 = vst.msk [vmem:[%s4107_s25 + $0x120] sm:$0xff] %vm335_vm0, %v2119_v45 }
 0x180   : > { %v2656_v1 = vpop.eup %2655  ;;  %v1675_v18 = vsel %vm4543_vm4, %v4462_v35, %v1671_v62  ;;  %v1203_v49 = vmul.f32 %v2654_v26, %v4474_v57  ;;  %v4558_v9 = vadd.f32 1.0, %v2652_v38  ;;  %v2406_v3 = vmul.f32 -1.442695, %v4519_v63  ;;  %v508_v35 = vpop.f32.mrf.mxu0 }
 0x181   : > { %v1679_v56 = vor.u32 1.1754944e-38, %v1678_v23  ;;  %vm1207_vm5 = vweird.f32 %v4474_v57  ;;  %v1213_v7 = vand.u32 2147483648, %v4474_v57  ;;  %2659 = vrcp.f32 %v4547_v25  ;;  %v4618_v62 = vpop.f32.mrf.mxu2 }
 0x182   : > { %v1200_v51 = vsel %vm4521_vm1, %v1199_v21, %v1195_v54  ;;  %v1204_v50 = vsub.f32 1.0, %v1203_v49  ;;  %vm4566_vm6 = vcmp.eq.f32.partialorder %v1211_v0, 8.507059e+37  ;;  %2661 = vrcp.f32 %v4558_v9  ;;  %v4579_v15 = vpop.f32.mrf.mxu1 }
 0x183   : > { %v1680_v53 = vsel %vm4530_vm3, %v1679_v56, %v1675_v18  ;;  %v1691_v34 = vand.u32 2147483647, %v4516_v33  ;;  %v4574_v27 = vadd.f32 1.0, %v2656_v1  ;;  %v2375_v37 = vmul.f32 -1.442695, %v4550_v12  ;;  %v4645_v56 = vpop.f32.mrf.mxu3 }
 0x184   : > { %v4581_v36 = vpop.eup %2657  ;;  %v1205_v5 = vmul.f32 %v2654_v26, %v1204_v50  ;;  %vm1208_vm7 = vweird.f32 %v2654_v26  ;;  %2663 = vpow2.f32 %v2406_v3  ;;  %v1907_v10 = vpack.c.bf16 %v1870_v46, %v4498_v42 }
 0x185   : > { %v1839_v32 = vmul.f32 %v1200_v51, %v4200_v44  ;;  %v1214_v6 = vor.u32 1.1754944e-38, %v1213_v7  ;;  %v1683_v43 = vmul.f32 %v4581_v36, %v4516_v33  ;;  %vm1687_vm8 = vweird.f32 %v4516_v33  ;;  %vm1209_vm9 = vmor %vm1207_vm5, %vm1208_vm7 }
 0x186   : > { %v4589_v13 = vmul.f32 %v1680_v53, %v4205_v22  ;;  %v1206_v55 = vadd.f32 %v2654_v26, %v1205_v5  ;;  %v1693_v16 = vand.u32 2147483648, %v4516_v33  ;;  %2665 = vrcp.f32 %v4574_v27 }
 0x187   : > { %v4593_v29 = vpop.eup %2659  ;;  %v1684_v44 = vsub.f32 1.0, %v1683_v43  ;;  %vm4597_vm10 = vcmp.eq.f32.partialorder %v1691_v34, 8.507059e+37  ;;  %vm1222_vm11 = vweird.f32 %v4547_v25  ;;  %2667 = vpow2.f32 %v2375_v37  ;;  %2439 = vmatmul.msk.bf16.gmra.mxu3 %vm335_vm0, %v1907_v10 }
 0x188   : > { %v4603_v22 = vadd.f32 %v4421_v52, %v586_v58  ;;  %v4605_v61 = vpop.eup %2661  ;;  %v1210_v2 = vsel %vm1209_vm9, %v2654_v26, %v1206_v55  ;;  %v1218_v42 = vmul.f32 %v4593_v29, %v4547_v25  ;;  %v1226_v57 = vand.u32 2147483647, %v4547_v25  ;;  %v511_v3 = vpop.f32.mrf.mxu0 }
 0x189   : > { %v1228_v47 = vand.u32 2147483648, %v4547_v25  ;;  %v1215_v14 = vsel %vm4566_vm6, %v1214_v6, %v1210_v2  ;;  %v1685_v30 = vmul.f32 %v4581_v36, %v1684_v44  ;;  %vm1688_vm12 = vweird.f32 %v4581_v36  ;;  %v591_v2 = vpop.f32.mrf.mxu2 }
 0x18a   : > { %v1698_v41 = vmul.f32 %v4605_v61, %v4558_v9  ;;  %v2664_v17 = vpop.eup %2663  ;;  %v1840_v8 = vmul.f32 %v1215_v14, %v4234_v31  ;;  %v1219_v23 = vsub.f32 1.0, %v1218_v42  ;;  %vm1223_vm13 = vweird.f32 %v4593_v29  ;;  %v4629_v26 = vpop.f32.mrf.mxu1  ;;  %vm4633_vm14 = vmor %vm1687_vm8, %vm1688_vm12 }
 0x18b   : > { %v2407_v45 = vmul.f32 -1.442695, %v4603_v22  ;;  %v1686_v38 = vadd.f32 %v4581_v36, %v1685_v30  ;;  %v4624_v60 = vadd.f32 1.0, %v2664_v17  ;;  %v4627_v0 = vadd.f32 %v4421_v52, %v508_v35  ;;  %vm4652_vm1 = vmor %vm1222_vm11, %vm1223_vm13 }
 0x18c   : > { %v1699_v21 = vsub.f32 1.0, %v1698_v41  ;;  %v2666_v46 = vpop.eup %2665  ;;  %v1220_v54 = vmul.f32 %v4593_v29, %v1219_v23  ;;  %v2044_v20 = vadd.f32 %v4082_v24, %v4503_v48  ;;  %v1892_v58 = vpack.c.bf16 %v1840_v8, %v1839_v32 }
 0x18d   : > { %2669 = vpow2.f32 %v2407_v45  ;;  %v2668_v1 = vpop.eup %2667  ;;  %v1690_v18 = vsel %vm4633_vm14, %v4581_v36, %v1686_v38  ;;  %v1694_v49 = vor.u32 1.1754944e-38, %v1693_v16  ;;  %vm1702_vm15 = vweird.f32 %v4558_v9 }
 0x18e   : > { %v1233_v33 = vmul.f32 %v2666_v46, %v4574_v27  ;;  %v1221_v7 = vadd.f32 %v4593_v29, %v1220_v54  ;;  %v1706_v51 = vand.u32 2147483647, %v4558_v9  ;;  %v1708_v50 = vand.u32 2147483648, %v4558_v9  ;;  %2194 = vst.msk [vmem:[%s4107_s25 + $0x30] sm:$0xff] %vm335_vm0, %v2044_v20  ;;  %2424 = vmatmul.msk.bf16.gmra.mxu1 %vm335_vm0, %v1892_v58 }
 0x18f   : > { %2671 = vrcp.f32 %v4624_v60  ;;  %vm4662_vm2 = vcmp.eq.f32.partialorder %v1226_v57, 8.507059e+37  ;;  %v1700_v25 = vmul.f32 %v4605_v61, %v1699_v21  ;;  %v1243_v53 = vand.u32 2147483648, %v4574_v27 }
 0x190   : > { %v1234_v35 = vsub.f32 1.0, %v1233_v33  ;;  %v1695_v34 = vsel %vm4597_vm10, %v1694_v49, %v1690_v18  ;;  %v1229_v37 = vor.u32 1.1754944e-38, %v1228_v47  ;;  %v4670_v36 = vadd.f32 1.0, %v2668_v1  ;;  %v513_v21 = vpop.f32.mrf.mxu0 }
 0x191   : > { %v2376_v5 = vmul.f32 -1.442695, %v4627_v0  ;;  %v1225_v10 = vsel %vm4652_vm1, %v4593_v29, %v1221_v7  ;;  %vm1238_vm3 = vweird.f32 %v2666_v46  ;;  %v1241_v6 = vand.u32 2147483647, %v4574_v27 }
 0x192   : > { %v1235_v32 = vmul.f32 %v2666_v46, %v1234_v35  ;;  %vm1703_vm4 = vweird.f32 %v4605_v61  ;;  %vm4678_vm5 = vcmp.eq.f32.partialorder %v1706_v51, 8.507059e+37  ;;  %vm1237_vm6 = vweird.f32 %v4574_v27  ;;  %v4693_v41 = vpop.f32.mrf.mxu1 }
 0x193   : > { %v2670_v43 = vpop.eup %2669  ;;  %2673 = vrcp.f32 %v4670_v36  ;;  %v1872_v16 = vmul.f32 %v1695_v34, %v4425_v11  ;;  %v1701_v44 = vadd.f32 %v4605_v61, %v1700_v25  ;;  %v1244_v19 = vor.u32 1.1754944e-38, %v1243_v53  ;;  %vm1239_vm7 = vmor %vm1237_vm6, %vm1238_vm3 }
 0x194   : > { %v1236_v29 = vadd.f32 %v2666_v46, %v1235_v32  ;;  %v1230_v57 = vsel %vm4662_vm2, %v1229_v37, %v1225_v10  ;;  %v4688_v47 = vadd.f32 1.0, %v2670_v43  ;;  %2675 = vpow2.f32 %v2376_v5  ;;  %vm4699_vm9 = vmor %vm1702_vm15, %vm1703_vm4  ;;  %v593_v37 = vpop.f32.mrf.mxu2 }
 0x195   : > { %v2672_v42 = vpop.eup %2671  ;;  %v2121_v27 = vadd.f32 %v4082_v24, %v4577_v4  ;;  %v1709_v14 = vor.u32 1.1754944e-38, %v1708_v50  ;;  %vm1242_vm8 = vcmp.eq.f32.partialorder %v1241_v6, 8.507059e+37  ;;  %vm1717_vm10 = vweird.f32 %v4624_v60 }
 0x196   : > { %v1240_v30 = vsel %vm1239_vm7, %v2666_v46, %v1236_v29  ;;  %v1713_v11 = vmul.f32 %v2672_v42, %v4624_v60  ;;  %v1721_v4 = vand.u32 2147483647, %v4624_v60  ;;  %2677 = vrcp.f32 %v4688_v47  ;;  %v2125_v46 = vpop.f32.mrf.mxu3 }
 0x197   : > { %v1245_v8 = vsel %vm1242_vm8, %v1244_v19, %v1240_v30  ;;  %2225 = vst.msk [vmem:[%s4107_s25 + $0x128] sm:$0xff] %vm335_vm0, %v2121_v27  ;;  %v1841_v23 = vmul.f32 %v1230_v57, %v4429_v28  ;;  %v1705_v45 = vsel %vm4699_vm9, %v4605_v61, %v1701_v44  ;;  %v4717_v54 = vadd.f32 %v4421_v52, %v4618_v62 }
 0x198   : > { %v1842_v9 = vmul.f32 %v1245_v8, %v4454_v59  ;;  %v1714_v38 = vsub.f32 1.0, %v1713_v11  ;;  %v4720_v20 = vadd.f32 %v4421_v52, %v511_v3  ;;  %v2046_v28 = vadd.f32 %v4082_v24, %v4579_v15  ;;  %v516_v19 = vpop.f32.mrf.mxu0 }
 0x199   : > { %v4713_v31 = vpop.eup %2673  ;;  %v1908_v61 = vpack.c.bf16 %v1872_v16, %v4589_v13  ;;  %vm1718_vm11 = vweird.f32 %v2672_v42  ;;  %v1723_v59 = vand.u32 2147483648, %v4624_v60  ;;  %v1710_v62 = vsel %vm4678_vm5, %v1709_v14, %v1705_v45 }
 0x19a   : > { %v1715_v58 = vmul.f32 %v2672_v42, %v1714_v38  ;;  %v1248_v1 = vmul.f32 %v4713_v31, %v4670_v36  ;;  %v2676_v18 = vpop.eup %2675  ;;  %v1893_v49 = vpack.c.bf16 %v1842_v9, %v1841_v23  ;;  %v2408_v33 = vmul.f32 -1.442695, %v4717_v54  ;;  %2195 = vst.msk [vmem:[%s4107_s25 + $0x38] sm:$0xff] %vm335_vm0, %v2046_v28  ;;  %vm4744_vm12 = vmor %vm1717_vm10, %vm1718_vm11 }
 0x19b   : > { %v2377_v3 = vmul.f32 -1.442695, %v4720_v20  ;;  %2440 = vmatmul.msk.bf16.gmra.mxu3 %vm335_vm0, %v1908_v61  ;;  %v4733_v7 = vadd.f32 1.0, %v2676_v18  ;;  %v2124_v48 = vadd.f32 %v4082_v24, %v4645_v56  ;;  %v4749_v39 = vadd.f32 %v4421_v52, %v591_v2 }
 0x19c   : > { %v1716_v15 = vadd.f32 %v2672_v42, %v1715_v58  ;;  %v1249_v13 = vsub.f32 1.0, %v1248_v1  ;;  %v4739_v51 = vpop.eup %2677  ;;  %2679 = vpow2.f32 %v2408_v33  ;;  %v4752_v25 = vadd.f32 %v4421_v52, %v513_v21  ;;  %v596_v1 = vpop.f32.mrf.mxu2 }
 0x19d   : > { %v2049_v56 = vadd.f32 %v4082_v24, %v4629_v26  ;;  %v1724_v53 = vor.u32 1.1754944e-38, %v1723_v59  ;;  %v1256_v60 = vand.u32 2147483647, %v4670_v36  ;;  %v1728_v34 = vmul.f32 %v4739_v51, %v4688_v47  ;;  %2226 = vst.msk [vmem:[%s4107_s25 + $0x130] sm:$0xff] %vm335_vm0, %v2124_v48 }
 0x19e   : > { %v1720_v35 = vsel %vm4744_vm12, %v2672_v42, %v1716_v15  ;;  %v4764_v5 = vmul.f32 %v1710_v62, %v4451_v40  ;;  %vm1722_vm13 = vcmp.eq.f32.partialorder %v1721_v4, 8.507059e+37  ;;  %2681 = vrcp.f32 %v4733_v7  ;;  %2425 = vmatmul.msk.bf16.gmra.mxu1 %vm335_vm0, %v1893_v49  ;;  %v4772_v6 = vpop.f32.mrf.mxu1  ;;  %v2128_v2 = vpop.f32.mrf.mxu3 }
 0x19f   : > { %2196 = vst.msk [vmem:[%s4107_s25 + $0x40] sm:$0xff] %vm335_vm0, %v2049_v56  ;;  %v1725_v26 = vsel %vm1722_vm13, %v1724_v53, %v1720_v35  ;;  %v1250_v10 = vmul.f32 %v4713_v31, %v1249_v13  ;;  %vm1252_vm14 = vweird.f32 %v4670_v36  ;;  %v1729_v32 = vsub.f32 1.0, %v1728_v34 }
 0x1a0   : > { %v1258_v43 = vand.u32 2147483648, %v4670_v36  ;;  %2683 = vpow2.f32 %v2377_v3  ;;  %v2409_v40 = vmul.f32 -1.442695, %v4749_v39  ;;  %v2378_v55 = vmul.f32 -1.442695, %v4752_v25 }
 0x1a1   : > { %vm1253_vm15 = vweird.f32 %v4713_v31  ;;  %vm4778_vm1 = vcmp.eq.f32.partialorder %v1256_v60, 8.507059e+37  ;;  %v1730_v44 = vmul.f32 %v4739_v51, %v1729_v32  ;;  %v1736_v29 = vand.u32 2147483647, %v4688_v47 }
 0x1a2   : > { %v2680_v42 = vpop.eup %2679  ;;  %v1874_v57 = vmul.f32 %v1725_v26, %v4519_v63  ;;  %2685 = vpow2.f32 %v2409_v40  ;;  %v2126_v27 = vadd.f32 %v4082_v24, %v2125_v46  ;;  %v4787_v14 = vadd.f32 %v4421_v52, %v593_v37  ;;  %vm4797_vm2 = vmor %vm1252_vm14, %vm1253_vm15 }
 0x1a3   : > { %v1251_v30 = vadd.f32 %v4713_v31, %v1250_v10  ;;  %v1738_v11 = vand.u32 2147483648, %v4688_v47  ;;  %v4791_v17 = vadd.f32 1.0, %v2680_v42  ;;  %2687 = vpow2.f32 %v2378_v55 }
 0x1a4   : > { %v2682_v8 = vpop.eup %2681  ;;  %2227 = vst.msk [vmem:[%s4107_s25 + $0x138] sm:$0xff] %vm335_vm0, %v2126_v27  ;;  %v2410_v4 = vmul.f32 -1.442695, %v4787_v14  ;;  %v4805_v23 = vadd.f32 %v4421_v52, %v516_v19  ;;  %v2051_v45 = vadd.f32 %v4082_v24, %v4693_v41  ;;  %v2129_v9 = vadd.f32 %v4082_v24, %v2128_v2 }
 0x1a5   : > { %v1731_v36 = vadd.f32 %v4739_v51, %v1730_v44  ;;  %vm1733_vm3 = vweird.f32 %v4739_v51  ;;  %v1263_v38 = vmul.f32 %v2682_v8, %v4733_v7  ;;  %2689 = vrcp.f32 %v4791_v17 }
 0x1a6   : > { %v2684_v21 = vpop.eup %2683  ;;  %v1909_v46 = vpack.c.bf16 %v1874_v57, %v4764_v5  ;;  %v1259_v28 = vor.u32 1.1754944e-38, %v1258_v43  ;;  %vm1732_vm4 = vweird.f32 %v4688_v47  ;;  %vm4816_vm5 = vcmp.eq.f32.partialorder %v1736_v29, 8.507059e+37  ;;  %2197 = vst.msk [vmem:[%s4107_s25 + $0x48] sm:$0xff] %vm335_vm0, %v2051_v45  ;;  %v4838_v33 = vpop.f32.mrf.mxu1 }
 0x1a7   : > { %v1255_v24 = vsel %vm4797_vm2, %v4713_v31, %v1251_v30  ;;  %v1264_v41 = vsub.f32 1.0, %v1263_v38  ;;  %v1271_v58 = vand.u32 2147483647, %v4733_v7  ;;  %v4826_v59 = vadd.f32 1.0, %v2684_v21  ;;  %2228 = vst.msk [vmem:[%s4107_s25 + $0x140] sm:$0xff] %vm335_vm0, %v2129_v9  ;;  %vm4832_vm6 = vmor %vm1732_vm4, %vm1733_vm3  ;;  %v4859_v5 = vpop.f32.mrf.mxu3 }
 0x1a8   : > { %v2686_v18 = vpop.eup %2685  ;;  %v1739_v62 = vor.u32 1.1754944e-38, %v1738_v11  ;;  %v1273_v49 = vand.u32 2147483648, %v4733_v7  ;;  %2691 = vpow2.f32 %v2410_v4  ;;  %v2379_v31 = vmul.f32 -1.442695, %v4805_v23 }
 0x1a9   : > { %v2688_v3 = vpop.eup %2687  ;;  %v1735_v15 = vsel %vm4832_vm6, %v4739_v51, %v1731_v36  ;;  %v1265_v13 = vmul.f32 %v2682_v8, %v1264_v41  ;;  %vm1268_vm7 = vweird.f32 %v2682_v8  ;;  %2693 = vrcp.f32 %v4826_v59 }
 0x1aa   : > { %v1260_v48 = vsel %vm4778_vm1, %v1259_v28, %v1255_v24  ;;  %v4846_v50 = vadd.f32 1.0, %v2686_v18  ;;  %v4848_v56 = vadd.f32 1.0, %v2688_v3  ;;  %v4852_v35 = vadd.f32 %v4421_v52, %v596_v1 }
 0x1ab   : > { %2441 = vmatmul.msk.bf16.gmra.mxu3 %vm335_vm0, %v1909_v46  ;;  %v2690_v53 = vpop.eup %2689  ;;  %v1266_v60 = vadd.f32 %v2682_v8, %v1265_v13  ;;  %vm1267_vm8 = vweird.f32 %v4733_v7  ;;  %vm1272_vm9 = vcmp.eq.f32.partialorder %v1271_v58, 8.507059e+37  ;;  %2695 = vpow2.f32 %v2379_v31 }
 0x1ac   : > { %v1740_v51 = vsel %vm4816_vm5, %v1739_v62, %v1735_v15  ;;  %vm1269_vm10 = vmor %vm1267_vm8, %vm1268_vm7  ;;  %v1274_v34 = vor.u32 1.1754944e-38, %v1273_v49  ;;  %v1743_v37 = vmul.f32 %v2690_v53, %v4791_v17  ;;  %2697 = vrcp.f32 %v4846_v50 }
 0x1ad   : > { %v1843_v26 = vmul.f32 %v1260_v48, %v4550_v12  ;;  %v1270_v10 = vsel %vm1269_vm10, %v2682_v8, %v1266_v60  ;;  %v1751_v32 = vand.u32 2147483647, %v4791_v17  ;;  %v1753_v7 = vand.u32 2147483648, %v4791_v17 }
 0x1ae   : > { %v2692_v43 = vpop.eup %2691  ;;  %v1275_v40 = vsel %vm1272_vm9, %v1274_v34, %v1270_v10  ;;  %v1744_v55 = vsub.f32 1.0, %v1743_v37  ;;  %2699 = vrcp.f32 %v4848_v56  ;;  %v2411_v16 = vmul.f32 -1.442695, %v4852_v35  ;;  %v4884_v9 = vpop.f32.mrf.mxu1 }
 0x1af   : > { %v4866_v44 = vpop.eup %2693  ;;  %v1875_v29 = vmul.f32 %v1740_v51, %v4603_v22  ;;  %v1844_v19 = vmul.f32 %v1275_v40, %v4627_v0  ;;  %vm1747_vm11 = vweird.f32 %v4791_v17  ;;  %v1286_v12 = vand.u32 2147483647, %v4826_v59  ;;  %v518_v0 = vpop.f32.mrf.mxu0 }
 0x1b0   : > { %v1745_v2 = vmul.f32 %v2690_v53, %v1744_v55  ;;  %vm1748_vm12 = vweird.f32 %v2690_v53  ;;  %v1278_v42 = vmul.f32 %v4866_v44, %v4826_v59  ;;  %v1288_v57 = vand.u32 2147483648, %v4826_v59  ;;  %v2133_v31 = vpop.f32.mrf.mxu3 }
 0x1b1   : > { %v2696_v27 = vpop.eup %2695  ;;  %v1894_v30 = vpack.c.bf16 %v1844_v19, %v1843_v26  ;;  %vm4875_vm13 = vcmp.eq.f32.partialorder %v1751_v32, 8.507059e+37  ;;  %v1754_v22 = vor.u32 1.1754944e-38, %v1753_v7  ;;  %v4879_v8 = vadd.f32 1.0, %v2692_v43  ;;  %vm1749_vm15 = vmor %vm1747_vm11, %vm1748_vm12 }
 0x1b2   : > { %v4881_v63 = vpop.eup %2697  ;;  %v1746_v4 = vadd.f32 %v2690_v53, %v1745_v2  ;;  %v1279_v45 = vsub.f32 1.0, %v1278_v42  ;;  %vm1282_vm14 = vweird.f32 %v4826_v59  ;;  %2701 = vpow2.f32 %v2411_v16 }
 0x1b3   : > { %vm1283_vm1 = vweird.f32 %v4866_v44  ;;  %vm4890_vm2 = vcmp.eq.f32.partialorder %v1286_v12, 8.507059e+37  ;;  %v1758_v38 = vmul.f32 %v4881_v63, %v4846_v50  ;;  %2703 = vrcp.f32 %v4879_v8  ;;  %2426 = vmatmul.msk.bf16.gmra.mxu1 %vm335_vm0, %v1894_v30 }
 0x1b4   : > { %v2700_v21 = vpop.eup %2699  ;;  %v1750_v46 = vsel %vm1749_vm15, %v2690_v53, %v1746_v4  ;;  %v1280_v28 = vmul.f32 %v4866_v44, %v1279_v45  ;;  %v1289_v61 = vor.u32 1.1754944e-38, %v1288_v57  ;;  %v4900_v17 = vadd.f32 %v4421_v52, %v518_v0  ;;  %vm4913_vm3 = vmor %vm1282_vm14, %vm1283_vm1  ;;  %v4964_v45 = vld [vmem:[%s5168_s4] ss:$0 sm:$0xff] }
 0x1b5   : > { %v1755_v24 = vsel %vm4875_vm13, %v1754_v22, %v1750_v46  ;;  %v1759_v41 = vsub.f32 1.0, %v1758_v38  ;;  %v1293_v58 = vmul.f32 %v2700_v21, %v4848_v56  ;;  %v4905_v1 = vadd.f32 1.0, %v2696_v27  ;;  %v598_v27 = vpop.f32.mrf.mxu2 }
 0x1b6   : > { %v1876_v18 = vmul.f32 %v1755_v24, %v4717_v54  ;;  %v1281_v47 = vadd.f32 %v4866_v44, %v1280_v28  ;;  %vm1762_vm4 = vweird.f32 %v4846_v50  ;;  %v1766_v49 = vand.u32 2147483647, %v4846_v50 }
 0x1b7   : > { %v1760_v3 = vmul.f32 %v4881_v63, %v1759_v41  ;;  %v1768_v15 = vand.u32 2147483648, %v4846_v50  ;;  %v1294_v54 = vsub.f32 1.0, %v1293_v58  ;;  %v1301_v13 = vand.u32 2147483647, %v4848_v56 }
 0x1b8   : > { %v2702_v48 = vpop.eup %2701  ;;  %v1910_v53 = vpack.c.bf16 %v1876_v18, %v1875_v29  ;;  %vm1763_vm5 = vweird.f32 %v4881_v63  ;;  %vm1298_vm6 = vweird.f32 %v2700_v21  ;;  %v1303_v59 = vand.u32 2147483648, %v4848_v56  ;;  %v2060_v29 = vpop.f32.mrf.mxu1 }
 0x1b9   : > { %v2704_v60 = vpop.eup %2703  ;;  %v1285_v51 = vsel %vm4913_vm3, %v4866_v44, %v1281_v47  ;;  %v1761_v34 = vadd.f32 %v4881_v63, %v1760_v3  ;;  %v1295_v37 = vmul.f32 %v2700_v21, %v1294_v54  ;;  %2705 = vrcp.f32 %v4905_v1  ;;  %vm4940_vm9 = vmor %vm1762_vm4, %vm1763_vm5 }
 0x1ba   : > { %vm4929_vm7 = vcmp.eq.f32.partialorder %v1766_v49, 8.507059e+37  ;;  %vm1297_vm8 = vweird.f32 %v4848_v56  ;;  %v1773_v10 = vmul.f32 %v2704_v60, %v4879_v8  ;;  %v4935_v32 = vadd.f32 1.0, %v2702_v48 }
 0x1bb   : > { %2442 = vmatmul.msk.bf16.gmra.mxu3 %vm335_vm0, %v1910_v53  ;;  %v1769_v43 = vor.u32 1.1754944e-38, %v1768_v15  ;;  %v1296_v40 = vadd.f32 %v2700_v21, %v1295_v37  ;;  %vm1302_vm10 = vcmp.eq.f32.partialorder %v1301_v13, 8.507059e+37  ;;  %v1783_v55 = vand.u32 2147483648, %v4879_v8  ;;  %vm1299_vm11 = vmor %vm1297_vm8, %vm1298_vm6 }
 0x1bc   : > { %v1290_v56 = vsel %vm4890_vm2, %v1289_v61, %v1285_v51  ;;  %v1304_v16 = vor.u32 1.1754944e-38, %v1303_v59  ;;  %v1774_v44 = vsub.f32 1.0, %v1773_v10  ;;  %vm1777_vm12 = vweird.f32 %v4879_v8 }
 0x1bd   : > { %v1765_v50 = vsel %vm4940_vm9, %v4881_v63, %v1761_v34  ;;  %v1300_v19 = vsel %vm1299_vm11, %v2700_v21, %v1296_v40  ;;  %v1781_v12 = vand.u32 2147483647, %v4879_v8  ;;  %v2380_v2 = vmul.f32 -1.442695, %v4900_v17 }
 0x1be   : > { %v1305_v42 = vsel %vm1302_vm10, %v1304_v16, %v1300_v19  ;;  %v1775_v57 = vmul.f32 %v2704_v60, %v1774_v44  ;;  %vm1778_vm13 = vweird.f32 %v2704_v60  ;;  %2707 = vrcp.f32 %v4935_v32 }
 0x1bf   : > { %v4955_v30 = vpop.eup %2705  ;;  %v1845_v11 = vmul.f32 %v1290_v56, %v4720_v20  ;;  %v1846_v22 = vmul.f32 %v1305_v42, %v4752_v25  ;;  %v1784_v0 = vor.u32 1.1754944e-38, %v1783_v55  ;;  %2709 = vpow2.f32 %v2380_v2  ;;  %v2135_v25 = vpop.f32.mrf.mxu3  ;;  %vm1779_vm14 = vmor %vm1777_vm12, %vm1778_vm13 }
 0x1c0   : > { %v1770_v63 = vsel %vm4929_vm7, %v1769_v43, %v1765_v50  ;;  %v1776_v4 = vadd.f32 %v2704_v60, %v1775_v57  ;;  %v2054_v36 = vadd.f32 %v4964_v45, %v4772_v6  ;;  %v2131_v20 = vadd.f32 %v4964_v45, %v4859_v5 }
 0x1c1   : > { %v1895_v38 = vpack.c.bf16 %v1846_v22, %v1845_v11  ;;  %v4974_v21 = vadd.f32 %v4421_v52, %v598_v27  ;;  %v2056_v46 = vadd.f32 %v4964_v45, %v4838_v33  ;;  %v2134_v28 = vadd.f32 %v4964_v45, %v2133_v31 }
 0x1c2   : > { %v1780_v61 = vsel %vm1779_vm14, %v2704_v60, %v1776_v4  ;;  %vm1782_vm15 = vcmp.eq.f32.partialorder %v1781_v12, 8.507059e+37  ;;  %v1308_v6 = vmul.f32 %v4955_v30, %v4905_v1  ;;  %2198 = vst.msk [vmem:[%s4107_s25 + $0x50] sm:$0xff] %vm335_vm0, %v2054_v36  ;;  %v2059_v8 = vadd.f32 %v4964_v45, %v4884_v9 }
 0x1c3   : > { %v1785_v5 = vsel %vm1782_vm15, %v1784_v0, %v1780_v61  ;;  %2229 = vst.msk [vmem:[%s4107_s25 + $0x148] sm:$0xff] %vm335_vm0, %v2131_v20  ;;  %v2412_v52 = vmul.f32 -1.442695, %v4974_v21  ;;  %2427 = vmatmul.msk.bf16.gmra.mxu1 %vm335_vm0, %v1895_v38  ;;  %v2136_v33 = vadd.f32 %v4964_v45, %v2135_v25  ;;  %v1877_v41 = vmul.f32 %v1770_v63, %v4749_v39 }
 0x1c4   : > { %v4990_v24 = vpop.eup %2707  ;;  %v1878_v58 = vmul.f32 %v1785_v5, %v4787_v14  ;;  %2199 = vst.msk [vmem:[%s4107_s25 + $0x58] sm:$0xff] %vm335_vm0, %v2056_v46  ;;  %v2061_v18 = vadd.f32 %v4964_v45, %v2060_v29  ;;  %v1309_v62 = vsub.f32 1.0, %v1308_v6  ;;  %vm1312_vm1 = vweird.f32 %v4905_v1 }
 0x1c5   : > { %v2710_v47 = vpop.eup %2709  ;;  %2711 = vpow2.f32 %v2412_v52  ;;  %2230 = vst.msk [vmem:[%s4107_s25 + $0x150] sm:$0xff] %vm335_vm0, %v2134_v28  ;;  %v2063_v31 = vpop.f32.mrf.mxu1  ;;  %v1788_v14 = vmul.f32 %v4990_v24, %v4935_v32  ;;  %vm1313_vm2 = vweird.f32 %v4955_v30  ;;  %v1318_v59 = vand.u32 2147483648, %v4905_v1 }
 0x1c6   : > { %v1911_v9 = vpack.c.bf16 %v1878_v58, %v1877_v41  ;;  %v824_v49 = vadd.f32 1.0, %v2710_v47  ;;  %2200 = vst.msk [vmem:[%s4107_s25 + $0x60] sm:$0xff] %vm335_vm0, %v2059_v8  ;;  %v2064_v39 = vadd.f32 %v4964_v45, %v2063_v31  ;;  %v1310_v3 = vmul.f32 %v4955_v30, %v1309_v62  ;;  %vm5023_vm3 = vmor %vm1312_vm1, %vm1313_vm2 }
 0x1c7   : > { %2231 = vst.msk [vmem:[%s4107_s25 + $0x158] sm:$0xff] %vm335_vm0, %v2136_v33  ;;  %v1789_v13 = vsub.f32 1.0, %v1788_v14  ;;  %v1316_v34 = vand.u32 2147483647, %v4905_v1  ;;  %v1319_v40 = vor.u32 1.1754944e-38, %v1318_v59  ;;  %vm1793_vm6 = vweird.f32 %v4990_v24 }
 0x1c8   : > { %2713 = vrcp.f32 %v824_v49  ;;  %2201 = vst.msk [vmem:[%s4107_s25 + $0x68] sm:$0xff] %vm335_vm0, %v2061_v18  ;;  %v1311_v51 = vadd.f32 %v4955_v30, %v1310_v3  ;;  %v1333_v56 = vand.u32 2147483648, %v824_v49  ;;  %v1331_v44 = vand.u32 2147483647, %v824_v49 }
 0x1c9   : > { %2202 = vst.msk [vmem:[%s4107_s25 + $0x70] sm:$0xff] %vm335_vm0, %v2064_v39  ;;  %v1790_v43 = vmul.f32 %v4990_v24, %v1789_v13  ;;  %vm1317_vm4 = vcmp.eq.f32.partialorder %v1316_v34, 8.507059e+37  ;;  %vm1327_vm7 = vweird.f32 %v824_v49  ;;  %vm1792_vm8 = vweird.f32 %v4935_v32 }
 0x1ca   : > { %v2138_v54 = vpop.f32.mrf.mxu3  ;;  %v1315_v1 = vsel %vm5023_vm3, %v4955_v30, %v1311_v51  ;;  %v1796_v27 = vand.u32 2147483647, %v4935_v32  ;;  %v1798_v30 = vand.u32 2147483648, %v4935_v32  ;;  %v1334_v11 = vor.u32 1.1754944e-38, %v1333_v56  ;;  %vm5043_vm10 = vmor %vm1792_vm8, %vm1793_vm6 }
 0x1cb   : > { %2443 = vmatmul.msk.bf16.gmra.mxu3 %vm335_vm0, %v1911_v9  ;;  %v2712_v15 = vpop.eup %2711  ;;  %v2139_v53 = vadd.f32 %v4964_v45, %v2138_v54  ;;  %v1791_v19 = vadd.f32 %v4990_v24, %v1790_v43  ;;  %v1320_v2 = vsel %vm1317_vm4, %v1319_v40, %v1315_v1  ;;  %vm1332_vm11 = vcmp.eq.f32.partialorder %v1331_v44, 8.507059e+37 }
 0x1cc   : > { %v5014_v48 = vadd.f32 1.0, %v2712_v15  ;;  %v1847_v20 = vmul.f32 %v1320_v2, %v4805_v23  ;;  %v1799_v6 = vor.u32 1.1754944e-38, %v1798_v30  ;;  %vm1797_vm13 = vcmp.eq.f32.partialorder %v1796_v27, 8.507059e+37 }
 0x1cd   : > { %2232 = vst.msk [vmem:[%s4107_s25 + $0x160] sm:$0xff] %vm335_vm0, %v2139_v53  ;;  %v2065_v37 = vpop.f32.mrf.mxu1  ;;  %v1795_v32 = vsel %vm5043_vm10, %v4990_v24, %v1791_v19 }
 0x1ce   : > { %v2714_v60 = vpop.eup %2713  ;;  %2715 = vrcp.f32 %v5014_v48  ;;  %v2066_v7 = vadd.f32 %v4964_v45, %v2065_v37  ;;  %v1813_v38 = vand.u32 2147483648, %v5014_v48  ;;  %v1811_v61 = vand.u32 2147483647, %v5014_v48 }
 0x1cf   : > { %v1323_v10 = vmul.f32 %v2714_v60, %v824_v49  ;;  %vm1328_vm5 = vweird.f32 %v2714_v60  ;;  %vm1807_vm14 = vweird.f32 %v5014_v48  ;;  %v1800_v8 = vsel %vm1797_vm13, %v1799_v6, %v1795_v32 }
 0x1d0   : > { %2203 = vst.msk [vmem:[%s4107_s25 + $0x78] sm:$0xff] %vm335_vm0, %v2066_v7  ;;  %vm1329_vm9 = vmor %vm1327_vm7, %vm1328_vm5  ;;  %v1814_v33 = vor.u32 1.1754944e-38, %v1813_v38  ;;  %vm1812_vm1 = vcmp.eq.f32.partialorder %v1811_v61, 8.507059e+37  ;;  %v1879_v18 = vmul.f32 %v1800_v8, %v4852_v35 }
 0x1d1   : > { %v1324_v55 = vsub.f32 1.0, %v1323_v10 }
 0x1d2   : > { %v2140_v29 = vpop.f32.mrf.mxu3 }
 0x1d3   : > { %v1325_v16 = vmul.f32 %v2714_v60, %v1324_v55  ;;  %v2141_v12 = vadd.f32 %v4964_v45, %v2140_v29 }
 0x1d4   : > { %v2716_v50 = vpop.eup %2715 }
 0x1d5   : > { %v1326_v42 = vadd.f32 %v2714_v60, %v1325_v16  ;;  %v1803_v57 = vmul.f32 %v2716_v50, %v5014_v48  ;;  %2233 = vst.msk [vmem:[%s4107_s25 + $0x168] sm:$0xff] %vm335_vm0, %v2141_v12  ;;  %v2068_v22 = vpop.f32.mrf.mxu1  ;;  %vm1808_vm12 = vweird.f32 %v2716_v50 }
 0x1d6   : > { %v2069_v36 = vadd.f32 %v4964_v45, %v2068_v22  ;;  %vm1809_vm15 = vmor %vm1807_vm14, %vm1808_vm12 }
 0x1d7   : > { %v1330_v63 = vsel %vm1329_vm9, %v2714_v60, %v1326_v42  ;;  %v1804_v4 = vsub.f32 1.0, %v1803_v57 }
 0x1d8   : > { %v1335_v25 = vsel %vm1332_vm11, %v1334_v11, %v1330_v63  ;;  %2204 = vst.msk [vmem:[%s4107_s25 + $0x80] sm:$0xff] %vm335_vm0, %v2069_v36 }
 0x1d9   : > { %v1848_v46 = vmul.f32 %v1335_v25, %v4900_v17  ;;  %v1805_v28 = vmul.f32 %v2716_v50, %v1804_v4 }
 0x1da   : > { %v2143_v52 = vpop.f32.mrf.mxu3 }
 0x1db   : > { %v1896_v5 = vpack.c.bf16 %v1848_v46, %v1847_v20  ;;  %v1806_v23 = vadd.f32 %v2716_v50, %v1805_v28  ;;  %v2144_v17 = vadd.f32 %v4964_v45, %v2143_v52 }
 0x1dd   : > { %v1810_v24 = vsel %vm1809_vm15, %v2716_v50, %v1806_v23  ;;  %2428 = vmatmul.msk.bf16.gmra.mxu1 %vm335_vm0, %v1896_v5  ;;  %2234 = vst.msk [vmem:[%s4107_s25 + $0x170] sm:$0xff] %vm335_vm0, %v2144_v17  ;;  %v2070_v58 = vpop.f32.mrf.mxu1 }
 0x1de   : > { %v1815_v41 = vsel %vm1812_vm1, %v1814_v33, %v1810_v24  ;;  %v2071_v9 = vadd.f32 %v4964_v45, %v2070_v58 }
 0x1df   : > { %v1880_v47 = vmul.f32 %v1815_v41, %v4974_v21 }
 0x1e0   : > { %2205 = vst.msk [vmem:[%s4107_s25 + $0x88] sm:$0xff] %vm335_vm0, %v2071_v9 }
 0x1e1   : > { %v1912_v62 = vpack.c.bf16 %v1880_v47, %v1879_v18 }
 0x1e2   : > { %v2145_v49 = vpop.f32.mrf.mxu3 }
 0x1e3   : > { %2444 = vmatmul.msk.bf16.gmra.mxu3 %vm335_vm0, %v1912_v62  ;;  %v2146_v31 = vadd.f32 %v4964_v45, %v2145_v49 }
 0x1e5   : > { %2235 = vst.msk [vmem:[%s4107_s25 + $0x178] sm:$0xff] %vm335_vm0, %v2146_v31 }
 0x1ea   : > { %v2148_v39 = vpop.f32.mrf.mxu3 }
 0x1eb   : > { %v2073_v14 = vpop.f32.mrf.mxu1  ;;  %v2149_v35 = vadd.f32 %v4964_v45, %v2148_v39 }
 0x1ec   : > { %v2074_v21 = vadd.f32 %v4964_v45, %v2073_v14 }
 0x1ed   : > { %2236 = vst.msk [vmem:[%s4107_s25 + $0x180] sm:$0xff] %vm335_vm0, %v2149_v35 }
 0x1ee   : > { %2206 = vst.msk [vmem:[%s4107_s25 + $0x90] sm:$0xff] %vm335_vm0, %v2074_v21 }
 0x1f2   : > { %v2150_v3 = vpop.f32.mrf.mxu3 }
 0x1f3   : > { %v2075_v15 = vpop.f32.mrf.mxu1  ;;  %v2151_v54 = vadd.f32 %v4964_v45, %v2150_v3 }
 0x1f4   : > { %v2076_v13 = vadd.f32 %v4964_v45, %v2075_v15 }
 0x1f5   : > { %2237 = vst.msk [vmem:[%s4107_s25 + $0x188] sm:$0xff] %vm335_vm0, %v2151_v54 }
 0x1f6   : > { %2207 = vst.msk [vmem:[%s4107_s25 + $0x98] sm:$0xff] %vm335_vm0, %v2076_v13 }
 0x1fa   : > { %v2153_v48 = vpop.f32.mrf.mxu3 }
 0x1fb   : > { %v2078_v53 = vpop.f32.mrf.mxu1  ;;  %v2154_v59 = vadd.f32 %v4964_v45, %v2153_v48 }
 0x1fc   : > { %v2079_v60 = vadd.f32 %v4964_v45, %v2078_v53 }
 0x1fd   : > { %2238 = vst.msk [vmem:[%s4107_s25 + $0x190] sm:$0xff] %vm335_vm0, %v2154_v59 }
 0x1fe   : > { %2208 = vst.msk [vmem:[%s4107_s25 + $0xa0] sm:$0xff] %vm335_vm0, %v2079_v60 }
 0x202   : > { %v2155_v51 = vpop.f32.mrf.mxu3 }
 0x203   : > { %v2080_v34 = vpop.f32.mrf.mxu1  ;;  %v2156_v37 = vadd.f32 %v4964_v45, %v2155_v51 }
 0x204   : > { %v2081_v26 = vadd.f32 %v4964_v45, %v2080_v34 }
 0x205   : > { %2239 = vst.msk [vmem:[%s4107_s25 + $0x198] sm:$0xff] %vm335_vm0, %v2156_v37 }
 0x206   : > { %2209 = vst.msk [vmem:[%s4107_s25 + $0xa8] sm:$0xff] %vm335_vm0, %v2081_v26 }
 0x20a   : > { %v2158_v10 = vpop.f32.mrf.mxu3 }
 0x20b   : > { %v2083_v7 = vpop.f32.mrf.mxu1  ;;  %v2159_v43 = vadd.f32 %v4964_v45, %v2158_v10 }
 0x20c   : > { %v2084_v40 = vadd.f32 %v4964_v45, %v2083_v7 }
 0x20d   : > { %2240 = vst.msk [vmem:[%s4107_s25 + $0x1a0] sm:$0xff] %vm335_vm0, %v2159_v43 }
 0x20e   : > { %2210 = vst.msk [vmem:[%s4107_s25 + $0xb0] sm:$0xff] %vm335_vm0, %v2084_v40 }
 0x212   : > { %v2160_v55 = vpop.f32.mrf.mxu3 }
 0x213   : > { %v2085_v1 = vpop.f32.mrf.mxu1  ;;  %v2161_v56 = vadd.f32 %v4964_v45, %v2160_v55 }
 0x214   : > { %v2086_v16 = vadd.f32 %v4964_v45, %v2085_v1 }
 0x215   : > { %2241 = vst.msk [vmem:[%s4107_s25 + $0x1a8] sm:$0xff] %vm335_vm0, %v2161_v56 }
 0x216   : > { %2211 = vst.msk [vmem:[%s4107_s25 + $0xb8] sm:$0xff] %vm335_vm0, %v2086_v16 }
 0x21b   : > { %v2088_v44 = vpop.f32.mrf.mxu1 }
 0x21c   : > { %v2089_v29 = vadd.f32 %v4964_v45, %v2088_v44 }
 0x21e   : > { %v2163_v50 = vpop.f32.mrf.mxu3  ;;  %2212 = vst.msk [vmem:[%s4107_s25 + $0xc0] sm:$0xff] %vm335_vm0, %v2089_v29 }
 0x21f   : > { %v2164_v19 = vadd.f32 %v4964_v45, %v2163_v50 }
 0x221   : > { %2242 = vst.msk [vmem:[%s4107_s25 + $0x1b0] sm:$0xff] %vm335_vm0, %v2164_v19 }
 0x223   : > { %v2090_v12 = vpop.f32.mrf.mxu1 }
 0x224   : > { %v2091_v2 = vadd.f32 %v4964_v45, %v2090_v12 }
 0x226   : > { %v2165_v42 = vpop.f32.mrf.mxu3  ;;  %2213 = vst.msk [vmem:[%s4107_s25 + $0xc8] sm:$0xff] %vm335_vm0, %v2091_v2 }
 0x227   : > { %v2166_v57 = vadd.f32 %v4964_v45, %v2165_v42 }
 0x229   : > { %2243 = vst.msk [vmem:[%s4107_s25 + $0x1b8] sm:$0xff] %vm335_vm0, %v2166_v57 }
 0x22e   : > { %v2168_v27 = vpop.f32.mrf.mxu3 }
 0x22f   : > { %v2169_v30 = vadd.f32 %v4964_v45, %v2168_v27 }
 0x230   : > { %v2093_v11 = vpop.f32.mrf.mxu1 }
 0x231   : > { %2244 = vst.msk [vmem:[%s4107_s25 + $0x1c0] sm:$0xff] %vm335_vm0, %v2169_v30  ;;  %v2094_v22 = vadd.f32 %v4964_v45, %v2093_v11 }
 0x233   : > { %2214 = vst.msk [vmem:[%s4107_s25 + $0xd0] sm:$0xff] %vm335_vm0, %v2094_v22 }
 0x236   : > { %v2170_v0 = vpop.f32.mrf.mxu3 }
 0x237   : > { %v2171_v63 = vadd.f32 %v4964_v45, %v2170_v0 }
 0x238   : > { %v2095_v4 = vpop.f32.mrf.mxu1 }
 0x239   : > { %2245 = vst.msk [vmem:[%s4107_s25 + $0x1c8] sm:$0xff] %vm335_vm0, %v2171_v63  ;;  %v2096_v36 = vadd.f32 %v4964_v45, %v2095_v4 }
 0x23b   : > { %2215 = vst.msk [vmem:[%s4107_s25 + $0xd8] sm:$0xff] %vm335_vm0, %v2096_v36 }
 0x23e   : > { %v2173_v20 = vpop.f32.mrf.mxu3 }
 0x23f   : > { %v2174_v32 = vadd.f32 %v4964_v45, %v2173_v20 }
 0x240   : > { %v2098_v25 = vpop.f32.mrf.mxu1 }
 0x241   : > { %2246 = vst.msk [vmem:[%s4107_s25 + $0x1d0] sm:$0xff] %vm335_vm0, %v2174_v32  ;;  %v2099_v38 = vadd.f32 %v4964_v45, %v2098_v25 }
 0x243   : > { %2216 = vst.msk [vmem:[%s4107_s25 + $0xe0] sm:$0xff] %vm335_vm0, %v2099_v38 }
 0x246   : > { %v2175_v46 = vpop.f32.mrf.mxu3 }
 0x247   : > { %v2176_v28 = vadd.f32 %v4964_v45, %v2175_v46 }
 0x248   : > { %v2100_v61 = vpop.f32.mrf.mxu1 }
 0x249   : > { %2247 = vst.msk [vmem:[%s4107_s25 + $0x1d8] sm:$0xff] %vm335_vm0, %v2176_v28  ;;  %v2101_v6 = vadd.f32 %v4964_v45, %v2100_v61 }
 0x24b   : > { %2217 = vst.msk [vmem:[%s4107_s25 + $0xe8] sm:$0xff] %vm335_vm0, %v2101_v6 }
 0x24e   : > { %v2178_v5 = vpop.f32.mrf.mxu3 }
 0x24f   : > { %v2179_v23 = vadd.f32 %v4964_v45, %v2178_v5 }
 0x251   : > { %2248 = vst.msk [vmem:[%s4107_s25 + $0x1e0] sm:$0xff] %vm335_vm0, %v2179_v23 }
 0x256   : > { %v2180_v52 = vpop.f32.mrf.mxu3 }
 0x257   : > { %v2181_v8 = vadd.f32 %v4964_v45, %v2180_v52 }
 0x259   : > { %2249 = vst.msk [vmem:[%s4107_s25 + $0x1e8] sm:$0xff] %vm335_vm0, %v2181_v8 }
 0x25a   : > { %v2103_v33 = vpop.f32.mrf.mxu1 }
 0x25b   : > { %v2104_v17 = vadd.f32 %v4964_v45, %v2103_v33 }
 0x25d   : > { %2218 = vst.msk [vmem:[%s4107_s25 + $0xf0] sm:$0xff] %vm335_vm0, %v2104_v17 }
 0x262   : > { %v2105_v24 = vpop.f32.mrf.mxu1 }
 0x263   : > { %v2106_v41 = vadd.f32 %v4964_v45, %v2105_v24 }
 0x265   : > { %2219 = vst.msk [vmem:[%s4107_s25 + $0xf8] sm:$0xff] %vm335_vm0, %v2106_v41 }
 0x266   : > { %v2183_v58 = vpop.f32.mrf.mxu3 }
 0x267   : > { %v2184_v18 = vadd.f32 %v4964_v45, %v2183_v58 }
 0x269   : > { %2250 = vst.msk [vmem:[%s4107_s25 + $0x1f0] sm:$0xff] %vm335_vm0, %v2184_v18 }
 0x26e   : > { %v2185_v47 = vpop.f32.mrf.mxu3 }
 0x26f   : > { %v2186_v9 = vadd.f32 %v4964_v45, %v2185_v47 }
 0x271   : > { %2251 = vst.msk [vmem:[%s4107_s25 + $0x1f8] sm:$0xff] %vm335_vm0, %v2186_v9 }
 0x272 PF: > { %s15_s18 = sadd.s32 1, %s2726_s18  }
 0x273   : > { %p12_p4 = scmp.ge.s32.totalorder %s15_s18, 4  }
 0x275   :  { %14 = sbr.rel (!%p12_p4) target bundleno = 1 (0x1), region = 70 }

// kernel: mca_forward.6
= control target key start
LH: loop header
LB: loop body
LE: loop exit
PB: predicated region body
PF: predicated region fallthrough
CT: control target
= control target key end

     0   :  { %s809_s12 = smov 0   ;;  %s1140_s0 = inlined_call_operand.vmem [shape: f32[4,512,32], index: 0, kind: input, shape index: {}]   ;;  %s1141_s1 = inlined_call_operand.vmem [shape: f32[4,32,32], index: 1, kind: input, shape index: {}]   ;;  %s1142_s2 = inlined_call_operand.vmem [shape: f32[4,1,32], index: 2, kind: input, shape index: {}]   ;;  %s1143_s3 = inlined_call_operand.vmem [shape: f32[4,512,32], index: 3, kind: output, shape index: {}]  }
   0x1 LB: > { %s718_s13 = sadd.s32 4294967295, %s787_s12   ;;  %p722_p0 = scmp.ge.s32.totalorder %s787_s12, 1  ;;  %s787_s12 = sphi %s809_s12, %s13_s12  }
   0x2   : > { %p155_p1 = scmp.lt.s32.totalorder %s787_s12, 5 }
   0x4   : > { %p156_p2 = pnand %p722_p0, %p155_p1 }
   0x5   : > { %p187_p3 = scmp.lt.s32.totalorder (!%p156_p2), %s718_s13, 3 }
   0x6   : > { %159 = sbr.rel (%p156_p2) target bundleno = 281 (0x119), region = 32 }
   0xb   : > { %s1145_s13 = smov (!%p187_p3, %s718_s13), 3  ;;  %vm312_vm0 = vcmask 261120  }
   0xc   : > { %s763_s14 = sshll.u32 %s1145_s13, 9  ;;  %s764_s15 = sshll.u32 %s1145_s13, 5 }
   0xd   : > { %s826_s18 = scalar_lea.vmem %s1140_s0, %s763_s14  ;;  %s196_s21 = scalar_lea.vmem %s1141_s1, %s764_s15 }
   0xe   : > { %s199_s24 = scalar_lea.vmem %s1142_s2, %s1145_s13  ;;  %v304_v0 = vld [vmem:[%s196_s21 + $0x10] sm:$0xff]  ;;  %v305_v1 = vld [vmem:[%s196_s21 + $0x18] sm:$0xff]  ;;  %v302_v2 = vld [vmem:[%s196_s21] sm:$0xff]  ;;  %s943_s29 = scalar_lea.vmem %s1143_s3, %s763_s14 }
   0xf   : > { %v307_v3 = vpack.c.bf16 %v305_v1, %v304_v0  ;;  %v303_v4 = vld [vmem:[%s196_s21 + $0x8] sm:$0xff]  ;;  %v206_v5 = vld [vmem:[%s826_s18] sm:$0xff]  ;;  %v208_v18 = vld [vmem:[%s826_s18 + $0x10] sm:$0xff] }
  0x10   : > { %v207_v6 = vld [vmem:[%s826_s18 + $0x8] sm:$0xff]  ;;  %v306_v7 = vpack.c.bf16 %v303_v4, %v302_v2  ;;  %v222_v8 = vld [vmem:[%s826_s18 + $0x80] sm:$0xff]  ;;  %v209_v19 = vld [vmem:[%s826_s18 + $0x18] sm:$0xff] }
  0x11   : > { %415 = vmatpush.bf16.msra.mxu0 %v307_v3  ;;  %766 = vmatpush.bf16.msra.mxu1 %v307_v3  ;;  %v223_v9 = vld [vmem:[%s826_s18 + $0x88] sm:$0xff]  ;;  %v238_v10 = vld [vmem:[%s826_s18 + $0x100] sm:$0xff]  ;;  %v270_v14 = vpack.c.bf16 %v207_v6, %v206_v5  ;;  %v224_v20 = vld [vmem:[%s826_s18 + $0x90] sm:$0xff]  ;;  %v271_v26 = vpack.c.bf16 %v209_v19, %v208_v18 }
  0x12   : > { %767 = vmatpush.bf16.msra.mxu2 %v307_v3  ;;  %768 = vmatpush.bf16.msra.mxu3 %v307_v3  ;;  %v239_v11 = vld [vmem:[%s826_s18 + $0x108] sm:$0xff]  ;;  %v254_v12 = vld [vmem:[%s826_s18 + $0x180] sm:$0xff]  ;;  %v278_v15 = vpack.c.bf16 %v223_v9, %v222_v8  ;;  %v225_v21 = vld [vmem:[%s826_s18 + $0x98] sm:$0xff] }
  0x13   : > { %v255_v13 = vld [vmem:[%s826_s18 + $0x188] sm:$0xff]  ;;  %v286_v16 = vpack.c.bf16 %v239_v11, %v238_v10  ;;  %v240_v22 = vld [vmem:[%s826_s18 + $0x110] sm:$0xff]  ;;  %v241_v23 = vld [vmem:[%s826_s18 + $0x118] sm:$0xff]  ;;  %v279_v27 = vpack.c.bf16 %v225_v21, %v224_v20 }
  0x14   : > { %v294_v17 = vpack.c.bf16 %v255_v13, %v254_v12  ;;  %v256_v24 = vld [vmem:[%s826_s18 + $0x190] sm:$0xff]  ;;  %v257_v25 = vld [vmem:[%s826_s18 + $0x198] sm:$0xff]  ;;  %v287_v28 = vpack.c.bf16 %v241_v23, %v240_v22  ;;  %v210_v30 = vld [vmem:[%s826_s18 + $0x20] sm:$0xff] }
  0x15   : > { %416 = vmatpush.bf16.msra.mxu0 %v306_v7  ;;  %769 = vmatpush.bf16.msra.mxu1 %v306_v7  ;;  %v295_v29 = vpack.c.bf16 %v257_v25, %v256_v24  ;;  %v211_v31 = vld [vmem:[%s826_s18 + $0x28] sm:$0xff]  ;;  %v226_v32 = vld [vmem:[%s826_s18 + $0xa0] sm:$0xff]  ;;  %v212_v42 = vld [vmem:[%s826_s18 + $0x30] sm:$0xff] }
  0x16   : > { %770 = vmatpush.bf16.msra.mxu2 %v306_v7  ;;  %771 = vmatpush.bf16.msra.mxu3 %v306_v7  ;;  %v227_v33 = vld [vmem:[%s826_s18 + $0xa8] sm:$0xff]  ;;  %v242_v34 = vld [vmem:[%s826_s18 + $0x120] sm:$0xff]  ;;  %v272_v38 = vpack.c.bf16 %v211_v31, %v210_v30  ;;  %v213_v43 = vld [vmem:[%s826_s18 + $0x38] sm:$0xff] }
  0x17   : > { %v243_v35 = vld [vmem:[%s826_s18 + $0x128] sm:$0xff]  ;;  %v258_v36 = vld [vmem:[%s826_s18 + $0x1a0] sm:$0xff]  ;;  %v280_v39 = vpack.c.bf16 %v227_v33, %v226_v32  ;;  %v228_v44 = vld [vmem:[%s826_s18 + $0xb0] sm:$0xff]  ;;  %v273_v50 = vpack.c.bf16 %v213_v43, %v212_v42 }
  0x18   : > { %729 = vmatmul.msk.bf16.vlgmr.msra.gmra.mxu0 %vm312_vm0, %v270_v14  ;;  %737 = vmatmul.msk.bf16.vlgmr.msra.gmra.mxu1 %vm312_vm0, %v278_v15  ;;  %v259_v37 = vld [vmem:[%s826_s18 + $0x1a8] sm:$0xff]  ;;  %v288_v40 = vpack.c.bf16 %v243_v35, %v242_v34  ;;  %v229_v45 = vld [vmem:[%s826_s18 + $0xb8] sm:$0xff]  ;;  %v244_v46 = vld [vmem:[%s826_s18 + $0x130] sm:$0xff] }
  0x19   : > { %745 = vmatmul.msk.bf16.vlgmr.msra.gmra.mxu2 %vm312_vm0, %v286_v16  ;;  %753 = vmatmul.msk.bf16.vlgmr.msra.gmra.mxu3 %vm312_vm0, %v294_v17  ;;  %v296_v41 = vpack.c.bf16 %v259_v37, %v258_v36  ;;  %v245_v47 = vld [vmem:[%s826_s18 + $0x138] sm:$0xff]  ;;  %v260_v48 = vld [vmem:[%s826_s18 + $0x1b0] sm:$0xff]  ;;  %v281_v51 = vpack.c.bf16 %v229_v45, %v228_v44  ;;  %v214_v54 = vld [vmem:[%s826_s18 + $0x40] sm:$0xff] }
  0x1a   : > { %v261_v49 = vld [vmem:[%s826_s18 + $0x1b8] sm:$0xff]  ;;  %v289_v52 = vpack.c.bf16 %v245_v47, %v244_v46  ;;  %v215_v55 = vld [vmem:[%s826_s18 + $0x48] sm:$0xff]  ;;  %v230_v56 = vld [vmem:[%s826_s18 + $0xc0] sm:$0xff] }
  0x1b   : > { %v297_v53 = vpack.c.bf16 %v261_v49, %v260_v48  ;;  %v231_v57 = vld [vmem:[%s826_s18 + $0xc8] sm:$0xff]  ;;  %v246_v58 = vld [vmem:[%s826_s18 + $0x140] sm:$0xff]  ;;  %v274_v62 = vpack.c.bf16 %v215_v55, %v214_v54  ;;  %v216_v2 = vld [vmem:[%s826_s18 + $0x50] sm:$0xff] }
  0x1c   : > { %v247_v59 = vld [vmem:[%s826_s18 + $0x148] sm:$0xff]  ;;  %v262_v60 = vld [vmem:[%s826_s18 + $0x1c0] sm:$0xff]  ;;  %v282_v63 = vpack.c.bf16 %v231_v57, %v230_v56  ;;  %v217_v3 = vld [vmem:[%s826_s18 + $0x58] sm:$0xff] }
  0x1d   : > { %v263_v61 = vld [vmem:[%s826_s18 + $0x1c8] sm:$0xff]  ;;  %v290_v0 = vpack.c.bf16 %v247_v59, %v246_v58  ;;  %v232_v4 = vld [vmem:[%s826_s18 + $0xd0] sm:$0xff]  ;;  %v233_v5 = vld [vmem:[%s826_s18 + $0xd8] sm:$0xff]  ;;  %v275_v10 = vpack.c.bf16 %v217_v3, %v216_v2 }
  0x1e   : > { %v298_v1 = vpack.c.bf16 %v263_v61, %v262_v60  ;;  %v248_v6 = vld [vmem:[%s826_s18 + $0x150] sm:$0xff]  ;;  %v249_v7 = vld [vmem:[%s826_s18 + $0x158] sm:$0xff]  ;;  %v283_v11 = vpack.c.bf16 %v233_v5, %v232_v4  ;;  %v218_v14 = vld [vmem:[%s826_s18 + $0x60] sm:$0xff] }
  0x1f   : > { %v264_v8 = vld [vmem:[%s826_s18 + $0x1d0] sm:$0xff]  ;;  %v265_v9 = vld [vmem:[%s826_s18 + $0x1d8] sm:$0xff]  ;;  %v291_v12 = vpack.c.bf16 %v249_v7, %v248_v6  ;;  %v219_v15 = vld [vmem:[%s826_s18 + $0x68] sm:$0xff] }
  0x20   : > { %v299_v13 = vpack.c.bf16 %v265_v9, %v264_v8  ;;  %v234_v16 = vld [vmem:[%s826_s18 + $0xe0] sm:$0xff]  ;;  %v235_v17 = vld [vmem:[%s826_s18 + $0xe8] sm:$0xff]  ;;  %v276_v22 = vpack.c.bf16 %v219_v15, %v218_v14  ;;  %v252_v30 = vld [vmem:[%s826_s18 + $0x170] sm:$0xff] }
  0x21   : > { %v250_v18 = vld [vmem:[%s826_s18 + $0x160] sm:$0xff]  ;;  %v251_v19 = vld [vmem:[%s826_s18 + $0x168] sm:$0xff]  ;;  %v284_v23 = vpack.c.bf16 %v235_v17, %v234_v16  ;;  %v253_v31 = vld [vmem:[%s826_s18 + $0x178] sm:$0xff] }
  0x22   : > { %v266_v20 = vld [vmem:[%s826_s18 + $0x1e0] sm:$0xff]  ;;  %v267_v21 = vld [vmem:[%s826_s18 + $0x1e8] sm:$0xff]  ;;  %v292_v24 = vpack.c.bf16 %v251_v19, %v250_v18  ;;  %v268_v32 = vld [vmem:[%s826_s18 + $0x1f0] sm:$0xff]  ;;  %v293_v36 = vpack.c.bf16 %v253_v31, %v252_v30 }
  0x23   : > { %v300_v25 = vpack.c.bf16 %v267_v21, %v266_v20  ;;  %v269_v33 = vld [vmem:[%s826_s18 + $0x1f8] sm:$0xff] }
  0x24   : > { %v301_v37 = vpack.c.bf16 %v269_v33, %v268_v32 }
  0x28   : > { %730 = vmatmul.msk.bf16.gmra.mxu0 %vm312_vm0, %v271_v26  ;;  %738 = vmatmul.msk.bf16.gmra.mxu1 %vm312_vm0, %v279_v27  ;;  %v220_v26 = vld [vmem:[%s826_s18 + $0x70] sm:$0xff]  ;;  %v221_v27 = vld [vmem:[%s826_s18 + $0x78] sm:$0xff] }
  0x29   : > { %746 = vmatmul.msk.bf16.gmra.mxu2 %vm312_vm0, %v287_v28  ;;  %754 = vmatmul.msk.bf16.gmra.mxu3 %vm312_vm0, %v295_v29  ;;  %v236_v28 = vld [vmem:[%s826_s18 + $0xf0] sm:$0xff]  ;;  %v237_v29 = vld [vmem:[%s826_s18 + $0xf8] sm:$0xff]  ;;  %v277_v34 = vpack.c.bf16 %v221_v27, %v220_v26 }
  0x2a   : > { %v285_v35 = vpack.c.bf16 %v237_v29, %v236_v28 }
  0x38   : > { %731 = vmatmul.msk.bf16.gmra.mxu0 %vm312_vm0, %v272_v38  ;;  %739 = vmatmul.msk.bf16.gmra.mxu1 %vm312_vm0, %v280_v39  ;;  %v936_v38 = vld [vmem:[%s199_s24] ss:$0 sm:$0xff] }
  0x39   : > { %747 = vmatmul.msk.bf16.gmra.mxu2 %vm312_vm0, %v288_v40  ;;  %755 = vmatmul.msk.bf16.gmra.mxu3 %vm312_vm0, %v296_v41 }
  0x48   : > { %732 = vmatmul.msk.bf16.gmra.mxu0 %vm312_vm0, %v273_v50  ;;  %740 = vmatmul.msk.bf16.gmra.mxu1 %vm312_vm0, %v281_v51 }
  0x49   : > { %748 = vmatmul.msk.bf16.gmra.mxu2 %vm312_vm0, %v289_v52  ;;  %756 = vmatmul.msk.bf16.gmra.mxu3 %vm312_vm0, %v297_v53 }
  0x58   : > { %733 = vmatmul.msk.bf16.gmra.mxu0 %vm312_vm0, %v274_v62  ;;  %741 = vmatmul.msk.bf16.gmra.mxu1 %vm312_vm0, %v282_v63 }
  0x59   : > { %749 = vmatmul.msk.bf16.gmra.mxu2 %vm312_vm0, %v290_v0  ;;  %757 = vmatmul.msk.bf16.gmra.mxu3 %vm312_vm0, %v298_v1 }
  0x68   : > { %734 = vmatmul.msk.bf16.gmra.mxu0 %vm312_vm0, %v275_v10  ;;  %742 = vmatmul.msk.bf16.gmra.mxu1 %vm312_vm0, %v283_v11 }
  0x69   : > { %750 = vmatmul.msk.bf16.gmra.mxu2 %vm312_vm0, %v291_v12  ;;  %758 = vmatmul.msk.bf16.gmra.mxu3 %vm312_vm0, %v299_v13 }
  0x78   : > { %735 = vmatmul.msk.bf16.gmra.mxu0 %vm312_vm0, %v276_v22  ;;  %743 = vmatmul.msk.bf16.gmra.mxu1 %vm312_vm0, %v284_v23 }
  0x79   : > { %751 = vmatmul.msk.bf16.gmra.mxu2 %vm312_vm0, %v292_v24  ;;  %759 = vmatmul.msk.bf16.gmra.mxu3 %vm312_vm0, %v300_v25 }
  0x88   : > { %736 = vmatmul.msk.bf16.gmra.mxu0 %vm312_vm0, %v277_v34  ;;  %744 = vmatmul.msk.bf16.gmra.mxu1 %vm312_vm0, %v285_v35 }
  0x89   : > { %752 = vmatmul.msk.bf16.gmra.mxu2 %vm312_vm0, %v293_v36  ;;  %760 = vmatmul.msk.bf16.gmra.mxu3 %vm312_vm0, %v301_v37 }
  0x95   : > { %v418_v39 = vpop.f32.mrf.mxu0  ;;  %v458_v40 = vpop.f32.mrf.mxu1 }
  0x96   : > { %v419_v41 = vadd.f32 %v936_v38, %v418_v39  ;;  %v459_v42 = vadd.f32 %v936_v38, %v458_v40 }
  0x98   : > { %578 = vst.msk [vmem:[%s943_s29] sm:$0xff] %vm312_vm0, %v419_v41 }
  0x99   : > { %594 = vst.msk [vmem:[%s943_s29 + $0x80] sm:$0xff] %vm312_vm0, %v459_v42 }
  0x9c   : > { %v498_v43 = vpop.f32.mrf.mxu2  ;;  %v538_v44 = vpop.f32.mrf.mxu3 }
  0x9d   : > { %v499_v45 = vadd.f32 %v936_v38, %v498_v43  ;;  %v539_v46 = vadd.f32 %v936_v38, %v538_v44  ;;  %v420_v47 = vpop.f32.mrf.mxu0  ;;  %v460_v48 = vpop.f32.mrf.mxu1 }
  0x9e   : > { %v421_v49 = vadd.f32 %v936_v38, %v420_v47  ;;  %v461_v50 = vadd.f32 %v936_v38, %v460_v48 }
  0x9f   : > { %610 = vst.msk [vmem:[%s943_s29 + $0x100] sm:$0xff] %vm312_vm0, %v499_v45 }
  0xa0   : > { %626 = vst.msk [vmem:[%s943_s29 + $0x180] sm:$0xff] %vm312_vm0, %v539_v46 }
  0xa1   : > { %579 = vst.msk [vmem:[%s943_s29 + $0x8] sm:$0xff] %vm312_vm0, %v421_v49 }
  0xa2   : > { %595 = vst.msk [vmem:[%s943_s29 + $0x88] sm:$0xff] %vm312_vm0, %v461_v50 }
  0xa4   : > { %v500_v51 = vpop.f32.mrf.mxu2  ;;  %v540_v52 = vpop.f32.mrf.mxu3 }
  0xa5   : > { %v501_v53 = vadd.f32 %v936_v38, %v500_v51  ;;  %v541_v54 = vadd.f32 %v936_v38, %v540_v52  ;;  %v423_v55 = vpop.f32.mrf.mxu0  ;;  %v463_v56 = vpop.f32.mrf.mxu1 }
  0xa6   : > { %v424_v57 = vadd.f32 %v936_v38, %v423_v55  ;;  %v464_v58 = vadd.f32 %v936_v38, %v463_v56 }
  0xa7   : > { %611 = vst.msk [vmem:[%s943_s29 + $0x108] sm:$0xff] %vm312_vm0, %v501_v53 }
  0xa8   : > { %627 = vst.msk [vmem:[%s943_s29 + $0x188] sm:$0xff] %vm312_vm0, %v541_v54 }
  0xa9   : > { %580 = vst.msk [vmem:[%s943_s29 + $0x10] sm:$0xff] %vm312_vm0, %v424_v57 }
  0xaa   : > { %596 = vst.msk [vmem:[%s943_s29 + $0x90] sm:$0xff] %vm312_vm0, %v464_v58 }
  0xac   : > { %v503_v59 = vpop.f32.mrf.mxu2  ;;  %v543_v60 = vpop.f32.mrf.mxu3 }
  0xad   : > { %v504_v61 = vadd.f32 %v936_v38, %v503_v59  ;;  %v544_v62 = vadd.f32 %v936_v38, %v543_v60  ;;  %v425_v63 = vpop.f32.mrf.mxu0  ;;  %v465_v0 = vpop.f32.mrf.mxu1 }
  0xae   : > { %v426_v1 = vadd.f32 %v936_v38, %v425_v63  ;;  %v466_v2 = vadd.f32 %v936_v38, %v465_v0 }
  0xaf   : > { %612 = vst.msk [vmem:[%s943_s29 + $0x110] sm:$0xff] %vm312_vm0, %v504_v61 }
  0xb0   : > { %628 = vst.msk [vmem:[%s943_s29 + $0x190] sm:$0xff] %vm312_vm0, %v544_v62 }
  0xb1   : > { %581 = vst.msk [vmem:[%s943_s29 + $0x18] sm:$0xff] %vm312_vm0, %v426_v1 }
  0xb2   : > { %597 = vst.msk [vmem:[%s943_s29 + $0x98] sm:$0xff] %vm312_vm0, %v466_v2 }
  0xb4   : > { %v505_v3 = vpop.f32.mrf.mxu2  ;;  %v545_v4 = vpop.f32.mrf.mxu3 }
  0xb5   : > { %v506_v5 = vadd.f32 %v936_v38, %v505_v3  ;;  %v546_v6 = vadd.f32 %v936_v38, %v545_v4  ;;  %v428_v7 = vpop.f32.mrf.mxu0  ;;  %v468_v8 = vpop.f32.mrf.mxu1 }
  0xb6   : > { %v429_v9 = vadd.f32 %v936_v38, %v428_v7  ;;  %v469_v10 = vadd.f32 %v936_v38, %v468_v8 }
  0xb7   : > { %613 = vst.msk [vmem:[%s943_s29 + $0x118] sm:$0xff] %vm312_vm0, %v506_v5 }
  0xb8   : > { %629 = vst.msk [vmem:[%s943_s29 + $0x198] sm:$0xff] %vm312_vm0, %v546_v6 }
  0xb9   : > { %582 = vst.msk [vmem:[%s943_s29 + $0x20] sm:$0xff] %vm312_vm0, %v429_v9 }
  0xba   : > { %598 = vst.msk [vmem:[%s943_s29 + $0xa0] sm:$0xff] %vm312_vm0, %v469_v10 }
  0xbc   : > { %v508_v11 = vpop.f32.mrf.mxu2  ;;  %v548_v12 = vpop.f32.mrf.mxu3 }
  0xbd   : > { %v509_v13 = vadd.f32 %v936_v38, %v508_v11  ;;  %v549_v14 = vadd.f32 %v936_v38, %v548_v12  ;;  %v430_v15 = vpop.f32.mrf.mxu0  ;;  %v470_v16 = vpop.f32.mrf.mxu1 }
  0xbe   : > { %v431_v17 = vadd.f32 %v936_v38, %v430_v15  ;;  %v471_v18 = vadd.f32 %v936_v38, %v470_v16 }
  0xbf   : > { %614 = vst.msk [vmem:[%s943_s29 + $0x120] sm:$0xff] %vm312_vm0, %v509_v13 }
  0xc0   : > { %630 = vst.msk [vmem:[%s943_s29 + $0x1a0] sm:$0xff] %vm312_vm0, %v549_v14 }
  0xc1   : > { %583 = vst.msk [vmem:[%s943_s29 + $0x28] sm:$0xff] %vm312_vm0, %v431_v17 }
  0xc2   : > { %599 = vst.msk [vmem:[%s943_s29 + $0xa8] sm:$0xff] %vm312_vm0, %v471_v18 }
  0xc4   : > { %v510_v19 = vpop.f32.mrf.mxu2  ;;  %v550_v20 = vpop.f32.mrf.mxu3 }
  0xc5   : > { %v511_v21 = vadd.f32 %v936_v38, %v510_v19  ;;  %v551_v22 = vadd.f32 %v936_v38, %v550_v20  ;;  %v433_v23 = vpop.f32.mrf.mxu0  ;;  %v473_v24 = vpop.f32.mrf.mxu1 }
  0xc6   : > { %v434_v25 = vadd.f32 %v936_v38, %v433_v23  ;;  %v474_v26 = vadd.f32 %v936_v38, %v473_v24 }
  0xc7   : > { %615 = vst.msk [vmem:[%s943_s29 + $0x128] sm:$0xff] %vm312_vm0, %v511_v21 }
  0xc8   : > { %631 = vst.msk [vmem:[%s943_s29 + $0x1a8] sm:$0xff] %vm312_vm0, %v551_v22 }
  0xc9   : > { %584 = vst.msk [vmem:[%s943_s29 + $0x30] sm:$0xff] %vm312_vm0, %v434_v25 }
  0xca   : > { %600 = vst.msk [vmem:[%s943_s29 + $0xb0] sm:$0xff] %vm312_vm0, %v474_v26 }
  0xcc   : > { %v513_v27 = vpop.f32.mrf.mxu2  ;;  %v553_v28 = vpop.f32.mrf.mxu3 }
  0xcd   : > { %v514_v29 = vadd.f32 %v936_v38, %v513_v27  ;;  %v554_v30 = vadd.f32 %v936_v38, %v553_v28  ;;  %v435_v31 = vpop.f32.mrf.mxu0  ;;  %v475_v32 = vpop.f32.mrf.mxu1 }
  0xce   : > { %v436_v33 = vadd.f32 %v936_v38, %v435_v31  ;;  %v476_v34 = vadd.f32 %v936_v38, %v475_v32 }
  0xcf   : > { %616 = vst.msk [vmem:[%s943_s29 + $0x130] sm:$0xff] %vm312_vm0, %v514_v29 }
  0xd0   : > { %632 = vst.msk [vmem:[%s943_s29 + $0x1b0] sm:$0xff] %vm312_vm0, %v554_v30 }
  0xd1   : > { %585 = vst.msk [vmem:[%s943_s29 + $0x38] sm:$0xff] %vm312_vm0, %v436_v33 }
  0xd2   : > { %601 = vst.msk [vmem:[%s943_s29 + $0xb8] sm:$0xff] %vm312_vm0, %v476_v34 }
  0xd4   : > { %v515_v35 = vpop.f32.mrf.mxu2  ;;  %v555_v36 = vpop.f32.mrf.mxu3 }
  0xd5   : > { %v516_v37 = vadd.f32 %v936_v38, %v515_v35  ;;  %v556_v39 = vadd.f32 %v936_v38, %v555_v36  ;;  %v438_v40 = vpop.f32.mrf.mxu0  ;;  %v478_v41 = vpop.f32.mrf.mxu1 }
  0xd6   : > { %v439_v42 = vadd.f32 %v936_v38, %v438_v40  ;;  %v479_v43 = vadd.f32 %v936_v38, %v478_v41 }
  0xd7   : > { %617 = vst.msk [vmem:[%s943_s29 + $0x138] sm:$0xff] %vm312_vm0, %v516_v37 }
  0xd8   : > { %633 = vst.msk [vmem:[%s943_s29 + $0x1b8] sm:$0xff] %vm312_vm0, %v556_v39 }
  0xd9   : > { %586 = vst.msk [vmem:[%s943_s29 + $0x40] sm:$0xff] %vm312_vm0, %v439_v42 }
  0xda   : > { %602 = vst.msk [vmem:[%s943_s29 + $0xc0] sm:$0xff] %vm312_vm0, %v479_v43 }
  0xdc   : > { %v518_v44 = vpop.f32.mrf.mxu2  ;;  %v558_v45 = vpop.f32.mrf.mxu3 }
  0xdd   : > { %v519_v46 = vadd.f32 %v936_v38, %v518_v44  ;;  %v559_v47 = vadd.f32 %v936_v38, %v558_v45  ;;  %v440_v48 = vpop.f32.mrf.mxu0  ;;  %v480_v49 = vpop.f32.mrf.mxu1 }
  0xde   : > { %v441_v50 = vadd.f32 %v936_v38, %v440_v48  ;;  %v481_v51 = vadd.f32 %v936_v38, %v480_v49 }
  0xdf   : > { %618 = vst.msk [vmem:[%s943_s29 + $0x140] sm:$0xff] %vm312_vm0, %v519_v46 }
  0xe0   : > { %634 = vst.msk [vmem:[%s943_s29 + $0x1c0] sm:$0xff] %vm312_vm0, %v559_v47 }
  0xe1   : > { %587 = vst.msk [vmem:[%s943_s29 + $0x48] sm:$0xff] %vm312_vm0, %v441_v50 }
  0xe2   : > { %603 = vst.msk [vmem:[%s943_s29 + $0xc8] sm:$0xff] %vm312_vm0, %v481_v51 }
  0xe4   : > { %v520_v52 = vpop.f32.mrf.mxu2  ;;  %v560_v53 = vpop.f32.mrf.mxu3 }
  0xe5   : > { %v521_v54 = vadd.f32 %v936_v38, %v520_v52  ;;  %v561_v55 = vadd.f32 %v936_v38, %v560_v53  ;;  %v443_v56 = vpop.f32.mrf.mxu0  ;;  %v483_v57 = vpop.f32.mrf.mxu1 }
  0xe6   : > { %v444_v58 = vadd.f32 %v936_v38, %v443_v56  ;;  %v484_v59 = vadd.f32 %v936_v38, %v483_v57 }
  0xe7   : > { %619 = vst.msk [vmem:[%s943_s29 + $0x148] sm:$0xff] %vm312_vm0, %v521_v54 }
  0xe8   : > { %635 = vst.msk [vmem:[%s943_s29 + $0x1c8] sm:$0xff] %vm312_vm0, %v561_v55 }
  0xe9   : > { %588 = vst.msk [vmem:[%s943_s29 + $0x50] sm:$0xff] %vm312_vm0, %v444_v58 }
  0xea   : > { %604 = vst.msk [vmem:[%s943_s29 + $0xd0] sm:$0xff] %vm312_vm0, %v484_v59 }
  0xec   : > { %v523_v60 = vpop.f32.mrf.mxu2  ;;  %v563_v61 = vpop.f32.mrf.mxu3 }
  0xed   : > { %v524_v62 = vadd.f32 %v936_v38, %v523_v60  ;;  %v564_v63 = vadd.f32 %v936_v38, %v563_v61  ;;  %v445_v0 = vpop.f32.mrf.mxu0  ;;  %v485_v1 = vpop.f32.mrf.mxu1 }
  0xee   : > { %v446_v2 = vadd.f32 %v936_v38, %v445_v0  ;;  %v486_v3 = vadd.f32 %v936_v38, %v485_v1 }
  0xef   : > { %620 = vst.msk [vmem:[%s943_s29 + $0x150] sm:$0xff] %vm312_vm0, %v524_v62 }
  0xf0   : > { %636 = vst.msk [vmem:[%s943_s29 + $0x1d0] sm:$0xff] %vm312_vm0, %v564_v63 }
  0xf1   : > { %589 = vst.msk [vmem:[%s943_s29 + $0x58] sm:$0xff] %vm312_vm0, %v446_v2 }
  0xf2   : > { %605 = vst.msk [vmem:[%s943_s29 + $0xd8] sm:$0xff] %vm312_vm0, %v486_v3 }
  0xf4   : > { %v525_v4 = vpop.f32.mrf.mxu2  ;;  %v565_v5 = vpop.f32.mrf.mxu3 }
  0xf5   : > { %v526_v6 = vadd.f32 %v936_v38, %v525_v4  ;;  %v566_v7 = vadd.f32 %v936_v38, %v565_v5  ;;  %v448_v8 = vpop.f32.mrf.mxu0  ;;  %v488_v9 = vpop.f32.mrf.mxu1 }
  0xf6   : > { %v449_v10 = vadd.f32 %v936_v38, %v448_v8  ;;  %v489_v11 = vadd.f32 %v936_v38, %v488_v9 }
  0xf7   : > { %621 = vst.msk [vmem:[%s943_s29 + $0x158] sm:$0xff] %vm312_vm0, %v526_v6 }
  0xf8   : > { %637 = vst.msk [vmem:[%s943_s29 + $0x1d8] sm:$0xff] %vm312_vm0, %v566_v7 }
  0xf9   : > { %590 = vst.msk [vmem:[%s943_s29 + $0x60] sm:$0xff] %vm312_vm0, %v449_v10 }
  0xfa   : > { %606 = vst.msk [vmem:[%s943_s29 + $0xe0] sm:$0xff] %vm312_vm0, %v489_v11 }
  0xfc   : > { %v528_v12 = vpop.f32.mrf.mxu2  ;;  %v568_v13 = vpop.f32.mrf.mxu3 }
  0xfd   : > { %v529_v14 = vadd.f32 %v936_v38, %v528_v12  ;;  %v569_v15 = vadd.f32 %v936_v38, %v568_v13  ;;  %v450_v16 = vpop.f32.mrf.mxu0  ;;  %v490_v17 = vpop.f32.mrf.mxu1 }
  0xfe   : > { %v451_v18 = vadd.f32 %v936_v38, %v450_v16  ;;  %v491_v19 = vadd.f32 %v936_v38, %v490_v17 }
  0xff   : > { %622 = vst.msk [vmem:[%s943_s29 + $0x160] sm:$0xff] %vm312_vm0, %v529_v14 }
 0x100   : > { %638 = vst.msk [vmem:[%s943_s29 + $0x1e0] sm:$0xff] %vm312_vm0, %v569_v15 }
 0x101   : > { %591 = vst.msk [vmem:[%s943_s29 + $0x68] sm:$0xff] %vm312_vm0, %v451_v18 }
 0x102   : > { %607 = vst.msk [vmem:[%s943_s29 + $0xe8] sm:$0xff] %vm312_vm0, %v491_v19 }
 0x104   : > { %v530_v20 = vpop.f32.mrf.mxu2  ;;  %v570_v21 = vpop.f32.mrf.mxu3 }
 0x105   : > { %v531_v22 = vadd.f32 %v936_v38, %v530_v20  ;;  %v571_v23 = vadd.f32 %v936_v38, %v570_v21  ;;  %v453_v24 = vpop.f32.mrf.mxu0  ;;  %v493_v25 = vpop.f32.mrf.mxu1 }
 0x106   : > { %v454_v26 = vadd.f32 %v936_v38, %v453_v24  ;;  %v494_v27 = vadd.f32 %v936_v38, %v493_v25 }
 0x107   : > { %623 = vst.msk [vmem:[%s943_s29 + $0x168] sm:$0xff] %vm312_vm0, %v531_v22 }
 0x108   : > { %639 = vst.msk [vmem:[%s943_s29 + $0x1e8] sm:$0xff] %vm312_vm0, %v571_v23 }
 0x109   : > { %592 = vst.msk [vmem:[%s943_s29 + $0x70] sm:$0xff] %vm312_vm0, %v454_v26 }
 0x10a   : > { %608 = vst.msk [vmem:[%s943_s29 + $0xf0] sm:$0xff] %vm312_vm0, %v494_v27 }
 0x10c   : > { %v533_v28 = vpop.f32.mrf.mxu2  ;;  %v573_v29 = vpop.f32.mrf.mxu3 }
 0x10d   : > { %v534_v30 = vadd.f32 %v936_v38, %v533_v28  ;;  %v574_v31 = vadd.f32 %v936_v38, %v573_v29  ;;  %v455_v32 = vpop.f32.mrf.mxu0  ;;  %v495_v33 = vpop.f32.mrf.mxu1 }
 0x10e   : > { %v456_v34 = vadd.f32 %v936_v38, %v455_v32  ;;  %v496_v35 = vadd.f32 %v936_v38, %v495_v33 }
 0x10f   : > { %624 = vst.msk [vmem:[%s943_s29 + $0x170] sm:$0xff] %vm312_vm0, %v534_v30 }
 0x110   : > { %640 = vst.msk [vmem:[%s943_s29 + $0x1f0] sm:$0xff] %vm312_vm0, %v574_v31 }
 0x111   : > { %593 = vst.msk [vmem:[%s943_s29 + $0x78] sm:$0xff] %vm312_vm0, %v456_v34 }
 0x112   : > { %609 = vst.msk [vmem:[%s943_s29 + $0xf8] sm:$0xff] %vm312_vm0, %v496_v35 }
 0x114   : > { %v535_v36 = vpop.f32.mrf.mxu2  ;;  %v575_v37 = vpop.f32.mrf.mxu3 }
 0x115   : > { %v536_v39 = vadd.f32 %v936_v38, %v535_v36  ;;  %v576_v40 = vadd.f32 %v936_v38, %v575_v37 }
 0x117   : > { %625 = vst.msk [vmem:[%s943_s29 + $0x178] sm:$0xff] %vm312_vm0, %v536_v39 }
 0x118   : > { %641 = vst.msk [vmem:[%s943_s29 + $0x1f8] sm:$0xff] %vm312_vm0, %v576_v40 }
 0x119 PF: > { %s13_s12 = sadd.s32 1, %s787_s12  }
 0x11a   : > { %p10_p4 = scmp.ge.s32.totalorder %s13_s12, 6  }
 0x11c   :  { %12 = sbr.rel (!%p10_p4) target bundleno = 1 (0x1), region = 68 }

</bundles_post_ra>
